<compile_context>
chip_gen: v6e
topology: v6e:2x2x1
jax: 0.10.0
libtpu: 0.0.40
codegen_flags: <defaults>
</compile_context>

<pallas_src>
import math
import functools

import jax
import jax.numpy as jnp
from jax.experimental import pallas as pl
from jax.experimental.pallas import tpu as pltpu

# small, decoder-consistent config (downscaled from the 768/12/3072 spec)
D_MODEL    = 64
NUM_HEADS  = 4
D_K        = D_MODEL // NUM_HEADS
D_FF       = 128
NUM_LAYERS = 2
MAX_SEQ    = 16
VOCAB      = 128
BATCH      = 2
SEQ        = 8
LN_EPS     = 1e-5        # nn.LayerNorm default
NEG_INF    = -1e30       # torch masking_value for float32


# ---------------------------------------------------------------------------
# One fused Pallas kernel: whole Decoder forward for one batch element.
# ---------------------------------------------------------------------------
def _decoder_kernel(tok_ref, emb_ref,
                    wq_ref, bq_ref, wk_ref, bk_ref, wv_ref, bv_ref,
                    wo_ref, bo_ref, w1_ref, b1_ref, w2_ref, b2_ref,
                    ln1g_ref, ln1b_ref, ln2g_ref, ln2b_ref,
                    wout_ref, bout_ref,
                    logits_ref,
                    *, vocab, num_heads):
    f32, bf16 = jnp.float32, jnp.bfloat16
    seq = tok_ref.shape[0]
    num_layers = w1_ref.shape[0]

    # --- embedding*sqrt(d_model) + positional encoding in ONE one-hot matmul.
    # emb_ref rows [0, vocab) hold the pre-scaled embedding table; rows
    # [vocab, vocab + max_seq) hold the PE table, so a second one-hot column
    # at (vocab + position) fuses the PE add into the same MXU pass.
    n_rows = emb_ref.shape[0]
    tok = tok_ref[...]                                               # (S, 1) i32
    col = jax.lax.broadcasted_iota(jnp.int32, (seq, n_rows), 1)
    pos = jax.lax.broadcasted_iota(jnp.int32, (seq, n_rows), 0)
    hot = jnp.logical_or(col == tok, col == vocab + pos)
    onehot = jnp.where(hot, 1.0, 0.0).astype(bf16)
    x = jnp.dot(onehot, emb_ref[...], preferred_element_type=f32)    # (S, D) f32

    # --- additive causal mask generated in-kernel (no HBM mask input) -------
    r = jax.lax.broadcasted_iota(jnp.int32, (seq, seq), 0)
    c = jax.lax.broadcasted_iota(jnp.int32, (seq, seq), 1)
    neg_mask = jnp.where(c <= r, 0.0, NEG_INF).astype(f32)           # (S, S)
    # TODO(synk): arbitrary/padding tgt_mask would need an additive-mask input.

    def layer_norm(z, g, b):      # f32 elementwise (VPU/EUP), per review
        mu = jnp.mean(z, axis=-1, keepdims=True)
        var = jnp.mean((z - mu) ** 2, axis=-1, keepdims=True)
        return (z - mu) * jax.lax.rsqrt(var + LN_EPS) * g + b

    for l in range(num_layers):
        # ---------------- pre-LN self attention ---------------------------
        xn = layer_norm(x, ln1g_ref[l], ln1b_ref[l]).astype(bf16)
        attn = jnp.zeros_like(x)                                     # (S, D) f32
        for h in range(num_heads):
            i = l * num_heads + h
            # per-head (D, d_k) weights => no lane-axis slicing anywhere.
            qh = jnp.dot(xn, wq_ref[i], preferred_element_type=f32) + bq_ref[i]
            kh = jnp.dot(xn, wk_ref[i], preferred_element_type=f32) + bk_ref[i]
            vh = jnp.dot(xn, wv_ref[i], preferred_element_type=f32) + bv_ref[i]
            # q @ k^T via dot_general (contract last dims; no transpose op).
            s = jax.lax.dot_general(
                qh.astype(bf16), kh.astype(bf16),
                (((1,), (1,)), ((), ())),
                preferred_element_type=f32) + neg_mask               # (S, S)
            s = s - jnp.max(s, axis=-1, keepdims=True)
            p = jnp.exp(s)
            p = p / jnp.sum(p, axis=-1, keepdims=True)               # exact softmax
            oh = jnp.dot(p.astype(bf16), vh.astype(bf16),
                         preferred_element_type=f32)                 # (S, d_k)
            # combine_heads + W_o folded: accumulate per-head o @ Wo_rows[h].
            attn = attn + jnp.dot(oh.astype(bf16), wo_ref[i],
                                  preferred_element_type=f32)        # (S, D)
        x = x + (attn + bo_ref[l])            # residual (dropout = identity)

        # ---------------- pre-LN feed forward ------------------------------
        xf = layer_norm(x, ln2g_ref[l], ln2b_ref[l]).astype(bf16)
        h1 = jnp.dot(xf, w1_ref[l], preferred_element_type=f32) + b1_ref[l]
        h1 = jnp.maximum(h1, 0.0)
        ff = jnp.dot(h1.astype(bf16), w2_ref[l],
                     preferred_element_type=f32) + b2_ref[l]
        x = x + ff                            # residual (dropout = identity)

    logits = jnp.dot(x.astype(bf16), wout_ref[...],
                     preferred_element_type=f32) + bout_ref[...]     # (S, V)
    logits_ref[...] = logits


# ---------------------------------------------------------------------------
# Parameter construction (PyTorch layout) and fusion prep for the kernel.
# ---------------------------------------------------------------------------
def make_positional_encoding(max_len, d_model):
    pos = jnp.arange(max_len, dtype=jnp.float32)[:, None]
    div = jnp.exp(jnp.arange(0, d_model, 2, dtype=jnp.float32)
                  * (-math.log(10000.0) / d_model))
    pe = jnp.zeros((max_len, d_model), jnp.float32)
    pe = pe.at[:, 0::2].set(jnp.sin(pos * div))
    pe = pe.at[:, 1::2].set(jnp.cos(pos * div))
    return pe


def init_raw_params(key):
    """Un-fused f32 parameters, weights stored as [in, out] (PyTorch W^T)."""
    def lin(key, din, dout):
        kw, kb = jax.random.split(key)
        bound = 1.0 / math.sqrt(din)
        w = jax.random.uniform(kw, (din, dout), jnp.float32, -bound, bound)
        b = jax.random.uniform(kb, (dout,), jnp.float32, -bound, bound)
        return w, b

    keys = jax.random.split(key, 2 + NUM_LAYERS)
    raw = {}
    raw["embedding"] = jax.random.normal(keys[0], (VOCAB, D_MODEL), jnp.float32)
    raw["pe"] = make_positional_encoding(MAX_SEQ, D_MODEL)
    raw["w_out"], raw["b_out"] = lin(keys[1], D_MODEL, VOCAB)
    layers = []
    for li in range(NUM_LAYERS):
        lk = jax.random.split(keys[2 + li], 6)
        lp = {}
        lp["wq"], lp["bq"] = lin(lk[0], D_MODEL, D_MODEL)
        lp["wk"], lp["bk"] = lin(lk[1], D_MODEL, D_MODEL)
        lp["wv"], lp["bv"] = lin(lk[2], D_MODEL, D_MODEL)
        lp["wo"], lp["bo"] = lin(lk[3], D_MODEL, D_MODEL)
        lp["w1"], lp["b1"] = lin(lk[4], D_MODEL, D_FF)
        lp["w2"], lp["b2"] = lin(lk[5], D_FF, D_MODEL)
        lp["ln1_g"] = jnp.ones((D_MODEL,), jnp.float32)
        lp["ln1_b"] = jnp.zeros((D_MODEL,), jnp.float32)
        lp["ln2_g"] = jnp.ones((D_MODEL,), jnp.float32)
        lp["ln2_b"] = jnp.zeros((D_MODEL,), jnp.float32)
        layers.append(lp)
    raw["layers"] = layers
    return raw


def prepare_fused_params(raw):
    """Per-head weight stacks (bf16 at the MXU boundary), 1/sqrt(d_k) folded
    into W_q / b_q, PE folded into an augmented embedding table."""
    bf16, f32 = jnp.bfloat16, jnp.float32
    inv = 1.0 / math.sqrt(D_K)
    wq, bq, wk, bk, wv, bv, wo = [], [], [], [], [], [], []
    bo, w1, b1, w2, b2 = [], [], [], [], []
    ln1g, ln1b, ln2g, ln2b = [], [], [], []
    for lp in raw["layers"]:
        wq_s, bq_s = lp["wq"] * inv, lp["bq"] * inv
        for h in range(NUM_HEADS):
            cs = slice(h * D_K, (h + 1) * D_K)
            wq.append(wq_s[:, cs]);      bq.append(bq_s[cs][None, :])
            wk.append(lp["wk"][:, cs]);  bk.append(lp["bk"][cs][None, :])
            wv.append(lp["wv"][:, cs]);  bv.append(lp["bv"][cs][None, :])
            wo.append(lp["wo"][cs, :])            # (d_k, D) row block of W_o
        bo.append(lp["bo"][None, :])
        w1.append(lp["w1"]); b1.append(lp["b1"][None, :])
        w2.append(lp["w2"]); b2.append(lp["b2"][None, :])
        ln1g.append(lp["ln1_g"][None, :]); ln1b.append(lp["ln1_b"][None, :])
        ln2g.append(lp["ln2_g"][None, :]); ln2b.append(lp["ln2_b"][None, :])
    st = lambda xs, dt: jnp.stack(xs, axis=0).astype(dt)
    params = {
        "wq": st(wq, bf16), "bq": st(bq, f32),
        "wk": st(wk, bf16), "bk": st(bk, f32),
        "wv": st(wv, bf16), "bv": st(bv, f32),
        "wo": st(wo, bf16), "bo": st(bo, f32),
        "w1": st(w1, bf16), "b1": st(b1, f32),
        "w2": st(w2, bf16), "b2": st(b2, f32),
        "ln1_g": st(ln1g, f32), "ln1_b": st(ln1b, f32),
        "ln2_g": st(ln2g, f32), "ln2_b": st(ln2b, f32),
        # augmented lookup table: [embedding * sqrt(d_model) ; positional enc]
        "emb_aug": jnp.concatenate(
            [raw["embedding"] * math.sqrt(D_MODEL), raw["pe"]], axis=0).astype(bf16),
        "w_out": raw["w_out"].astype(bf16),
        "b_out": raw["b_out"][None, :].astype(f32),
    }
    return params


_WEIGHT_ORDER = ("emb_aug", "wq", "bq", "wk", "bk", "wv", "bv", "wo", "bo",
                 "w1", "b1", "w2", "b2", "ln1_g", "ln1_b", "ln2_g", "ln2_b",
                 "w_out", "b_out")


def _full_spec(arr):
    zeros = (0,) * arr.ndim
    return pl.BlockSpec(arr.shape, lambda b: zeros)   # same block every step


def decoder_forward(params, tgt, tgt_mask=None):
    """Fused decoder forward. The kernel builds the standard causal mask
    in-kernel; `tgt_mask` is accepted only for interface parity."""
    del tgt_mask   # TODO(synk): support arbitrary masks via an additive input.
    B, S = tgt.shape
    V = params["w_out"].shape[1]
    tok = tgt.reshape(B * S, 1).astype(jnp.int32)

    kern = functools.partial(_decoder_kernel, vocab=VOCAB, num_heads=NUM_HEADS)
    weights = [params[k] for k in _WEIGHT_ORDER]
    in_specs = ([pl.BlockSpec((S, 1), lambda b: (b, 0))]
                + [_full_spec(w) for w in weights])

    logits = pl.pallas_call(
        kern,
        out_shape=jax.ShapeDtypeStruct((B * S, V), jnp.float32),
        grid_spec=pltpu.PrefetchScalarGridSpec(
            num_scalar_prefetch=0,
            grid=(B,),                               # batch-parallel grid
            in_specs=in_specs,
            out_specs=pl.BlockSpec((S, V), lambda b: (b, 0)),   # lane-dense V=128
        ),
        compiler_params=pltpu.CompilerParams(
            dimension_semantics=("parallel",)),      # both TCs on v7x
    )(tok, *weights)
    return logits.reshape(B, S, V)


# ---------------------------------------------------------------------------
# References: (1) pure-JAX mirror of the kernel arithmetic (tight check),
#             (2) f32 module-faithful reference (loose, bf16-rounding bound).
# ---------------------------------------------------------------------------
def kernel_math_reference(params, tgt):
    f32, bf16 = jnp.float32, jnp.bfloat16
    B, S = tgt.shape
    H, L = NUM_HEADS, params["w1"].shape[0]
    dot = lambda a, b: jnp.dot(a, b, preferred_element_type=f32)

    def ln(z, g, b):
        mu = jnp.mean(z, -1, keepdims=True)
        var = jnp.mean((z - mu) ** 2, -1, keepdims=True)
        return (z - mu) * jax.lax.rsqrt(var + LN_EPS) * g + b

    emb = params["emb_aug"].astype(f32)
    r = jnp.arange(S)[:, None]; c = jnp.arange(S)[None, :]
    neg_mask = jnp.where(c <= r, 0.0, NEG_INF).astype(f32)
    outs = []
    for bi in range(B):
        x = emb[tgt[bi]] + emb[VOCAB + jnp.arange(S)]
        for l in range(L):
            xn = ln(x, params["ln1_g"][l], params["ln1_b"][l]).astype(bf16)
            attn = jnp.zeros_like(x)
            for h in range(H):
                i = l * H + h
                qh = dot(xn, params["wq"][i]) + params["bq"][i]
                kh = dot(xn, params["wk"][i]) + params["bk"][i]
                vh = dot(xn, params["wv"][i]) + params["bv"][i]
                s = dot(qh.astype(bf16), kh.astype(bf16).T) + neg_mask
                s = s - jnp.max(s, -1, keepdims=True)
                p = jnp.exp(s)
                p = p / jnp.sum(p, -1, keepdims=True)
                oh = dot(p.astype(bf16), vh.astype(bf16))
                attn = attn + dot(oh.astype(bf16), params["wo"][i])
            x = x + (attn + params["bo"][l])
            xf = ln(x, params["ln2_g"][l], params["ln2_b"][l]).astype(bf16)
            h1 = jnp.maximum(dot(xf, params["w1"][l]) + params["b1"][l], 0.0)
            x = x + (dot(h1.astype(bf16), params["w2"][l]) + params["b2"][l])
        outs.append(dot(x.astype(bf16), params["w_out"]) + params["b_out"])
    return jnp.stack(outs, axis=0)


def reference_forward(raw, tgt, tgt_mask):
    hp = jax.lax.Precision.HIGHEST
    mm = lambda a, b: jnp.matmul(a, b, precision=hp)
    B, S = tgt.shape

    def ln(z, g, b):
        mu = jnp.mean(z, -1, keepdims=True)
        var = jnp.mean((z - mu) ** 2, -1, keepdims=True)
        return (z - mu) / jnp.sqrt(var + LN_EPS) * g + b

    x = jnp.take(raw["embedding"], tgt, axis=0) * math.sqrt(D_MODEL)
    x = x + raw["pe"][:S][None]
    for lp in raw["layers"]:
        xn = ln(x, lp["ln1_g"], lp["ln1_b"])
        q = mm(xn, lp["wq"]) + lp["bq"]
        k = mm(xn, lp["wk"]) + lp["bk"]
        v = mm(xn, lp["wv"]) + lp["bv"]
        split = lambda t: t.reshape(B, S, NUM_HEADS, D_K).transpose(0, 2, 1, 3)
        qh, kh, vh = split(q), split(k), split(v)
        s = jnp.einsum("bhqd,bhkd->bhqk", qh, kh, precision=hp) / math.sqrt(D_K)
        s = jnp.where(tgt_mask == 0, jnp.float32(NEG_INF), s)
        p = jax.nn.softmax(s, axis=-1)
        o = jnp.einsum("bhqk,bhkd->bhqd", p, vh, precision=hp)
        o = o.transpose(0, 2, 1, 3).reshape(B, S, D_MODEL)
        x = x + (mm(o, lp["wo"]) + lp["bo"])
        xf = ln(x, lp["ln2_g"], lp["ln2_b"])
        hdn = jnp.maximum(mm(xf, lp["w1"]) + lp["b1"], 0.0)
        x = x + (mm(hdn, lp["w2"]) + lp["b2"])
    return mm(x, raw["w_out"]) + raw["b_out"]


# ---------------------------------------------------------------------------
if __name__ == "__main__":
    key = jax.random.PRNGKey(0)
    kp, kt = jax.random.split(key)
    raw = init_raw_params(kp)
    params = prepare_fused_params(raw)

    tgt = jax.random.randint(kt, (BATCH, SEQ), 0, VOCAB, dtype=jnp.int32)
    # causal mask, shape [B, 1, S, S]; 0 = masked position (module interface)
    causal = jnp.tril(jnp.ones((SEQ, SEQ), jnp.int32))
    tgt_mask = jnp.broadcast_to(causal[None, None], (BATCH, 1, SEQ, SEQ))

    logits = decoder_forward(params, tgt, tgt_mask)
    jax.block_until_ready(logits)
    assert logits.shape == (BATCH, SEQ, VOCAB)
    assert bool(jnp.all(jnp.isfinite(logits)))

    # (1) tight check against a pure-JAX mirror of the kernel arithmetic
    matched = kernel_math_reference(params, tgt)
    tight_diff = float(jnp.max(jnp.abs(logits - matched)))
    assert tight_diff < 5e-3, f"kernel deviates from kernel-math reference: {tight_diff}"

    # (2) loose check against the f32 module-faithful reference; the bound only
    #     covers bf16 MXU-input rounding (implementation bugs are caught by (1))
    ref = reference_forward(raw, tgt, tgt_mask)
    loose_diff = float(jnp.max(jnp.abs(logits - ref)))
    assert loose_diff < 3e-1, f"kernel deviates from f32 reference: {loose_diff}"

    print("KERNEL_OK")
</pallas_src>

<mosaic_0001>
module attributes {stable_mosaic.version = 11 : i64} {
  func.func @_decoder_kernel(%arg0: i32, %arg1: memref<8x1xi32, #tpu.memory_space<vmem>>, %arg2: memref<144x64xbf16, #tpu.memory_space<vmem>>, %arg3: memref<8x64x16xbf16, #tpu.memory_space<vmem>>, %arg4: memref<8x1x16xf32, #tpu.memory_space<vmem>>, %arg5: memref<8x64x16xbf16, #tpu.memory_space<vmem>>, %arg6: memref<8x1x16xf32, #tpu.memory_space<vmem>>, %arg7: memref<8x64x16xbf16, #tpu.memory_space<vmem>>, %arg8: memref<8x1x16xf32, #tpu.memory_space<vmem>>, %arg9: memref<8x16x64xbf16, #tpu.memory_space<vmem>>, %arg10: memref<2x1x64xf32, #tpu.memory_space<vmem>>, %arg11: memref<2x64x128xbf16, #tpu.memory_space<vmem>>, %arg12: memref<2x1x128xf32, #tpu.memory_space<vmem>>, %arg13: memref<2x128x64xbf16, #tpu.memory_space<vmem>>, %arg14: memref<2x1x64xf32, #tpu.memory_space<vmem>>, %arg15: memref<2x1x64xf32, #tpu.memory_space<vmem>>, %arg16: memref<2x1x64xf32, #tpu.memory_space<vmem>>, %arg17: memref<2x1x64xf32, #tpu.memory_space<vmem>>, %arg18: memref<2x1x64xf32, #tpu.memory_space<vmem>>, %arg19: memref<64x128xbf16, #tpu.memory_space<vmem>>, %arg20: memref<1x128xf32, #tpu.memory_space<vmem>>, %arg21: memref<8x128xf32, #tpu.memory_space<vmem>>) attributes {dimension_semantics = [#tpu.dimension_semantics<parallel>], iteration_bounds = array<i64: 2>, scalar_prefetch = 0 : i64, scratch_operands = 0 : i64, tpu.core_type = #tpu.core_type<tc>, window_params = [{transform_indices = @transform_0, window_bounds = array<i64: 8, 1>}, {pipeline_mode = #tpu.pipeline_mode<synchronous>, transform_indices = @transform_1, window_bounds = array<i64: 144, 64>}, {pipeline_mode = #tpu.pipeline_mode<synchronous>, transform_indices = @transform_2, window_bounds = array<i64: 8, 64, 16>}, {pipeline_mode = #tpu.pipeline_mode<synchronous>, transform_indices = @transform_3, window_bounds = array<i64: 8, 1, 16>}, {pipeline_mode = #tpu.pipeline_mode<synchronous>, transform_indices = @transform_4, window_bounds = array<i64: 8, 64, 16>}, {pipeline_mode = #tpu.pipeline_mode<synchronous>, transform_indices = @transform_5, window_bounds = array<i64: 8, 1, 16>}, {pipeline_mode = #tpu.pipeline_mode<synchronous>, transform_indices = @transform_6, window_bounds = array<i64: 8, 64, 16>}, {pipeline_mode = #tpu.pipeline_mode<synchronous>, transform_indices = @transform_7, window_bounds = array<i64: 8, 1, 16>}, {pipeline_mode = #tpu.pipeline_mode<synchronous>, transform_indices = @transform_8, window_bounds = array<i64: 8, 16, 64>}, {pipeline_mode = #tpu.pipeline_mode<synchronous>, transform_indices = @transform_9, window_bounds = array<i64: 2, 1, 64>}, {pipeline_mode = #tpu.pipeline_mode<synchronous>, transform_indices = @transform_10, window_bounds = array<i64: 2, 64, 128>}, {pipeline_mode = #tpu.pipeline_mode<synchronous>, transform_indices = @transform_11, window_bounds = array<i64: 2, 1, 128>}, {pipeline_mode = #tpu.pipeline_mode<synchronous>, transform_indices = @transform_12, window_bounds = array<i64: 2, 128, 64>}, {pipeline_mode = #tpu.pipeline_mode<synchronous>, transform_indices = @transform_13, window_bounds = array<i64: 2, 1, 64>}, {pipeline_mode = #tpu.pipeline_mode<synchronous>, transform_indices = @transform_14, window_bounds = array<i64: 2, 1, 64>}, {pipeline_mode = #tpu.pipeline_mode<synchronous>, transform_indices = @transform_15, window_bounds = array<i64: 2, 1, 64>}, {pipeline_mode = #tpu.pipeline_mode<synchronous>, transform_indices = @transform_16, window_bounds = array<i64: 2, 1, 64>}, {pipeline_mode = #tpu.pipeline_mode<synchronous>, transform_indices = @transform_17, window_bounds = array<i64: 2, 1, 64>}, {pipeline_mode = #tpu.pipeline_mode<synchronous>, transform_indices = @transform_18, window_bounds = array<i64: 64, 128>}, {pipeline_mode = #tpu.pipeline_mode<synchronous>, transform_indices = @transform_19, window_bounds = array<i64: 1, 128>}, {transform_indices = @transform_20, window_bounds = array<i64: 8, 128>}]} {
    %c0 = arith.constant 0 : index
    %c0_0 = arith.constant 0 : index
    %0 = vector.load %arg1[%c0, %c0_0] : memref<8x1xi32, #tpu.memory_space<vmem>>, vector<8x1xi32>
    %1 = tpu.iota {dimensions = array<i32: 1>} : vector<8x144xi32>
    %2 = tpu.iota {dimensions = array<i32: 0>} : vector<8x144xi32>
    %3 = vector.broadcast %0 : vector<8x1xi32> to vector<8x144xi32>
    %4 = arith.cmpi eq, %1, %3 : vector<8x144xi32>
    %c128_i32 = arith.constant 128 : i32
    %5 = vector.broadcast %c128_i32 : i32 to vector<8x144xi32>
    %6 = arith.addi %5, %2 : vector<8x144xi32>
    %7 = arith.cmpi eq, %1, %6 : vector<8x144xi32>
    %8 = arith.ori %4, %7 : vector<8x144xi1>
    %cst = arith.constant 1.000000e+00 : f32
    %cst_1 = arith.constant 0.000000e+00 : f32
    %9 = vector.broadcast %cst : f32 to vector<8x144xf32>
    %10 = vector.broadcast %cst_1 : f32 to vector<8x144xf32>
    %11 = arith.select %8, %9, %10 : vector<8x144xi1>, vector<8x144xf32>
    %12 = arith.truncf %11 : vector<8x144xf32> to vector<8x144xbf16>
    %c0_2 = arith.constant 0 : index
    %c0_3 = arith.constant 0 : index
    %13 = vector.load %arg2[%c0_2, %c0_3] : memref<144x64xbf16, #tpu.memory_space<vmem>>, vector<144x64xbf16>
    %cst_4 = arith.constant dense<0.000000e+00> : vector<8x64xf32>
    %14 = tpu.matmul %12, %13, %cst_4 {dimension_numbers = #tpu.dot_dimension_numbers<[1], [0], [0], [1], [0, 0, 1, 1], [], []>} : vector<8x144xbf16>, vector<144x64xbf16>, vector<8x64xf32> -> vector<8x64xf32>
    %15 = tpu.iota {dimensions = array<i32: 0>} : vector<8x8xi32>
    %16 = tpu.iota {dimensions = array<i32: 1>} : vector<8x8xi32>
    %17 = arith.cmpi sle, %16, %15 : vector<8x8xi32>
    %cst_5 = arith.constant 0.000000e+00 : f32
    %cst_6 = arith.constant -1.000000e+30 : f32
    %18 = vector.broadcast %cst_5 : f32 to vector<8x8xf32>
    %19 = vector.broadcast %cst_6 : f32 to vector<8x8xf32>
    %20 = arith.select %17, %18, %19 : vector<8x8xi1>, vector<8x8xf32>
    %c0_7 = arith.constant 0 : index
    %c0_8 = arith.constant 0 : index
    %c0_9 = arith.constant 0 : index
    %21 = vector.load %arg15[%c0_7, %c0_8, %c0_9] : memref<2x1x64xf32, #tpu.memory_space<vmem>>, vector<1x1x64xf32>
    %22 = vector.shape_cast %21 : vector<1x1x64xf32> to vector<1x64xf32>
    %c0_10 = arith.constant 0 : index
    %c0_11 = arith.constant 0 : index
    %c0_12 = arith.constant 0 : index
    %23 = vector.load %arg16[%c0_10, %c0_11, %c0_12] : memref<2x1x64xf32, #tpu.memory_space<vmem>>, vector<1x1x64xf32>
    %24 = vector.shape_cast %23 : vector<1x1x64xf32> to vector<1x64xf32>
    %cst_13 = arith.constant dense<0.000000e+00> : vector<8xf32>
    %25 = vector.multi_reduction <add>, %14, %cst_13 [1] : vector<8x64xf32> to vector<8xf32>
    %26 = vector.shape_cast %25 : vector<8xf32> to vector<8x1xf32>
    %cst_14 = arith.constant 6.400000e+01 : f32
    %27 = vector.broadcast %cst_14 : f32 to vector<8x1xf32>
    %28 = arith.divf %26, %27 : vector<8x1xf32>
    %29 = vector.broadcast %28 : vector<8x1xf32> to vector<8x64xf32>
    %30 = arith.subf %14, %29 : vector<8x64xf32>
    %31 = arith.mulf %30, %30 : vector<8x64xf32>
    %cst_15 = arith.constant dense<0.000000e+00> : vector<8xf32>
    %32 = vector.multi_reduction <add>, %31, %cst_15 [1] : vector<8x64xf32> to vector<8xf32>
    %33 = vector.shape_cast %32 : vector<8xf32> to vector<8x1xf32>
    %cst_16 = arith.constant 6.400000e+01 : f32
    %34 = vector.broadcast %cst_16 : f32 to vector<8x1xf32>
    %35 = arith.divf %33, %34 : vector<8x1xf32>
    %36 = vector.broadcast %28 : vector<8x1xf32> to vector<8x64xf32>
    %37 = arith.subf %14, %36 : vector<8x64xf32>
    %cst_17 = arith.constant 9.99999974E-6 : f32
    %38 = vector.broadcast %cst_17 : f32 to vector<8x1xf32>
    %39 = arith.addf %35, %38 : vector<8x1xf32>
    %40 = math.rsqrt %39 : vector<8x1xf32>
    %41 = vector.broadcast %40 : vector<8x1xf32> to vector<8x64xf32>
    %42 = arith.mulf %37, %41 : vector<8x64xf32>
    %43 = vector.broadcast %22 : vector<1x64xf32> to vector<8x64xf32>
    %44 = arith.mulf %42, %43 : vector<8x64xf32>
    %45 = vector.broadcast %24 : vector<1x64xf32> to vector<8x64xf32>
    %46 = arith.addf %44, %45 : vector<8x64xf32>
    %47 = arith.truncf %46 : vector<8x64xf32> to vector<8x64xbf16>
    %cst_18 = arith.constant 0.000000e+00 : f32
    %48 = vector.broadcast %cst_18 : f32 to vector<8x64xf32>
    %c0_19 = arith.constant 0 : index
    %c0_20 = arith.constant 0 : index
    %c0_21 = arith.constant 0 : index
    %49 = vector.load %arg3[%c0_19, %c0_20, %c0_21] : memref<8x64x16xbf16, #tpu.memory_space<vmem>>, vector<1x64x16xbf16>
    %50 = vector.shape_cast %49 : vector<1x64x16xbf16> to vector<64x16xbf16>
    %cst_22 = arith.constant dense<0.000000e+00> : vector<8x16xf32>
    %51 = tpu.matmul %47, %50, %cst_22 {dimension_numbers = #tpu.dot_dimension_numbers<[1], [0], [0], [1], [0, 0, 1, 1], [], []>} : vector<8x64xbf16>, vector<64x16xbf16>, vector<8x16xf32> -> vector<8x16xf32>
    %c0_23 = arith.constant 0 : index
    %c0_24 = arith.constant 0 : index
    %c0_25 = arith.constant 0 : index
    %52 = vector.load %arg4[%c0_23, %c0_24, %c0_25] : memref<8x1x16xf32, #tpu.memory_space<vmem>>, vector<1x1x16xf32>
    %53 = vector.shape_cast %52 : vector<1x1x16xf32> to vector<1x16xf32>
    %54 = vector.broadcast %53 : vector<1x16xf32> to vector<8x16xf32>
    %55 = arith.addf %51, %54 : vector<8x16xf32>
    %c0_26 = arith.constant 0 : index
    %c0_27 = arith.constant 0 : index
    %c0_28 = arith.constant 0 : index
    %56 = vector.load %arg5[%c0_26, %c0_27, %c0_28] : memref<8x64x16xbf16, #tpu.memory_space<vmem>>, vector<1x64x16xbf16>
    %57 = vector.shape_cast %56 : vector<1x64x16xbf16> to vector<64x16xbf16>
    %cst_29 = arith.constant dense<0.000000e+00> : vector<8x16xf32>
    %58 = tpu.matmul %47, %57, %cst_29 {dimension_numbers = #tpu.dot_dimension_numbers<[1], [0], [0], [1], [0, 0, 1, 1], [], []>} : vector<8x64xbf16>, vector<64x16xbf16>, vector<8x16xf32> -> vector<8x16xf32>
    %c0_30 = arith.constant 0 : index
    %c0_31 = arith.constant 0 : index
    %c0_32 = arith.constant 0 : index
    %59 = vector.load %arg6[%c0_30, %c0_31, %c0_32] : memref<8x1x16xf32, #tpu.memory_space<vmem>>, vector<1x1x16xf32>
    %60 = vector.shape_cast %59 : vector<1x1x16xf32> to vector<1x16xf32>
    %61 = vector.broadcast %60 : vector<1x16xf32> to vector<8x16xf32>
    %62 = arith.addf %58, %61 : vector<8x16xf32>
    %c0_33 = arith.constant 0 : index
    %c0_34 = arith.constant 0 : index
    %c0_35 = arith.constant 0 : index
    %63 = vector.load %arg7[%c0_33, %c0_34, %c0_35] : memref<8x64x16xbf16, #tpu.memory_space<vmem>>, vector<1x64x16xbf16>
    %64 = vector.shape_cast %63 : vector<1x64x16xbf16> to vector<64x16xbf16>
    %cst_36 = arith.constant dense<0.000000e+00> : vector<8x16xf32>
    %65 = tpu.matmul %47, %64, %cst_36 {dimension_numbers = #tpu.dot_dimension_numbers<[1], [0], [0], [1], [0, 0, 1, 1], [], []>} : vector<8x64xbf16>, vector<64x16xbf16>, vector<8x16xf32> -> vector<8x16xf32>
    %c0_37 = arith.constant 0 : index
    %c0_38 = arith.constant 0 : index
    %c0_39 = arith.constant 0 : index
    %66 = vector.load %arg8[%c0_37, %c0_38, %c0_39] : memref<8x1x16xf32, #tpu.memory_space<vmem>>, vector<1x1x16xf32>
    %67 = vector.shape_cast %66 : vector<1x1x16xf32> to vector<1x16xf32>
    %68 = vector.broadcast %67 : vector<1x16xf32> to vector<8x16xf32>
    %69 = arith.addf %65, %68 : vector<8x16xf32>
    %70 = arith.truncf %55 : vector<8x16xf32> to vector<8x16xbf16>
    %71 = arith.truncf %62 : vector<8x16xf32> to vector<8x16xbf16>
    %cst_40 = arith.constant dense<0.000000e+00> : vector<8x8xf32>
    %72 = tpu.matmul %70, %71, %cst_40 {dimension_numbers = #tpu.dot_dimension_numbers<[1], [1], [0], [0], [0, 0, 1, 0], [], []>} : vector<8x16xbf16>, vector<8x16xbf16>, vector<8x8xf32> -> vector<8x8xf32>
    %73 = arith.addf %72, %20 : vector<8x8xf32>
    %cst_41 = arith.constant dense<0xFF800000> : vector<8xf32>
    %74 = vector.multi_reduction <maximumf>, %73, %cst_41 [1] : vector<8x8xf32> to vector<8xf32>
    %75 = vector.shape_cast %74 : vector<8xf32> to vector<8x1xf32>
    %76 = vector.broadcast %75 : vector<8x1xf32> to vector<8x8xf32>
    %77 = arith.subf %73, %76 : vector<8x8xf32>
    %78 = math.exp %77 : vector<8x8xf32>
    %cst_42 = arith.constant dense<0.000000e+00> : vector<8xf32>
    %79 = vector.multi_reduction <add>, %78, %cst_42 [1] : vector<8x8xf32> to vector<8xf32>
    %80 = vector.shape_cast %79 : vector<8xf32> to vector<8x1xf32>
    %81 = vector.broadcast %80 : vector<8x1xf32> to vector<8x8xf32>
    %82 = arith.divf %78, %81 : vector<8x8xf32>
    %83 = arith.truncf %82 : vector<8x8xf32> to vector<8x8xbf16>
    %84 = arith.truncf %69 : vector<8x16xf32> to vector<8x16xbf16>
    %cst_43 = arith.constant dense<0.000000e+00> : vector<8x16xf32>
    %85 = tpu.matmul %83, %84, %cst_43 {dimension_numbers = #tpu.dot_dimension_numbers<[1], [0], [0], [1], [0, 0, 1, 1], [], []>} : vector<8x8xbf16>, vector<8x16xbf16>, vector<8x16xf32> -> vector<8x16xf32>
    %86 = arith.truncf %85 : vector<8x16xf32> to vector<8x16xbf16>
    %c0_44 = arith.constant 0 : index
    %c0_45 = arith.constant 0 : index
    %c0_46 = arith.constant 0 : index
    %87 = vector.load %arg9[%c0_44, %c0_45, %c0_46] : memref<8x16x64xbf16, #tpu.memory_space<vmem>>, vector<1x16x64xbf16>
    %88 = vector.shape_cast %87 : vector<1x16x64xbf16> to vector<16x64xbf16>
    %cst_47 = arith.constant dense<0.000000e+00> : vector<8x64xf32>
    %89 = tpu.matmul %86, %88, %cst_47 {dimension_numbers = #tpu.dot_dimension_numbers<[1], [0], [0], [1], [0, 0, 1, 1], [], []>} : vector<8x16xbf16>, vector<16x64xbf16>, vector<8x64xf32> -> vector<8x64xf32>
    %90 = arith.addf %48, %89 : vector<8x64xf32>
    %c1 = arith.constant 1 : index
    %c0_48 = arith.constant 0 : index
    %c0_49 = arith.constant 0 : index
    %91 = vector.load %arg3[%c1, %c0_48, %c0_49] : memref<8x64x16xbf16, #tpu.memory_space<vmem>>, vector<1x64x16xbf16>
    %92 = vector.shape_cast %91 : vector<1x64x16xbf16> to vector<64x16xbf16>
    %cst_50 = arith.constant dense<0.000000e+00> : vector<8x16xf32>
    %93 = tpu.matmul %47, %92, %cst_50 {dimension_numbers = #tpu.dot_dimension_numbers<[1], [0], [0], [1], [0, 0, 1, 1], [], []>} : vector<8x64xbf16>, vector<64x16xbf16>, vector<8x16xf32> -> vector<8x16xf32>
    %c1_51 = arith.constant 1 : index
    %c0_52 = arith.constant 0 : index
    %c0_53 = arith.constant 0 : index
    %94 = vector.load %arg4[%c1_51, %c0_52, %c0_53] : memref<8x1x16xf32, #tpu.memory_space<vmem>>, vector<1x1x16xf32>
    %95 = vector.shape_cast %94 : vector<1x1x16xf32> to vector<1x16xf32>
    %96 = vector.broadcast %95 : vector<1x16xf32> to vector<8x16xf32>
    %97 = arith.addf %93, %96 : vector<8x16xf32>
    %c1_54 = arith.constant 1 : index
    %c0_55 = arith.constant 0 : index
    %c0_56 = arith.constant 0 : index
    %98 = vector.load %arg5[%c1_54, %c0_55, %c0_56] : memref<8x64x16xbf16, #tpu.memory_space<vmem>>, vector<1x64x16xbf16>
    %99 = vector.shape_cast %98 : vector<1x64x16xbf16> to vector<64x16xbf16>
    %cst_57 = arith.constant dense<0.000000e+00> : vector<8x16xf32>
    %100 = tpu.matmul %47, %99, %cst_57 {dimension_numbers = #tpu.dot_dimension_numbers<[1], [0], [0], [1], [0, 0, 1, 1], [], []>} : vector<8x64xbf16>, vector<64x16xbf16>, vector<8x16xf32> -> vector<8x16xf32>
    %c1_58 = arith.constant 1 : index
    %c0_59 = arith.constant 0 : index
    %c0_60 = arith.constant 0 : index
    %101 = vector.load %arg6[%c1_58, %c0_59, %c0_60] : memref<8x1x16xf32, #tpu.memory_space<vmem>>, vector<1x1x16xf32>
    %102 = vector.shape_cast %101 : vector<1x1x16xf32> to vector<1x16xf32>
    %103 = vector.broadcast %102 : vector<1x16xf32> to vector<8x16xf32>
    %104 = arith.addf %100, %103 : vector<8x16xf32>
    %c1_61 = arith.constant 1 : index
    %c0_62 = arith.constant 0 : index
    %c0_63 = arith.constant 0 : index
    %105 = vector.load %arg7[%c1_61, %c0_62, %c0_63] : memref<8x64x16xbf16, #tpu.memory_space<vmem>>, vector<1x64x16xbf16>
    %106 = vector.shape_cast %105 : vector<1x64x16xbf16> to vector<64x16xbf16>
    %cst_64 = arith.constant dense<0.000000e+00> : vector<8x16xf32>
    %107 = tpu.matmul %47, %106, %cst_64 {dimension_numbers = #tpu.dot_dimension_numbers<[1], [0], [0], [1], [0, 0, 1, 1], [], []>} : vector<8x64xbf16>, vector<64x16xbf16>, vector<8x16xf32> -> vector<8x16xf32>
    %c1_65 = arith.constant 1 : index
    %c0_66 = arith.constant 0 : index
    %c0_67 = arith.constant 0 : index
    %108 = vector.load %arg8[%c1_65, %c0_66, %c0_67] : memref<8x1x16xf32, #tpu.memory_space<vmem>>, vector<1x1x16xf32>
    %109 = vector.shape_cast %108 : vector<1x1x16xf32> to vector<1x16xf32>
    %110 = vector.broadcast %109 : vector<1x16xf32> to vector<8x16xf32>
    %111 = arith.addf %107, %110 : vector<8x16xf32>
    %112 = arith.truncf %97 : vector<8x16xf32> to vector<8x16xbf16>
    %113 = arith.truncf %104 : vector<8x16xf32> to vector<8x16xbf16>
    %cst_68 = arith.constant dense<0.000000e+00> : vector<8x8xf32>
    %114 = tpu.matmul %112, %113, %cst_68 {dimension_numbers = #tpu.dot_dimension_numbers<[1], [1], [0], [0], [0, 0, 1, 0], [], []>} : vector<8x16xbf16>, vector<8x16xbf16>, vector<8x8xf32> -> vector<8x8xf32>
    %115 = arith.addf %114, %20 : vector<8x8xf32>
    %cst_69 = arith.constant dense<0xFF800000> : vector<8xf32>
    %116 = vector.multi_reduction <maximumf>, %115, %cst_69 [1] : vector<8x8xf32> to vector<8xf32>
    %117 = vector.shape_cast %116 : vector<8xf32> to vector<8x1xf32>
    %118 = vector.broadcast %117 : vector<8x1xf32> to vector<8x8xf32>
    %119 = arith.subf %115, %118 : vector<8x8xf32>
    %120 = math.exp %119 : vector<8x8xf32>
    %cst_70 = arith.constant dense<0.000000e+00> : vector<8xf32>
    %121 = vector.multi_reduction <add>, %120, %cst_70 [1] : vector<8x8xf32> to vector<8xf32>
    %122 = vector.shape_cast %121 : vector<8xf32> to vector<8x1xf32>
    %123 = vector.broadcast %122 : vector<8x1xf32> to vector<8x8xf32>
    %124 = arith.divf %120, %123 : vector<8x8xf32>
    %125 = arith.truncf %124 : vector<8x8xf32> to vector<8x8xbf16>
    %126 = arith.truncf %111 : vector<8x16xf32> to vector<8x16xbf16>
    %cst_71 = arith.constant dense<0.000000e+00> : vector<8x16xf32>
    %127 = tpu.matmul %125, %126, %cst_71 {dimension_numbers = #tpu.dot_dimension_numbers<[1], [0], [0], [1], [0, 0, 1, 1], [], []>} : vector<8x8xbf16>, vector<8x16xbf16>, vector<8x16xf32> -> vector<8x16xf32>
    %128 = arith.truncf %127 : vector<8x16xf32> to vector<8x16xbf16>
    %c1_72 = arith.constant 1 : index
    %c0_73 = arith.constant 0 : index
    %c0_74 = arith.constant 0 : index
    %129 = vector.load %arg9[%c1_72, %c0_73, %c0_74] : memref<8x16x64xbf16, #tpu.memory_space<vmem>>, vector<1x16x64xbf16>
    %130 = vector.shape_cast %129 : vector<1x16x64xbf16> to vector<16x64xbf16>
    %cst_75 = arith.constant dense<0.000000e+00> : vector<8x64xf32>
    %131 = tpu.matmul %128, %130, %cst_75 {dimension_numbers = #tpu.dot_dimension_numbers<[1], [0], [0], [1], [0, 0, 1, 1], [], []>} : vector<8x16xbf16>, vector<16x64xbf16>, vector<8x64xf32> -> vector<8x64xf32>
    %132 = arith.addf %90, %131 : vector<8x64xf32>
    %c2 = arith.constant 2 : index
    %c0_76 = arith.constant 0 : index
    %c0_77 = arith.constant 0 : index
    %133 = vector.load %arg3[%c2, %c0_76, %c0_77] : memref<8x64x16xbf16, #tpu.memory_space<vmem>>, vector<1x64x16xbf16>
    %134 = vector.shape_cast %133 : vector<1x64x16xbf16> to vector<64x16xbf16>
    %cst_78 = arith.constant dense<0.000000e+00> : vector<8x16xf32>
    %135 = tpu.matmul %47, %134, %cst_78 {dimension_numbers = #tpu.dot_dimension_numbers<[1], [0], [0], [1], [0, 0, 1, 1], [], []>} : vector<8x64xbf16>, vector<64x16xbf16>, vector<8x16xf32> -> vector<8x16xf32>
    %c2_79 = arith.constant 2 : index
    %c0_80 = arith.constant 0 : index
    %c0_81 = arith.constant 0 : index
    %136 = vector.load %arg4[%c2_79, %c0_80, %c0_81] : memref<8x1x16xf32, #tpu.memory_space<vmem>>, vector<1x1x16xf32>
    %137 = vector.shape_cast %136 : vector<1x1x16xf32> to vector<1x16xf32>
    %138 = vector.broadcast %137 : vector<1x16xf32> to vector<8x16xf32>
    %139 = arith.addf %135, %138 : vector<8x16xf32>
    %c2_82 = arith.constant 2 : index
    %c0_83 = arith.constant 0 : index
    %c0_84 = arith.constant 0 : index
    %140 = vector.load %arg5[%c2_82, %c0_83, %c0_84] : memref<8x64x16xbf16, #tpu.memory_space<vmem>>, vector<1x64x16xbf16>
    %141 = vector.shape_cast %140 : vector<1x64x16xbf16> to vector<64x16xbf16>
    %cst_85 = arith.constant dense<0.000000e+00> : vector<8x16xf32>
    %142 = tpu.matmul %47, %141, %cst_85 {dimension_numbers = #tpu.dot_dimension_numbers<[1], [0], [0], [1], [0, 0, 1, 1], [], []>} : vector<8x64xbf16>, vector<64x16xbf16>, vector<8x16xf32> -> vector<8x16xf32>
    %c2_86 = arith.constant 2 : index
    %c0_87 = arith.constant 0 : index
    %c0_88 = arith.constant 0 : index
    %143 = vector.load %arg6[%c2_86, %c0_87, %c0_88] : memref<8x1x16xf32, #tpu.memory_space<vmem>>, vector<1x1x16xf32>
    %144 = vector.shape_cast %143 : vector<1x1x16xf32> to vector<1x16xf32>
    %145 = vector.broadcast %144 : vector<1x16xf32> to vector<8x16xf32>
    %146 = arith.addf %142, %145 : vector<8x16xf32>
    %c2_89 = arith.constant 2 : index
    %c0_90 = arith.constant 0 : index
    %c0_91 = arith.constant 0 : index
    %147 = vector.load %arg7[%c2_89, %c0_90, %c0_91] : memref<8x64x16xbf16, #tpu.memory_space<vmem>>, vector<1x64x16xbf16>
    %148 = vector.shape_cast %147 : vector<1x64x16xbf16> to vector<64x16xbf16>
    %cst_92 = arith.constant dense<0.000000e+00> : vector<8x16xf32>
    %149 = tpu.matmul %47, %148, %cst_92 {dimension_numbers = #tpu.dot_dimension_numbers<[1], [0], [0], [1], [0, 0, 1, 1], [], []>} : vector<8x64xbf16>, vector<64x16xbf16>, vector<8x16xf32> -> vector<8x16xf32>
    %c2_93 = arith.constant 2 : index
    %c0_94 = arith.constant 0 : index
    %c0_95 = arith.constant 0 : index
    %150 = vector.load %arg8[%c2_93, %c0_94, %c0_95] : memref<8x1x16xf32, #tpu.memory_space<vmem>>, vector<1x1x16xf32>
    %151 = vector.shape_cast %150 : vector<1x1x16xf32> to vector<1x16xf32>
    %152 = vector.broadcast %151 : vector<1x16xf32> to vector<8x16xf32>
    %153 = arith.addf %149, %152 : vector<8x16xf32>
    %154 = arith.truncf %139 : vector<8x16xf32> to vector<8x16xbf16>
    %155 = arith.truncf %146 : vector<8x16xf32> to vector<8x16xbf16>
    %cst_96 = arith.constant dense<0.000000e+00> : vector<8x8xf32>
    %156 = tpu.matmul %154, %155, %cst_96 {dimension_numbers = #tpu.dot_dimension_numbers<[1], [1], [0], [0], [0, 0, 1, 0], [], []>} : vector<8x16xbf16>, vector<8x16xbf16>, vector<8x8xf32> -> vector<8x8xf32>
    %157 = arith.addf %156, %20 : vector<8x8xf32>
    %cst_97 = arith.constant dense<0xFF800000> : vector<8xf32>
    %158 = vector.multi_reduction <maximumf>, %157, %cst_97 [1] : vector<8x8xf32> to vector<8xf32>
    %159 = vector.shape_cast %158 : vector<8xf32> to vector<8x1xf32>
    %160 = vector.broadcast %159 : vector<8x1xf32> to vector<8x8xf32>
    %161 = arith.subf %157, %160 : vector<8x8xf32>
    %162 = math.exp %161 : vector<8x8xf32>
    %cst_98 = arith.constant dense<0.000000e+00> : vector<8xf32>
    %163 = vector.multi_reduction <add>, %162, %cst_98 [1] : vector<8x8xf32> to vector<8xf32>
    %164 = vector.shape_cast %163 : vector<8xf32> to vector<8x1xf32>
    %165 = vector.broadcast %164 : vector<8x1xf32> to vector<8x8xf32>
    %166 = arith.divf %162, %165 : vector<8x8xf32>
    %167 = arith.truncf %166 : vector<8x8xf32> to vector<8x8xbf16>
    %168 = arith.truncf %153 : vector<8x16xf32> to vector<8x16xbf16>
    %cst_99 = arith.constant dense<0.000000e+00> : vector<8x16xf32>
    %169 = tpu.matmul %167, %168, %cst_99 {dimension_numbers = #tpu.dot_dimension_numbers<[1], [0], [0], [1], [0, 0, 1, 1], [], []>} : vector<8x8xbf16>, vector<8x16xbf16>, vector<8x16xf32> -> vector<8x16xf32>
    %170 = arith.truncf %169 : vector<8x16xf32> to vector<8x16xbf16>
    %c2_100 = arith.constant 2 : index
    %c0_101 = arith.constant 0 : index
    %c0_102 = arith.constant 0 : index
    %171 = vector.load %arg9[%c2_100, %c0_101, %c0_102] : memref<8x16x64xbf16, #tpu.memory_space<vmem>>, vector<1x16x64xbf16>
    %172 = vector.shape_cast %171 : vector<1x16x64xbf16> to vector<16x64xbf16>
    %cst_103 = arith.constant dense<0.000000e+00> : vector<8x64xf32>
    %173 = tpu.matmul %170, %172, %cst_103 {dimension_numbers = #tpu.dot_dimension_numbers<[1], [0], [0], [1], [0, 0, 1, 1], [], []>} : vector<8x16xbf16>, vector<16x64xbf16>, vector<8x64xf32> -> vector<8x64xf32>
    %174 = arith.addf %132, %173 : vector<8x64xf32>
    %c3 = arith.constant 3 : index
    %c0_104 = arith.constant 0 : index
    %c0_105 = arith.constant 0 : index
    %175 = vector.load %arg3[%c3, %c0_104, %c0_105] : memref<8x64x16xbf16, #tpu.memory_space<vmem>>, vector<1x64x16xbf16>
    %176 = vector.shape_cast %175 : vector<1x64x16xbf16> to vector<64x16xbf16>
    %cst_106 = arith.constant dense<0.000000e+00> : vector<8x16xf32>
    %177 = tpu.matmul %47, %176, %cst_106 {dimension_numbers = #tpu.dot_dimension_numbers<[1], [0], [0], [1], [0, 0, 1, 1], [], []>} : vector<8x64xbf16>, vector<64x16xbf16>, vector<8x16xf32> -> vector<8x16xf32>
    %c3_107 = arith.constant 3 : index
    %c0_108 = arith.constant 0 : index
    %c0_109 = arith.constant 0 : index
    %178 = vector.load %arg4[%c3_107, %c0_108, %c0_109] : memref<8x1x16xf32, #tpu.memory_space<vmem>>, vector<1x1x16xf32>
    %179 = vector.shape_cast %178 : vector<1x1x16xf32> to vector<1x16xf32>
    %180 = vector.broadcast %179 : vector<1x16xf32> to vector<8x16xf32>
    %181 = arith.addf %177, %180 : vector<8x16xf32>
    %c3_110 = arith.constant 3 : index
    %c0_111 = arith.constant 0 : index
    %c0_112 = arith.constant 0 : index
    %182 = vector.load %arg5[%c3_110, %c0_111, %c0_112] : memref<8x64x16xbf16, #tpu.memory_space<vmem>>, vector<1x64x16xbf16>
    %183 = vector.shape_cast %182 : vector<1x64x16xbf16> to vector<64x16xbf16>
    %cst_113 = arith.constant dense<0.000000e+00> : vector<8x16xf32>
    %184 = tpu.matmul %47, %183, %cst_113 {dimension_numbers = #tpu.dot_dimension_numbers<[1], [0], [0], [1], [0, 0, 1, 1], [], []>} : vector<8x64xbf16>, vector<64x16xbf16>, vector<8x16xf32> -> vector<8x16xf32>
    %c3_114 = arith.constant 3 : index
    %c0_115 = arith.constant 0 : index
    %c0_116 = arith.constant 0 : index
    %185 = vector.load %arg6[%c3_114, %c0_115, %c0_116] : memref<8x1x16xf32, #tpu.memory_space<vmem>>, vector<1x1x16xf32>
    %186 = vector.shape_cast %185 : vector<1x1x16xf32> to vector<1x16xf32>
    %187 = vector.broadcast %186 : vector<1x16xf32> to vector<8x16xf32>
    %188 = arith.addf %184, %187 : vector<8x16xf32>
    %c3_117 = arith.constant 3 : index
    %c0_118 = arith.constant 0 : index
    %c0_119 = arith.constant 0 : index
    %189 = vector.load %arg7[%c3_117, %c0_118, %c0_119] : memref<8x64x16xbf16, #tpu.memory_space<vmem>>, vector<1x64x16xbf16>
    %190 = vector.shape_cast %189 : vector<1x64x16xbf16> to vector<64x16xbf16>
    %cst_120 = arith.constant dense<0.000000e+00> : vector<8x16xf32>
    %191 = tpu.matmul %47, %190, %cst_120 {dimension_numbers = #tpu.dot_dimension_numbers<[1], [0], [0], [1], [0, 0, 1, 1], [], []>} : vector<8x64xbf16>, vector<64x16xbf16>, vector<8x16xf32> -> vector<8x16xf32>
    %c3_121 = arith.constant 3 : index
    %c0_122 = arith.constant 0 : index
    %c0_123 = arith.constant 0 : index
    %192 = vector.load %arg8[%c3_121, %c0_122, %c0_123] : memref<8x1x16xf32, #tpu.memory_space<vmem>>, vector<1x1x16xf32>
    %193 = vector.shape_cast %192 : vector<1x1x16xf32> to vector<1x16xf32>
    %194 = vector.broadcast %193 : vector<1x16xf32> to vector<8x16xf32>
    %195 = arith.addf %191, %194 : vector<8x16xf32>
    %196 = arith.truncf %181 : vector<8x16xf32> to vector<8x16xbf16>
    %197 = arith.truncf %188 : vector<8x16xf32> to vector<8x16xbf16>
    %cst_124 = arith.constant dense<0.000000e+00> : vector<8x8xf32>
    %198 = tpu.matmul %196, %197, %cst_124 {dimension_numbers = #tpu.dot_dimension_numbers<[1], [1], [0], [0], [0, 0, 1, 0], [], []>} : vector<8x16xbf16>, vector<8x16xbf16>, vector<8x8xf32> -> vector<8x8xf32>
    %199 = arith.addf %198, %20 : vector<8x8xf32>
    %cst_125 = arith.constant dense<0xFF800000> : vector<8xf32>
    %200 = vector.multi_reduction <maximumf>, %199, %cst_125 [1] : vector<8x8xf32> to vector<8xf32>
    %201 = vector.shape_cast %200 : vector<8xf32> to vector<8x1xf32>
    %202 = vector.broadcast %201 : vector<8x1xf32> to vector<8x8xf32>
    %203 = arith.subf %199, %202 : vector<8x8xf32>
    %204 = math.exp %203 : vector<8x8xf32>
    %cst_126 = arith.constant dense<0.000000e+00> : vector<8xf32>
    %205 = vector.multi_reduction <add>, %204, %cst_126 [1] : vector<8x8xf32> to vector<8xf32>
    %206 = vector.shape_cast %205 : vector<8xf32> to vector<8x1xf32>
    %207 = vector.broadcast %206 : vector<8x1xf32> to vector<8x8xf32>
    %208 = arith.divf %204, %207 : vector<8x8xf32>
    %209 = arith.truncf %208 : vector<8x8xf32> to vector<8x8xbf16>
    %210 = arith.truncf %195 : vector<8x16xf32> to vector<8x16xbf16>
    %cst_127 = arith.constant dense<0.000000e+00> : vector<8x16xf32>
    %211 = tpu.matmul %209, %210, %cst_127 {dimension_numbers = #tpu.dot_dimension_numbers<[1], [0], [0], [1], [0, 0, 1, 1], [], []>} : vector<8x8xbf16>, vector<8x16xbf16>, vector<8x16xf32> -> vector<8x16xf32>
    %212 = arith.truncf %211 : vector<8x16xf32> to vector<8x16xbf16>
    %c3_128 = arith.constant 3 : index
    %c0_129 = arith.constant 0 : index
    %c0_130 = arith.constant 0 : index
    %213 = vector.load %arg9[%c3_128, %c0_129, %c0_130] : memref<8x16x64xbf16, #tpu.memory_space<vmem>>, vector<1x16x64xbf16>
    %214 = vector.shape_cast %213 : vector<1x16x64xbf16> to vector<16x64xbf16>
    %cst_131 = arith.constant dense<0.000000e+00> : vector<8x64xf32>
    %215 = tpu.matmul %212, %214, %cst_131 {dimension_numbers = #tpu.dot_dimension_numbers<[1], [0], [0], [1], [0, 0, 1, 1], [], []>} : vector<8x16xbf16>, vector<16x64xbf16>, vector<8x64xf32> -> vector<8x64xf32>
    %216 = arith.addf %174, %215 : vector<8x64xf32>
    %c0_132 = arith.constant 0 : index
    %c0_133 = arith.constant 0 : index
    %c0_134 = arith.constant 0 : index
    %217 = vector.load %arg10[%c0_132, %c0_133, %c0_134] : memref<2x1x64xf32, #tpu.memory_space<vmem>>, vector<1x1x64xf32>
    %218 = vector.shape_cast %217 : vector<1x1x64xf32> to vector<1x64xf32>
    %219 = vector.broadcast %218 : vector<1x64xf32> to vector<8x64xf32>
    %220 = arith.addf %216, %219 : vector<8x64xf32>
    %221 = arith.addf %14, %220 : vector<8x64xf32>
    %c0_135 = arith.constant 0 : index
    %c0_136 = arith.constant 0 : index
    %c0_137 = arith.constant 0 : index
    %222 = vector.load %arg17[%c0_135, %c0_136, %c0_137] : memref<2x1x64xf32, #tpu.memory_space<vmem>>, vector<1x1x64xf32>
    %223 = vector.shape_cast %222 : vector<1x1x64xf32> to vector<1x64xf32>
    %c0_138 = arith.constant 0 : index
    %c0_139 = arith.constant 0 : index
    %c0_140 = arith.constant 0 : index
    %224 = vector.load %arg18[%c0_138, %c0_139, %c0_140] : memref<2x1x64xf32, #tpu.memory_space<vmem>>, vector<1x1x64xf32>
    %225 = vector.shape_cast %224 : vector<1x1x64xf32> to vector<1x64xf32>
    %cst_141 = arith.constant dense<0.000000e+00> : vector<8xf32>
    %226 = vector.multi_reduction <add>, %221, %cst_141 [1] : vector<8x64xf32> to vector<8xf32>
    %227 = vector.shape_cast %226 : vector<8xf32> to vector<8x1xf32>
    %cst_142 = arith.constant 6.400000e+01 : f32
    %228 = vector.broadcast %cst_142 : f32 to vector<8x1xf32>
    %229 = arith.divf %227, %228 : vector<8x1xf32>
    %230 = vector.broadcast %229 : vector<8x1xf32> to vector<8x64xf32>
    %231 = arith.subf %221, %230 : vector<8x64xf32>
    %232 = arith.mulf %231, %231 : vector<8x64xf32>
    %cst_143 = arith.constant dense<0.000000e+00> : vector<8xf32>
    %233 = vector.multi_reduction <add>, %232, %cst_143 [1] : vector<8x64xf32> to vector<8xf32>
    %234 = vector.shape_cast %233 : vector<8xf32> to vector<8x1xf32>
    %cst_144 = arith.constant 6.400000e+01 : f32
    %235 = vector.broadcast %cst_144 : f32 to vector<8x1xf32>
    %236 = arith.divf %234, %235 : vector<8x1xf32>
    %237 = vector.broadcast %229 : vector<8x1xf32> to vector<8x64xf32>
    %238 = arith.subf %221, %237 : vector<8x64xf32>
    %cst_145 = arith.constant 9.99999974E-6 : f32
    %239 = vector.broadcast %cst_145 : f32 to vector<8x1xf32>
    %240 = arith.addf %236, %239 : vector<8x1xf32>
    %241 = math.rsqrt %240 : vector<8x1xf32>
    %242 = vector.broadcast %241 : vector<8x1xf32> to vector<8x64xf32>
    %243 = arith.mulf %238, %242 : vector<8x64xf32>
    %244 = vector.broadcast %223 : vector<1x64xf32> to vector<8x64xf32>
    %245 = arith.mulf %243, %244 : vector<8x64xf32>
    %246 = vector.broadcast %225 : vector<1x64xf32> to vector<8x64xf32>
    %247 = arith.addf %245, %246 : vector<8x64xf32>
    %248 = arith.truncf %247 : vector<8x64xf32> to vector<8x64xbf16>
    %c0_146 = arith.constant 0 : index
    %c0_147 = arith.constant 0 : index
    %c0_148 = arith.constant 0 : index
    %249 = vector.load %arg11[%c0_146, %c0_147, %c0_148] : memref<2x64x128xbf16, #tpu.memory_space<vmem>>, vector<1x64x128xbf16>
    %250 = vector.shape_cast %249 : vector<1x64x128xbf16> to vector<64x128xbf16>
    %cst_149 = arith.constant dense<0.000000e+00> : vector<8x128xf32>
    %251 = tpu.matmul %248, %250, %cst_149 {dimension_numbers = #tpu.dot_dimension_numbers<[1], [0], [0], [1], [0, 0, 1, 1], [], []>} : vector<8x64xbf16>, vector<64x128xbf16>, vector<8x128xf32> -> vector<8x128xf32>
    %c0_150 = arith.constant 0 : index
    %c0_151 = arith.constant 0 : index
    %c0_152 = arith.constant 0 : index
    %252 = vector.load %arg12[%c0_150, %c0_151, %c0_152] : memref<2x1x128xf32, #tpu.memory_space<vmem>>, vector<1x1x128xf32>
    %253 = vector.shape_cast %252 : vector<1x1x128xf32> to vector<1x128xf32>
    %254 = vector.broadcast %253 : vector<1x128xf32> to vector<8x128xf32>
    %255 = arith.addf %251, %254 : vector<8x128xf32>
    %cst_153 = arith.constant 0.000000e+00 : f32
    %256 = vector.broadcast %cst_153 : f32 to vector<8x128xf32>
    %257 = arith.maximumf %255, %256 : vector<8x128xf32>
    %258 = arith.truncf %257 : vector<8x128xf32> to vector<8x128xbf16>
    %c0_154 = arith.constant 0 : index
    %c0_155 = arith.constant 0 : index
    %c0_156 = arith.constant 0 : index
    %259 = vector.load %arg13[%c0_154, %c0_155, %c0_156] : memref<2x128x64xbf16, #tpu.memory_space<vmem>>, vector<1x128x64xbf16>
    %260 = vector.shape_cast %259 : vector<1x128x64xbf16> to vector<128x64xbf16>
    %cst_157 = arith.constant dense<0.000000e+00> : vector<8x64xf32>
    %261 = tpu.matmul %258, %260, %cst_157 {dimension_numbers = #tpu.dot_dimension_numbers<[1], [0], [0], [1], [0, 0, 1, 1], [], []>} : vector<8x128xbf16>, vector<128x64xbf16>, vector<8x64xf32> -> vector<8x64xf32>
    %c0_158 = arith.constant 0 : index
    %c0_159 = arith.constant 0 : index
    %c0_160 = arith.constant 0 : index
    %262 = vector.load %arg14[%c0_158, %c0_159, %c0_160] : memref<2x1x64xf32, #tpu.memory_space<vmem>>, vector<1x1x64xf32>
    %263 = vector.shape_cast %262 : vector<1x1x64xf32> to vector<1x64xf32>
    %264 = vector.broadcast %263 : vector<1x64xf32> to vector<8x64xf32>
    %265 = arith.addf %261, %264 : vector<8x64xf32>
    %266 = arith.addf %221, %265 : vector<8x64xf32>
    %c1_161 = arith.constant 1 : index
    %c0_162 = arith.constant 0 : index
    %c0_163 = arith.constant 0 : index
    %267 = vector.load %arg15[%c1_161, %c0_162, %c0_163] : memref<2x1x64xf32, #tpu.memory_space<vmem>>, vector<1x1x64xf32>
    %268 = vector.shape_cast %267 : vector<1x1x64xf32> to vector<1x64xf32>
    %c1_164 = arith.constant 1 : index
    %c0_165 = arith.constant 0 : index
    %c0_166 = arith.constant 0 : index
    %269 = vector.load %arg16[%c1_164, %c0_165, %c0_166] : memref<2x1x64xf32, #tpu.memory_space<vmem>>, vector<1x1x64xf32>
    %270 = vector.shape_cast %269 : vector<1x1x64xf32> to vector<1x64xf32>
    %cst_167 = arith.constant dense<0.000000e+00> : vector<8xf32>
    %271 = vector.multi_reduction <add>, %266, %cst_167 [1] : vector<8x64xf32> to vector<8xf32>
    %272 = vector.shape_cast %271 : vector<8xf32> to vector<8x1xf32>
    %cst_168 = arith.constant 6.400000e+01 : f32
    %273 = vector.broadcast %cst_168 : f32 to vector<8x1xf32>
    %274 = arith.divf %272, %273 : vector<8x1xf32>
    %275 = vector.broadcast %274 : vector<8x1xf32> to vector<8x64xf32>
    %276 = arith.subf %266, %275 : vector<8x64xf32>
    %277 = arith.mulf %276, %276 : vector<8x64xf32>
    %cst_169 = arith.constant dense<0.000000e+00> : vector<8xf32>
    %278 = vector.multi_reduction <add>, %277, %cst_169 [1] : vector<8x64xf32> to vector<8xf32>
    %279 = vector.shape_cast %278 : vector<8xf32> to vector<8x1xf32>
    %cst_170 = arith.constant 6.400000e+01 : f32
    %280 = vector.broadcast %cst_170 : f32 to vector<8x1xf32>
    %281 = arith.divf %279, %280 : vector<8x1xf32>
    %282 = vector.broadcast %274 : vector<8x1xf32> to vector<8x64xf32>
    %283 = arith.subf %266, %282 : vector<8x64xf32>
    %cst_171 = arith.constant 9.99999974E-6 : f32
    %284 = vector.broadcast %cst_171 : f32 to vector<8x1xf32>
    %285 = arith.addf %281, %284 : vector<8x1xf32>
    %286 = math.rsqrt %285 : vector<8x1xf32>
    %287 = vector.broadcast %286 : vector<8x1xf32> to vector<8x64xf32>
    %288 = arith.mulf %283, %287 : vector<8x64xf32>
    %289 = vector.broadcast %268 : vector<1x64xf32> to vector<8x64xf32>
    %290 = arith.mulf %288, %289 : vector<8x64xf32>
    %291 = vector.broadcast %270 : vector<1x64xf32> to vector<8x64xf32>
    %292 = arith.addf %290, %291 : vector<8x64xf32>
    %293 = arith.truncf %292 : vector<8x64xf32> to vector<8x64xbf16>
    %cst_172 = arith.constant 0.000000e+00 : f32
    %294 = vector.broadcast %cst_172 : f32 to vector<8x64xf32>
    %c4 = arith.constant 4 : index
    %c0_173 = arith.constant 0 : index
    %c0_174 = arith.constant 0 : index
    %295 = vector.load %arg3[%c4, %c0_173, %c0_174] : memref<8x64x16xbf16, #tpu.memory_space<vmem>>, vector<1x64x16xbf16>
    %296 = vector.shape_cast %295 : vector<1x64x16xbf16> to vector<64x16xbf16>
    %cst_175 = arith.constant dense<0.000000e+00> : vector<8x16xf32>
    %297 = tpu.matmul %293, %296, %cst_175 {dimension_numbers = #tpu.dot_dimension_numbers<[1], [0], [0], [1], [0, 0, 1, 1], [], []>} : vector<8x64xbf16>, vector<64x16xbf16>, vector<8x16xf32> -> vector<8x16xf32>
    %c4_176 = arith.constant 4 : index
    %c0_177 = arith.constant 0 : index
    %c0_178 = arith.constant 0 : index
    %298 = vector.load %arg4[%c4_176, %c0_177, %c0_178] : memref<8x1x16xf32, #tpu.memory_space<vmem>>, vector<1x1x16xf32>
    %299 = vector.shape_cast %298 : vector<1x1x16xf32> to vector<1x16xf32>
    %300 = vector.broadcast %299 : vector<1x16xf32> to vector<8x16xf32>
    %301 = arith.addf %297, %300 : vector<8x16xf32>
    %c4_179 = arith.constant 4 : index
    %c0_180 = arith.constant 0 : index
    %c0_181 = arith.constant 0 : index
    %302 = vector.load %arg5[%c4_179, %c0_180, %c0_181] : memref<8x64x16xbf16, #tpu.memory_space<vmem>>, vector<1x64x16xbf16>
    %303 = vector.shape_cast %302 : vector<1x64x16xbf16> to vector<64x16xbf16>
    %cst_182 = arith.constant dense<0.000000e+00> : vector<8x16xf32>
    %304 = tpu.matmul %293, %303, %cst_182 {dimension_numbers = #tpu.dot_dimension_numbers<[1], [0], [0], [1], [0, 0, 1, 1], [], []>} : vector<8x64xbf16>, vector<64x16xbf16>, vector<8x16xf32> -> vector<8x16xf32>
    %c4_183 = arith.constant 4 : index
    %c0_184 = arith.constant 0 : index
    %c0_185 = arith.constant 0 : index
    %305 = vector.load %arg6[%c4_183, %c0_184, %c0_185] : memref<8x1x16xf32, #tpu.memory_space<vmem>>, vector<1x1x16xf32>
    %306 = vector.shape_cast %305 : vector<1x1x16xf32> to vector<1x16xf32>
    %307 = vector.broadcast %306 : vector<1x16xf32> to vector<8x16xf32>
    %308 = arith.addf %304, %307 : vector<8x16xf32>
    %c4_186 = arith.constant 4 : index
    %c0_187 = arith.constant 0 : index
    %c0_188 = arith.constant 0 : index
    %309 = vector.load %arg7[%c4_186, %c0_187, %c0_188] : memref<8x64x16xbf16, #tpu.memory_space<vmem>>, vector<1x64x16xbf16>
    %310 = vector.shape_cast %309 : vector<1x64x16xbf16> to vector<64x16xbf16>
    %cst_189 = arith.constant dense<0.000000e+00> : vector<8x16xf32>
    %311 = tpu.matmul %293, %310, %cst_189 {dimension_numbers = #tpu.dot_dimension_numbers<[1], [0], [0], [1], [0, 0, 1, 1], [], []>} : vector<8x64xbf16>, vector<64x16xbf16>, vector<8x16xf32> -> vector<8x16xf32>
    %c4_190 = arith.constant 4 : index
    %c0_191 = arith.constant 0 : index
    %c0_192 = arith.constant 0 : index
    %312 = vector.load %arg8[%c4_190, %c0_191, %c0_192] : memref<8x1x16xf32, #tpu.memory_space<vmem>>, vector<1x1x16xf32>
    %313 = vector.shape_cast %312 : vector<1x1x16xf32> to vector<1x16xf32>
    %314 = vector.broadcast %313 : vector<1x16xf32> to vector<8x16xf32>
    %315 = arith.addf %311, %314 : vector<8x16xf32>
    %316 = arith.truncf %301 : vector<8x16xf32> to vector<8x16xbf16>
    %317 = arith.truncf %308 : vector<8x16xf32> to vector<8x16xbf16>
    %cst_193 = arith.constant dense<0.000000e+00> : vector<8x8xf32>
    %318 = tpu.matmul %316, %317, %cst_193 {dimension_numbers = #tpu.dot_dimension_numbers<[1], [1], [0], [0], [0, 0, 1, 0], [], []>} : vector<8x16xbf16>, vector<8x16xbf16>, vector<8x8xf32> -> vector<8x8xf32>
    %319 = arith.addf %318, %20 : vector<8x8xf32>
    %cst_194 = arith.constant dense<0xFF800000> : vector<8xf32>
    %320 = vector.multi_reduction <maximumf>, %319, %cst_194 [1] : vector<8x8xf32> to vector<8xf32>
    %321 = vector.shape_cast %320 : vector<8xf32> to vector<8x1xf32>
    %322 = vector.broadcast %321 : vector<8x1xf32> to vector<8x8xf32>
    %323 = arith.subf %319, %322 : vector<8x8xf32>
    %324 = math.exp %323 : vector<8x8xf32>
    %cst_195 = arith.constant dense<0.000000e+00> : vector<8xf32>
    %325 = vector.multi_reduction <add>, %324, %cst_195 [1] : vector<8x8xf32> to vector<8xf32>
    %326 = vector.shape_cast %325 : vector<8xf32> to vector<8x1xf32>
    %327 = vector.broadcast %326 : vector<8x1xf32> to vector<8x8xf32>
    %328 = arith.divf %324, %327 : vector<8x8xf32>
    %329 = arith.truncf %328 : vector<8x8xf32> to vector<8x8xbf16>
    %330 = arith.truncf %315 : vector<8x16xf32> to vector<8x16xbf16>
    %cst_196 = arith.constant dense<0.000000e+00> : vector<8x16xf32>
    %331 = tpu.matmul %329, %330, %cst_196 {dimension_numbers = #tpu.dot_dimension_numbers<[1], [0], [0], [1], [0, 0, 1, 1], [], []>} : vector<8x8xbf16>, vector<8x16xbf16>, vector<8x16xf32> -> vector<8x16xf32>
    %332 = arith.truncf %331 : vector<8x16xf32> to vector<8x16xbf16>
    %c4_197 = arith.constant 4 : index
    %c0_198 = arith.constant 0 : index
    %c0_199 = arith.constant 0 : index
    %333 = vector.load %arg9[%c4_197, %c0_198, %c0_199] : memref<8x16x64xbf16, #tpu.memory_space<vmem>>, vector<1x16x64xbf16>
    %334 = vector.shape_cast %333 : vector<1x16x64xbf16> to vector<16x64xbf16>
    %cst_200 = arith.constant dense<0.000000e+00> : vector<8x64xf32>
    %335 = tpu.matmul %332, %334, %cst_200 {dimension_numbers = #tpu.dot_dimension_numbers<[1], [0], [0], [1], [0, 0, 1, 1], [], []>} : vector<8x16xbf16>, vector<16x64xbf16>, vector<8x64xf32> -> vector<8x64xf32>
    %336 = arith.addf %294, %335 : vector<8x64xf32>
    %c5 = arith.constant 5 : index
    %c0_201 = arith.constant 0 : index
    %c0_202 = arith.constant 0 : index
    %337 = vector.load %arg3[%c5, %c0_201, %c0_202] : memref<8x64x16xbf16, #tpu.memory_space<vmem>>, vector<1x64x16xbf16>
    %338 = vector.shape_cast %337 : vector<1x64x16xbf16> to vector<64x16xbf16>
    %cst_203 = arith.constant dense<0.000000e+00> : vector<8x16xf32>
    %339 = tpu.matmul %293, %338, %cst_203 {dimension_numbers = #tpu.dot_dimension_numbers<[1], [0], [0], [1], [0, 0, 1, 1], [], []>} : vector<8x64xbf16>, vector<64x16xbf16>, vector<8x16xf32> -> vector<8x16xf32>
    %c5_204 = arith.constant 5 : index
    %c0_205 = arith.constant 0 : index
    %c0_206 = arith.constant 0 : index
    %340 = vector.load %arg4[%c5_204, %c0_205, %c0_206] : memref<8x1x16xf32, #tpu.memory_space<vmem>>, vector<1x1x16xf32>
    %341 = vector.shape_cast %340 : vector<1x1x16xf32> to vector<1x16xf32>
    %342 = vector.broadcast %341 : vector<1x16xf32> to vector<8x16xf32>
    %343 = arith.addf %339, %342 : vector<8x16xf32>
    %c5_207 = arith.constant 5 : index
    %c0_208 = arith.constant 0 : index
    %c0_209 = arith.constant 0 : index
    %344 = vector.load %arg5[%c5_207, %c0_208, %c0_209] : memref<8x64x16xbf16, #tpu.memory_space<vmem>>, vector<1x64x16xbf16>
    %345 = vector.shape_cast %344 : vector<1x64x16xbf16> to vector<64x16xbf16>
    %cst_210 = arith.constant dense<0.000000e+00> : vector<8x16xf32>
    %346 = tpu.matmul %293, %345, %cst_210 {dimension_numbers = #tpu.dot_dimension_numbers<[1], [0], [0], [1], [0, 0, 1, 1], [], []>} : vector<8x64xbf16>, vector<64x16xbf16>, vector<8x16xf32> -> vector<8x16xf32>
    %c5_211 = arith.constant 5 : index
    %c0_212 = arith.constant 0 : index
    %c0_213 = arith.constant 0 : index
    %347 = vector.load %arg6[%c5_211, %c0_212, %c0_213] : memref<8x1x16xf32, #tpu.memory_space<vmem>>, vector<1x1x16xf32>
    %348 = vector.shape_cast %347 : vector<1x1x16xf32> to vector<1x16xf32>
    %349 = vector.broadcast %348 : vector<1x16xf32> to vector<8x16xf32>
    %350 = arith.addf %346, %349 : vector<8x16xf32>
    %c5_214 = arith.constant 5 : index
    %c0_215 = arith.constant 0 : index
    %c0_216 = arith.constant 0 : index
    %351 = vector.load %arg7[%c5_214, %c0_215, %c0_216] : memref<8x64x16xbf16, #tpu.memory_space<vmem>>, vector<1x64x16xbf16>
    %352 = vector.shape_cast %351 : vector<1x64x16xbf16> to vector<64x16xbf16>
    %cst_217 = arith.constant dense<0.000000e+00> : vector<8x16xf32>
    %353 = tpu.matmul %293, %352, %cst_217 {dimension_numbers = #tpu.dot_dimension_numbers<[1], [0], [0], [1], [0, 0, 1, 1], [], []>} : vector<8x64xbf16>, vector<64x16xbf16>, vector<8x16xf32> -> vector<8x16xf32>
    %c5_218 = arith.constant 5 : index
    %c0_219 = arith.constant 0 : index
    %c0_220 = arith.constant 0 : index
    %354 = vector.load %arg8[%c5_218, %c0_219, %c0_220] : memref<8x1x16xf32, #tpu.memory_space<vmem>>, vector<1x1x16xf32>
    %355 = vector.shape_cast %354 : vector<1x1x16xf32> to vector<1x16xf32>
    %356 = vector.broadcast %355 : vector<1x16xf32> to vector<8x16xf32>
    %357 = arith.addf %353, %356 : vector<8x16xf32>
    %358 = arith.truncf %343 : vector<8x16xf32> to vector<8x16xbf16>
    %359 = arith.truncf %350 : vector<8x16xf32> to vector<8x16xbf16>
    %cst_221 = arith.constant dense<0.000000e+00> : vector<8x8xf32>
    %360 = tpu.matmul %358, %359, %cst_221 {dimension_numbers = #tpu.dot_dimension_numbers<[1], [1], [0], [0], [0, 0, 1, 0], [], []>} : vector<8x16xbf16>, vector<8x16xbf16>, vector<8x8xf32> -> vector<8x8xf32>
    %361 = arith.addf %360, %20 : vector<8x8xf32>
    %cst_222 = arith.constant dense<0xFF800000> : vector<8xf32>
    %362 = vector.multi_reduction <maximumf>, %361, %cst_222 [1] : vector<8x8xf32> to vector<8xf32>
    %363 = vector.shape_cast %362 : vector<8xf32> to vector<8x1xf32>
    %364 = vector.broadcast %363 : vector<8x1xf32> to vector<8x8xf32>
    %365 = arith.subf %361, %364 : vector<8x8xf32>
    %366 = math.exp %365 : vector<8x8xf32>
    %cst_223 = arith.constant dense<0.000000e+00> : vector<8xf32>
    %367 = vector.multi_reduction <add>, %366, %cst_223 [1] : vector<8x8xf32> to vector<8xf32>
    %368 = vector.shape_cast %367 : vector<8xf32> to vector<8x1xf32>
    %369 = vector.broadcast %368 : vector<8x1xf32> to vector<8x8xf32>
    %370 = arith.divf %366, %369 : vector<8x8xf32>
    %371 = arith.truncf %370 : vector<8x8xf32> to vector<8x8xbf16>
    %372 = arith.truncf %357 : vector<8x16xf32> to vector<8x16xbf16>
    %cst_224 = arith.constant dense<0.000000e+00> : vector<8x16xf32>
    %373 = tpu.matmul %371, %372, %cst_224 {dimension_numbers = #tpu.dot_dimension_numbers<[1], [0], [0], [1], [0, 0, 1, 1], [], []>} : vector<8x8xbf16>, vector<8x16xbf16>, vector<8x16xf32> -> vector<8x16xf32>
    %374 = arith.truncf %373 : vector<8x16xf32> to vector<8x16xbf16>
    %c5_225 = arith.constant 5 : index
    %c0_226 = arith.constant 0 : index
    %c0_227 = arith.constant 0 : index
    %375 = vector.load %arg9[%c5_225, %c0_226, %c0_227] : memref<8x16x64xbf16, #tpu.memory_space<vmem>>, vector<1x16x64xbf16>
    %376 = vector.shape_cast %375 : vector<1x16x64xbf16> to vector<16x64xbf16>
    %cst_228 = arith.constant dense<0.000000e+00> : vector<8x64xf32>
    %377 = tpu.matmul %374, %376, %cst_228 {dimension_numbers = #tpu.dot_dimension_numbers<[1], [0], [0], [1], [0, 0, 1, 1], [], []>} : vector<8x16xbf16>, vector<16x64xbf16>, vector<8x64xf32> -> vector<8x64xf32>
    %378 = arith.addf %336, %377 : vector<8x64xf32>
    %c6 = arith.constant 6 : index
    %c0_229 = arith.constant 0 : index
    %c0_230 = arith.constant 0 : index
    %379 = vector.load %arg3[%c6, %c0_229, %c0_230] : memref<8x64x16xbf16, #tpu.memory_space<vmem>>, vector<1x64x16xbf16>
    %380 = vector.shape_cast %379 : vector<1x64x16xbf16> to vector<64x16xbf16>
    %cst_231 = arith.constant dense<0.000000e+00> : vector<8x16xf32>
    %381 = tpu.matmul %293, %380, %cst_231 {dimension_numbers = #tpu.dot_dimension_numbers<[1], [0], [0], [1], [0, 0, 1, 1], [], []>} : vector<8x64xbf16>, vector<64x16xbf16>, vector<8x16xf32> -> vector<8x16xf32>
    %c6_232 = arith.constant 6 : index
    %c0_233 = arith.constant 0 : index
    %c0_234 = arith.constant 0 : index
    %382 = vector.load %arg4[%c6_232, %c0_233, %c0_234] : memref<8x1x16xf32, #tpu.memory_space<vmem>>, vector<1x1x16xf32>
    %383 = vector.shape_cast %382 : vector<1x1x16xf32> to vector<1x16xf32>
    %384 = vector.broadcast %383 : vector<1x16xf32> to vector<8x16xf32>
    %385 = arith.addf %381, %384 : vector<8x16xf32>
    %c6_235 = arith.constant 6 : index
    %c0_236 = arith.constant 0 : index
    %c0_237 = arith.constant 0 : index
    %386 = vector.load %arg5[%c6_235, %c0_236, %c0_237] : memref<8x64x16xbf16, #tpu.memory_space<vmem>>, vector<1x64x16xbf16>
    %387 = vector.shape_cast %386 : vector<1x64x16xbf16> to vector<64x16xbf16>
    %cst_238 = arith.constant dense<0.000000e+00> : vector<8x16xf32>
    %388 = tpu.matmul %293, %387, %cst_238 {dimension_numbers = #tpu.dot_dimension_numbers<[1], [0], [0], [1], [0, 0, 1, 1], [], []>} : vector<8x64xbf16>, vector<64x16xbf16>, vector<8x16xf32> -> vector<8x16xf32>
    %c6_239 = arith.constant 6 : index
    %c0_240 = arith.constant 0 : index
    %c0_241 = arith.constant 0 : index
    %389 = vector.load %arg6[%c6_239, %c0_240, %c0_241] : memref<8x1x16xf32, #tpu.memory_space<vmem>>, vector<1x1x16xf32>
    %390 = vector.shape_cast %389 : vector<1x1x16xf32> to vector<1x16xf32>
    %391 = vector.broadcast %390 : vector<1x16xf32> to vector<8x16xf32>
    %392 = arith.addf %388, %391 : vector<8x16xf32>
    %c6_242 = arith.constant 6 : index
    %c0_243 = arith.constant 0 : index
    %c0_244 = arith.constant 0 : index
    %393 = vector.load %arg7[%c6_242, %c0_243, %c0_244] : memref<8x64x16xbf16, #tpu.memory_space<vmem>>, vector<1x64x16xbf16>
    %394 = vector.shape_cast %393 : vector<1x64x16xbf16> to vector<64x16xbf16>
    %cst_245 = arith.constant dense<0.000000e+00> : vector<8x16xf32>
    %395 = tpu.matmul %293, %394, %cst_245 {dimension_numbers = #tpu.dot_dimension_numbers<[1], [0], [0], [1], [0, 0, 1, 1], [], []>} : vector<8x64xbf16>, vector<64x16xbf16>, vector<8x16xf32> -> vector<8x16xf32>
    %c6_246 = arith.constant 6 : index
    %c0_247 = arith.constant 0 : index
    %c0_248 = arith.constant 0 : index
    %396 = vector.load %arg8[%c6_246, %c0_247, %c0_248] : memref<8x1x16xf32, #tpu.memory_space<vmem>>, vector<1x1x16xf32>
    %397 = vector.shape_cast %396 : vector<1x1x16xf32> to vector<1x16xf32>
    %398 = vector.broadcast %397 : vector<1x16xf32> to vector<8x16xf32>
    %399 = arith.addf %395, %398 : vector<8x16xf32>
    %400 = arith.truncf %385 : vector<8x16xf32> to vector<8x16xbf16>
    %401 = arith.truncf %392 : vector<8x16xf32> to vector<8x16xbf16>
    %cst_249 = arith.constant dense<0.000000e+00> : vector<8x8xf32>
    %402 = tpu.matmul %400, %401, %cst_249 {dimension_numbers = #tpu.dot_dimension_numbers<[1], [1], [0], [0], [0, 0, 1, 0], [], []>} : vector<8x16xbf16>, vector<8x16xbf16>, vector<8x8xf32> -> vector<8x8xf32>
    %403 = arith.addf %402, %20 : vector<8x8xf32>
    %cst_250 = arith.constant dense<0xFF800000> : vector<8xf32>
    %404 = vector.multi_reduction <maximumf>, %403, %cst_250 [1] : vector<8x8xf32> to vector<8xf32>
    %405 = vector.shape_cast %404 : vector<8xf32> to vector<8x1xf32>
    %406 = vector.broadcast %405 : vector<8x1xf32> to vector<8x8xf32>
    %407 = arith.subf %403, %406 : vector<8x8xf32>
    %408 = math.exp %407 : vector<8x8xf32>
    %cst_251 = arith.constant dense<0.000000e+00> : vector<8xf32>
    %409 = vector.multi_reduction <add>, %408, %cst_251 [1] : vector<8x8xf32> to vector<8xf32>
    %410 = vector.shape_cast %409 : vector<8xf32> to vector<8x1xf32>
    %411 = vector.broadcast %410 : vector<8x1xf32> to vector<8x8xf32>
    %412 = arith.divf %408, %411 : vector<8x8xf32>
    %413 = arith.truncf %412 : vector<8x8xf32> to vector<8x8xbf16>
    %414 = arith.truncf %399 : vector<8x16xf32> to vector<8x16xbf16>
    %cst_252 = arith.constant dense<0.000000e+00> : vector<8x16xf32>
    %415 = tpu.matmul %413, %414, %cst_252 {dimension_numbers = #tpu.dot_dimension_numbers<[1], [0], [0], [1], [0, 0, 1, 1], [], []>} : vector<8x8xbf16>, vector<8x16xbf16>, vector<8x16xf32> -> vector<8x16xf32>
    %416 = arith.truncf %415 : vector<8x16xf32> to vector<8x16xbf16>
    %c6_253 = arith.constant 6 : index
    %c0_254 = arith.constant 0 : index
    %c0_255 = arith.constant 0 : index
    %417 = vector.load %arg9[%c6_253, %c0_254, %c0_255] : memref<8x16x64xbf16, #tpu.memory_space<vmem>>, vector<1x16x64xbf16>
    %418 = vector.shape_cast %417 : vector<1x16x64xbf16> to vector<16x64xbf16>
    %cst_256 = arith.constant dense<0.000000e+00> : vector<8x64xf32>
    %419 = tpu.matmul %416, %418, %cst_256 {dimension_numbers = #tpu.dot_dimension_numbers<[1], [0], [0], [1], [0, 0, 1, 1], [], []>} : vector<8x16xbf16>, vector<16x64xbf16>, vector<8x64xf32> -> vector<8x64xf32>
    %420 = arith.addf %378, %419 : vector<8x64xf32>
    %c7 = arith.constant 7 : index
    %c0_257 = arith.constant 0 : index
    %c0_258 = arith.constant 0 : index
    %421 = vector.load %arg3[%c7, %c0_257, %c0_258] : memref<8x64x16xbf16, #tpu.memory_space<vmem>>, vector<1x64x16xbf16>
    %422 = vector.shape_cast %421 : vector<1x64x16xbf16> to vector<64x16xbf16>
    %cst_259 = arith.constant dense<0.000000e+00> : vector<8x16xf32>
    %423 = tpu.matmul %293, %422, %cst_259 {dimension_numbers = #tpu.dot_dimension_numbers<[1], [0], [0], [1], [0, 0, 1, 1], [], []>} : vector<8x64xbf16>, vector<64x16xbf16>, vector<8x16xf32> -> vector<8x16xf32>
    %c7_260 = arith.constant 7 : index
    %c0_261 = arith.constant 0 : index
    %c0_262 = arith.constant 0 : index
    %424 = vector.load %arg4[%c7_260, %c0_261, %c0_262] : memref<8x1x16xf32, #tpu.memory_space<vmem>>, vector<1x1x16xf32>
    %425 = vector.shape_cast %424 : vector<1x1x16xf32> to vector<1x16xf32>
    %426 = vector.broadcast %425 : vector<1x16xf32> to vector<8x16xf32>
    %427 = arith.addf %423, %426 : vector<8x16xf32>
    %c7_263 = arith.constant 7 : index
    %c0_264 = arith.constant 0 : index
    %c0_265 = arith.constant 0 : index
    %428 = vector.load %arg5[%c7_263, %c0_264, %c0_265] : memref<8x64x16xbf16, #tpu.memory_space<vmem>>, vector<1x64x16xbf16>
    %429 = vector.shape_cast %428 : vector<1x64x16xbf16> to vector<64x16xbf16>
    %cst_266 = arith.constant dense<0.000000e+00> : vector<8x16xf32>
    %430 = tpu.matmul %293, %429, %cst_266 {dimension_numbers = #tpu.dot_dimension_numbers<[1], [0], [0], [1], [0, 0, 1, 1], [], []>} : vector<8x64xbf16>, vector<64x16xbf16>, vector<8x16xf32> -> vector<8x16xf32>
    %c7_267 = arith.constant 7 : index
    %c0_268 = arith.constant 0 : index
    %c0_269 = arith.constant 0 : index
    %431 = vector.load %arg6[%c7_267, %c0_268, %c0_269] : memref<8x1x16xf32, #tpu.memory_space<vmem>>, vector<1x1x16xf32>
    %432 = vector.shape_cast %431 : vector<1x1x16xf32> to vector<1x16xf32>
    %433 = vector.broadcast %432 : vector<1x16xf32> to vector<8x16xf32>
    %434 = arith.addf %430, %433 : vector<8x16xf32>
    %c7_270 = arith.constant 7 : index
    %c0_271 = arith.constant 0 : index
    %c0_272 = arith.constant 0 : index
    %435 = vector.load %arg7[%c7_270, %c0_271, %c0_272] : memref<8x64x16xbf16, #tpu.memory_space<vmem>>, vector<1x64x16xbf16>
    %436 = vector.shape_cast %435 : vector<1x64x16xbf16> to vector<64x16xbf16>
    %cst_273 = arith.constant dense<0.000000e+00> : vector<8x16xf32>
    %437 = tpu.matmul %293, %436, %cst_273 {dimension_numbers = #tpu.dot_dimension_numbers<[1], [0], [0], [1], [0, 0, 1, 1], [], []>} : vector<8x64xbf16>, vector<64x16xbf16>, vector<8x16xf32> -> vector<8x16xf32>
    %c7_274 = arith.constant 7 : index
    %c0_275 = arith.constant 0 : index
    %c0_276 = arith.constant 0 : index
    %438 = vector.load %arg8[%c7_274, %c0_275, %c0_276] : memref<8x1x16xf32, #tpu.memory_space<vmem>>, vector<1x1x16xf32>
    %439 = vector.shape_cast %438 : vector<1x1x16xf32> to vector<1x16xf32>
    %440 = vector.broadcast %439 : vector<1x16xf32> to vector<8x16xf32>
    %441 = arith.addf %437, %440 : vector<8x16xf32>
    %442 = arith.truncf %427 : vector<8x16xf32> to vector<8x16xbf16>
    %443 = arith.truncf %434 : vector<8x16xf32> to vector<8x16xbf16>
    %cst_277 = arith.constant dense<0.000000e+00> : vector<8x8xf32>
    %444 = tpu.matmul %442, %443, %cst_277 {dimension_numbers = #tpu.dot_dimension_numbers<[1], [1], [0], [0], [0, 0, 1, 0], [], []>} : vector<8x16xbf16>, vector<8x16xbf16>, vector<8x8xf32> -> vector<8x8xf32>
    %445 = arith.addf %444, %20 : vector<8x8xf32>
    %cst_278 = arith.constant dense<0xFF800000> : vector<8xf32>
    %446 = vector.multi_reduction <maximumf>, %445, %cst_278 [1] : vector<8x8xf32> to vector<8xf32>
    %447 = vector.shape_cast %446 : vector<8xf32> to vector<8x1xf32>
    %448 = vector.broadcast %447 : vector<8x1xf32> to vector<8x8xf32>
    %449 = arith.subf %445, %448 : vector<8x8xf32>
    %450 = math.exp %449 : vector<8x8xf32>
    %cst_279 = arith.constant dense<0.000000e+00> : vector<8xf32>
    %451 = vector.multi_reduction <add>, %450, %cst_279 [1] : vector<8x8xf32> to vector<8xf32>
    %452 = vector.shape_cast %451 : vector<8xf32> to vector<8x1xf32>
    %453 = vector.broadcast %452 : vector<8x1xf32> to vector<8x8xf32>
    %454 = arith.divf %450, %453 : vector<8x8xf32>
    %455 = arith.truncf %454 : vector<8x8xf32> to vector<8x8xbf16>
    %456 = arith.truncf %441 : vector<8x16xf32> to vector<8x16xbf16>
    %cst_280 = arith.constant dense<0.000000e+00> : vector<8x16xf32>
    %457 = tpu.matmul %455, %456, %cst_280 {dimension_numbers = #tpu.dot_dimension_numbers<[1], [0], [0], [1], [0, 0, 1, 1], [], []>} : vector<8x8xbf16>, vector<8x16xbf16>, vector<8x16xf32> -> vector<8x16xf32>
    %458 = arith.truncf %457 : vector<8x16xf32> to vector<8x16xbf16>
    %c7_281 = arith.constant 7 : index
    %c0_282 = arith.constant 0 : index
    %c0_283 = arith.constant 0 : index
    %459 = vector.load %arg9[%c7_281, %c0_282, %c0_283] : memref<8x16x64xbf16, #tpu.memory_space<vmem>>, vector<1x16x64xbf16>
    %460 = vector.shape_cast %459 : vector<1x16x64xbf16> to vector<16x64xbf16>
    %cst_284 = arith.constant dense<0.000000e+00> : vector<8x64xf32>
    %461 = tpu.matmul %458, %460, %cst_284 {dimension_numbers = #tpu.dot_dimension_numbers<[1], [0], [0], [1], [0, 0, 1, 1], [], []>} : vector<8x16xbf16>, vector<16x64xbf16>, vector<8x64xf32> -> vector<8x64xf32>
    %462 = arith.addf %420, %461 : vector<8x64xf32>
    %c1_285 = arith.constant 1 : index
    %c0_286 = arith.constant 0 : index
    %c0_287 = arith.constant 0 : index
    %463 = vector.load %arg10[%c1_285, %c0_286, %c0_287] : memref<2x1x64xf32, #tpu.memory_space<vmem>>, vector<1x1x64xf32>
    %464 = vector.shape_cast %463 : vector<1x1x64xf32> to vector<1x64xf32>
    %465 = vector.broadcast %464 : vector<1x64xf32> to vector<8x64xf32>
    %466 = arith.addf %462, %465 : vector<8x64xf32>
    %467 = arith.addf %266, %466 : vector<8x64xf32>
    %c1_288 = arith.constant 1 : index
    %c0_289 = arith.constant 0 : index
    %c0_290 = arith.constant 0 : index
    %468 = vector.load %arg17[%c1_288, %c0_289, %c0_290] : memref<2x1x64xf32, #tpu.memory_space<vmem>>, vector<1x1x64xf32>
    %469 = vector.shape_cast %468 : vector<1x1x64xf32> to vector<1x64xf32>
    %c1_291 = arith.constant 1 : index
    %c0_292 = arith.constant 0 : index
    %c0_293 = arith.constant 0 : index
    %470 = vector.load %arg18[%c1_291, %c0_292, %c0_293] : memref<2x1x64xf32, #tpu.memory_space<vmem>>, vector<1x1x64xf32>
    %471 = vector.shape_cast %470 : vector<1x1x64xf32> to vector<1x64xf32>
    %cst_294 = arith.constant dense<0.000000e+00> : vector<8xf32>
    %472 = vector.multi_reduction <add>, %467, %cst_294 [1] : vector<8x64xf32> to vector<8xf32>
    %473 = vector.shape_cast %472 : vector<8xf32> to vector<8x1xf32>
    %cst_295 = arith.constant 6.400000e+01 : f32
    %474 = vector.broadcast %cst_295 : f32 to vector<8x1xf32>
    %475 = arith.divf %473, %474 : vector<8x1xf32>
    %476 = vector.broadcast %475 : vector<8x1xf32> to vector<8x64xf32>
    %477 = arith.subf %467, %476 : vector<8x64xf32>
    %478 = arith.mulf %477, %477 : vector<8x64xf32>
    %cst_296 = arith.constant dense<0.000000e+00> : vector<8xf32>
    %479 = vector.multi_reduction <add>, %478, %cst_296 [1] : vector<8x64xf32> to vector<8xf32>
    %480 = vector.shape_cast %479 : vector<8xf32> to vector<8x1xf32>
    %cst_297 = arith.constant 6.400000e+01 : f32
    %481 = vector.broadcast %cst_297 : f32 to vector<8x1xf32>
    %482 = arith.divf %480, %481 : vector<8x1xf32>
    %483 = vector.broadcast %475 : vector<8x1xf32> to vector<8x64xf32>
    %484 = arith.subf %467, %483 : vector<8x64xf32>
    %cst_298 = arith.constant 9.99999974E-6 : f32
    %485 = vector.broadcast %cst_298 : f32 to vector<8x1xf32>
    %486 = arith.addf %482, %485 : vector<8x1xf32>
    %487 = math.rsqrt %486 : vector<8x1xf32>
    %488 = vector.broadcast %487 : vector<8x1xf32> to vector<8x64xf32>
    %489 = arith.mulf %484, %488 : vector<8x64xf32>
    %490 = vector.broadcast %469 : vector<1x64xf32> to vector<8x64xf32>
    %491 = arith.mulf %489, %490 : vector<8x64xf32>
    %492 = vector.broadcast %471 : vector<1x64xf32> to vector<8x64xf32>
    %493 = arith.addf %491, %492 : vector<8x64xf32>
    %494 = arith.truncf %493 : vector<8x64xf32> to vector<8x64xbf16>
    %c1_299 = arith.constant 1 : index
    %c0_300 = arith.constant 0 : index
    %c0_301 = arith.constant 0 : index
    %495 = vector.load %arg11[%c1_299, %c0_300, %c0_301] : memref<2x64x128xbf16, #tpu.memory_space<vmem>>, vector<1x64x128xbf16>
    %496 = vector.shape_cast %495 : vector<1x64x128xbf16> to vector<64x128xbf16>
    %cst_302 = arith.constant dense<0.000000e+00> : vector<8x128xf32>
    %497 = tpu.matmul %494, %496, %cst_302 {dimension_numbers = #tpu.dot_dimension_numbers<[1], [0], [0], [1], [0, 0, 1, 1], [], []>} : vector<8x64xbf16>, vector<64x128xbf16>, vector<8x128xf32> -> vector<8x128xf32>
    %c1_303 = arith.constant 1 : index
    %c0_304 = arith.constant 0 : index
    %c0_305 = arith.constant 0 : index
    %498 = vector.load %arg12[%c1_303, %c0_304, %c0_305] : memref<2x1x128xf32, #tpu.memory_space<vmem>>, vector<1x1x128xf32>
    %499 = vector.shape_cast %498 : vector<1x1x128xf32> to vector<1x128xf32>
    %500 = vector.broadcast %499 : vector<1x128xf32> to vector<8x128xf32>
    %501 = arith.addf %497, %500 : vector<8x128xf32>
    %cst_306 = arith.constant 0.000000e+00 : f32
    %502 = vector.broadcast %cst_306 : f32 to vector<8x128xf32>
    %503 = arith.maximumf %501, %502 : vector<8x128xf32>
    %504 = arith.truncf %503 : vector<8x128xf32> to vector<8x128xbf16>
    %c1_307 = arith.constant 1 : index
    %c0_308 = arith.constant 0 : index
    %c0_309 = arith.constant 0 : index
    %505 = vector.load %arg13[%c1_307, %c0_308, %c0_309] : memref<2x128x64xbf16, #tpu.memory_space<vmem>>, vector<1x128x64xbf16>
    %506 = vector.shape_cast %505 : vector<1x128x64xbf16> to vector<128x64xbf16>
    %cst_310 = arith.constant dense<0.000000e+00> : vector<8x64xf32>
    %507 = tpu.matmul %504, %506, %cst_310 {dimension_numbers = #tpu.dot_dimension_numbers<[1], [0], [0], [1], [0, 0, 1, 1], [], []>} : vector<8x128xbf16>, vector<128x64xbf16>, vector<8x64xf32> -> vector<8x64xf32>
    %c1_311 = arith.constant 1 : index
    %c0_312 = arith.constant 0 : index
    %c0_313 = arith.constant 0 : index
    %508 = vector.load %arg14[%c1_311, %c0_312, %c0_313] : memref<2x1x64xf32, #tpu.memory_space<vmem>>, vector<1x1x64xf32>
    %509 = vector.shape_cast %508 : vector<1x1x64xf32> to vector<1x64xf32>
    %510 = vector.broadcast %509 : vector<1x64xf32> to vector<8x64xf32>
    %511 = arith.addf %507, %510 : vector<8x64xf32>
    %512 = arith.addf %467, %511 : vector<8x64xf32>
    %513 = arith.truncf %512 : vector<8x64xf32> to vector<8x64xbf16>
    %c0_314 = arith.constant 0 : index
    %c0_315 = arith.constant 0 : index
    %514 = vector.load %arg19[%c0_314, %c0_315] : memref<64x128xbf16, #tpu.memory_space<vmem>>, vector<64x128xbf16>
    %cst_316 = arith.constant dense<0.000000e+00> : vector<8x128xf32>
    %515 = tpu.matmul %513, %514, %cst_316 {dimension_numbers = #tpu.dot_dimension_numbers<[1], [0], [0], [1], [0, 0, 1, 1], [], []>} : vector<8x64xbf16>, vector<64x128xbf16>, vector<8x128xf32> -> vector<8x128xf32>
    %c0_317 = arith.constant 0 : index
    %c0_318 = arith.constant 0 : index
    %516 = vector.load %arg20[%c0_317, %c0_318] : memref<1x128xf32, #tpu.memory_space<vmem>>, vector<1x128xf32>
    %517 = vector.broadcast %516 : vector<1x128xf32> to vector<8x128xf32>
    %518 = arith.addf %515, %517 : vector<8x128xf32>
    %c0_319 = arith.constant 0 : index
    %c0_320 = arith.constant 0 : index
    %519 = vector.load %arg21[%c0_319, %c0_320] : memref<8x128xf32, #tpu.memory_space<vmem>>, vector<8x128xf32>
    tpu.vector_store %arg21[%c0_319, %c0_320], %518 {strides = array<i32>} : memref<8x128xf32, #tpu.memory_space<vmem>>, vector<8x128xf32>,
    return
  }
  func.func @transform_0(%arg0: i32) -> (i32, i32) {
    %c0_i32 = arith.constant 0 : i32
    %c0_i32_0 = arith.constant 0 : i32
    return %arg0, %c0_i32 : i32, i32
  }
  func.func @transform_1(%arg0: i32) -> (i32, i32) {
    %c0_i32 = arith.constant 0 : i32
    %c0_i32_0 = arith.constant 0 : i32
    %c0_i32_1 = arith.constant 0 : i32
    return %c0_i32, %c0_i32_0 : i32, i32
  }
  func.func @transform_2(%arg0: i32) -> (i32, i32, i32) {
    %c0_i32 = arith.constant 0 : i32
    %c0_i32_0 = arith.constant 0 : i32
    %c0_i32_1 = arith.constant 0 : i32
    %c0_i32_2 = arith.constant 0 : i32
    return %c0_i32, %c0_i32_0, %c0_i32_1 : i32, i32, i32
  }
  func.func @transform_3(%arg0: i32) -> (i32, i32, i32) {
    %c0_i32 = arith.constant 0 : i32
    %c0_i32_0 = arith.constant 0 : i32
    %c0_i32_1 = arith.constant 0 : i32
    %c0_i32_2 = arith.constant 0 : i32
    return %c0_i32, %c0_i32_0, %c0_i32_1 : i32, i32, i32
  }
  func.func @transform_4(%arg0: i32) -> (i32, i32, i32) {
    %c0_i32 = arith.constant 0 : i32
    %c0_i32_0 = arith.constant 0 : i32
    %c0_i32_1 = arith.constant 0 : i32
    %c0_i32_2 = arith.constant 0 : i32
    return %c0_i32, %c0_i32_0, %c0_i32_1 : i32, i32, i32
  }
  func.func @transform_5(%arg0: i32) -> (i32, i32, i32) {
    %c0_i32 = arith.constant 0 : i32
    %c0_i32_0 = arith.constant 0 : i32
    %c0_i32_1 = arith.constant 0 : i32
    %c0_i32_2 = arith.constant 0 : i32
    return %c0_i32, %c0_i32_0, %c0_i32_1 : i32, i32, i32
  }
  func.func @transform_6(%arg0: i32) -> (i32, i32, i32) {
    %c0_i32 = arith.constant 0 : i32
    %c0_i32_0 = arith.constant 0 : i32
    %c0_i32_1 = arith.constant 0 : i32
    %c0_i32_2 = arith.constant 0 : i32
    return %c0_i32, %c0_i32_0, %c0_i32_1 : i32, i32, i32
  }
  func.func @transform_7(%arg0: i32) -> (i32, i32, i32) {
    %c0_i32 = arith.constant 0 : i32
    %c0_i32_0 = arith.constant 0 : i32
    %c0_i32_1 = arith.constant 0 : i32
    %c0_i32_2 = arith.constant 0 : i32
    return %c0_i32, %c0_i32_0, %c0_i32_1 : i32, i32, i32
  }
  func.func @transform_8(%arg0: i32) -> (i32, i32, i32) {
    %c0_i32 = arith.constant 0 : i32
    %c0_i32_0 = arith.constant 0 : i32
    %c0_i32_1 = arith.constant 0 : i32
    %c0_i32_2 = arith.constant 0 : i32
    return %c0_i32, %c0_i32_0, %c0_i32_1 : i32, i32, i32
  }
  func.func @transform_9(%arg0: i32) -> (i32, i32, i32) {
    %c0_i32 = arith.constant 0 : i32
    %c0_i32_0 = arith.constant 0 : i32
    %c0_i32_1 = arith.constant 0 : i32
    %c0_i32_2 = arith.constant 0 : i32
    return %c0_i32, %c0_i32_0, %c0_i32_1 : i32, i32, i32
  }
  func.func @transform_10(%arg0: i32) -> (i32, i32, i32) {
    %c0_i32 = arith.constant 0 : i32
    %c0_i32_0 = arith.constant 0 : i32
    %c0_i32_1 = arith.constant 0 : i32
    %c0_i32_2 = arith.constant 0 : i32
    return %c0_i32, %c0_i32_0, %c0_i32_1 : i32, i32, i32
  }
  func.func @transform_11(%arg0: i32) -> (i32, i32, i32) {
    %c0_i32 = arith.constant 0 : i32
    %c0_i32_0 = arith.constant 0 : i32
    %c0_i32_1 = arith.constant 0 : i32
    %c0_i32_2 = arith.constant 0 : i32
    return %c0_i32, %c0_i32_0, %c0_i32_1 : i32, i32, i32
  }
  func.func @transform_12(%arg0: i32) -> (i32, i32, i32) {
    %c0_i32 = arith.constant 0 : i32
    %c0_i32_0 = arith.constant 0 : i32
    %c0_i32_1 = arith.constant 0 : i32
    %c0_i32_2 = arith.constant 0 : i32
    return %c0_i32, %c0_i32_0, %c0_i32_1 : i32, i32, i32
  }
  func.func @transform_13(%arg0: i32) -> (i32, i32, i32) {
    %c0_i32 = arith.constant 0 : i32
    %c0_i32_0 = arith.constant 0 : i32
    %c0_i32_1 = arith.constant 0 : i32
    %c0_i32_2 = arith.constant 0 : i32
    return %c0_i32, %c0_i32_0, %c0_i32_1 : i32, i32, i32
  }
  func.func @transform_14(%arg0: i32) -> (i32, i32, i32) {
    %c0_i32 = arith.constant 0 : i32
    %c0_i32_0 = arith.constant 0 : i32
    %c0_i32_1 = arith.constant 0 : i32
    %c0_i32_2 = arith.constant 0 : i32
    return %c0_i32, %c0_i32_0, %c0_i32_1 : i32, i32, i32
  }
  func.func @transform_15(%arg0: i32) -> (i32, i32, i32) {
    %c0_i32 = arith.constant 0 : i32
    %c0_i32_0 = arith.constant 0 : i32
    %c0_i32_1 = arith.constant 0 : i32
    %c0_i32_2 = arith.constant 0 : i32
    return %c0_i32, %c0_i32_0, %c0_i32_1 : i32, i32, i32
  }
  func.func @transform_16(%arg0: i32) -> (i32, i32, i32) {
    %c0_i32 = arith.constant 0 : i32
    %c0_i32_0 = arith.constant 0 : i32
    %c0_i32_1 = arith.constant 0 : i32
    %c0_i32_2 = arith.constant 0 : i32
    return %c0_i32, %c0_i32_0, %c0_i32_1 : i32, i32, i32
  }
  func.func @transform_17(%arg0: i32) -> (i32, i32, i32) {
    %c0_i32 = arith.constant 0 : i32
    %c0_i32_0 = arith.constant 0 : i32
    %c0_i32_1 = arith.constant 0 : i32
    %c0_i32_2 = arith.constant 0 : i32
    return %c0_i32, %c0_i32_0, %c0_i32_1 : i32, i32, i32
  }
  func.func @transform_18(%arg0: i32) -> (i32, i32) {
    %c0_i32 = arith.constant 0 : i32
    %c0_i32_0 = arith.constant 0 : i32
    %c0_i32_1 = arith.constant 0 : i32
    return %c0_i32, %c0_i32_0 : i32, i32
  }
  func.func @transform_19(%arg0: i32) -> (i32, i32) {
    %c0_i32 = arith.constant 0 : i32
    %c0_i32_0 = arith.constant 0 : i32
    %c0_i32_1 = arith.constant 0 : i32
    return %c0_i32, %c0_i32_0 : i32, i32
  }
  func.func @transform_20(%arg0: i32) -> (i32, i32) {
    %c0_i32 = arith.constant 0 : i32
    %c0_i32_0 = arith.constant 0 : i32
    return %arg0, %c0_i32 : i32, i32
  }
}

</mosaic_0001>

<bundles_post_ra>
// kernel: tpu_custom_call.1
= control target key start
LH: loop header
LB: loop body
LE: loop exit
PB: predicated region body
PF: predicated region fallthrough
CT: control target
= control target key end

     0   :  { %s7345_s0 = inlined_call_operand.vmem [shape: s32[16,1], index: 0, kind: input, shape index: {}]   ;;  %s7346_s1 = inlined_call_operand.vmem [shape: bf16[144,64], index: 1, kind: input, shape index: {}]   ;;  %s7347_s2 = inlined_call_operand.vmem [shape: bf16[8,64,16], index: 2, kind: input, shape index: {}]   ;;  %s7348_s3 = inlined_call_operand.vmem [shape: f32[8,1,16], index: 3, kind: input, shape index: {}]   ;;  %s7349_s4 = inlined_call_operand.vmem [shape: bf16[8,64,16], index: 4, kind: input, shape index: {}]   ;;  %s7350_s5 = inlined_call_operand.vmem [shape: f32[8,1,16], index: 5, kind: input, shape index: {}]   ;;  %s7351_s6 = inlined_call_operand.vmem [shape: bf16[8,64,16], index: 6, kind: input, shape index: {}]   ;;  %s7352_s7 = inlined_call_operand.vmem [shape: f32[8,1,16], index: 7, kind: input, shape index: {}]   ;;  %s7353_s8 = inlined_call_operand.vmem [shape: bf16[8,16,64], index: 8, kind: input, shape index: {}]   ;;  %s7354_s9 = inlined_call_operand.vmem [shape: f32[2,1,64], index: 9, kind: input, shape index: {}]   ;;  %s7355_s10 = inlined_call_operand.vmem [shape: bf16[2,64,128], index: 10, kind: input, shape index: {}]   ;;  %s7356_s11 = inlined_call_operand.vmem [shape: f32[2,1,128], index: 11, kind: input, shape index: {}]   ;;  %s7357_s12 = inlined_call_operand.vmem [shape: bf16[2,128,64], index: 12, kind: input, shape index: {}]   ;;  %s7358_s13 = inlined_call_operand.vmem [shape: f32[2,1,64], index: 13, kind: input, shape index: {}]   ;;  %s7359_s14 = inlined_call_operand.vmem [shape: f32[2,1,64], index: 14, kind: input, shape index: {}]   ;;  %s7360_s15 = inlined_call_operand.vmem [shape: f32[2,1,64], index: 15, kind: input, shape index: {}]   ;;  %s7361_s16 = inlined_call_operand.vmem [shape: f32[2,1,64], index: 16, kind: input, shape index: {}]   ;;  %s7362_s17 = inlined_call_operand.vmem [shape: f32[2,1,64], index: 17, kind: input, shape index: {}]   ;;  %s7363_s18 = inlined_call_operand.vmem [shape: bf16[64,128], index: 18, kind: input, shape index: {}]   ;;  %s7364_s19 = inlined_call_operand.vmem [shape: f32[1,128], index: 19, kind: input, shape index: {}]   ;;  %s7365_s20 = inlined_call_operand.hbm [shape: f32[16,128], index: 20, kind: output, shape index: {}]  }
   0x1   :  { %7378 = sst [smem:[#allocation11_spill]] %s7345_s0 }
   0x2   :  { %7379 = sst [smem:[#allocation12_spill]] %s7346_s1 }
   0x3   :  { %7380 = sst [smem:[#allocation13_spill]] %s7347_s2 }
   0x4   :  { %7381 = sst [smem:[#allocation14_spill]] %s7348_s3 }
   0x5   :  { %7382 = sst [smem:[#allocation15_spill]] %s7349_s4 }
   0x6   :  { %7383 = sst [smem:[#allocation16_spill]] %s7350_s5 }
   0x7   :  { %7384 = sst [smem:[#allocation17_spill]] %s7351_s6 }
   0x8   :  { %7385 = sst [smem:[#allocation18_spill]] %s7365_s20 }
   0x9   :  { %25 = vsyncpa [#allocation3], 0 }
   0xa   :  { %27 = vsyncpa [#allocation3 + $0x1], 0  ;;  %s6277_s1 = smov 0   ;;  %s6279_s22 = smov 0  }
   0xb   :  { %s6281_s23 = smov 0   ;;  %s6283_s24 = smov 0  }
   0xc LB: > { %7386 = sst [smem:[#allocation5_spill]] %s6152_s1  ;;  %s6298_s2 = sadd.s32 4294967295, %s6164_s24   ;;  %s6164_s24 = sphi %s6283_s24, %s7406_s24   ;;  %s6160_s23 = sphi %s6281_s23, %s7408_s23   ;;  %s6156_s22 = sphi %s6279_s22, %s7410_s22   ;;  %s6152_s1 = sphi %s6277_s1, %s7409_s1  }
   0xd   : > { %7387 = sst [smem:[#allocation6_spill]] %s6160_s23  ;;  %s4691_s25 = sadd.s32 4294967294, %s6164_s24  }
   0xe   : > { %7388 = sst [smem:[#allocation7_spill]] %s6164_s24  ;;  %s6302_s3 = sadd.s32 1, %s6164_s24  }
   0xf   : > { %7389 = sst [smem:[#allocation8_spill]] %s6302_s3  ;;  %s465_s26 = sadd.s32 1, %s6160_s23 }
  0x10   : > { %s462_s27 = ssub.s32 %s6164_s24, %s6302_s3  ;;  %p475_p0 = scmp.ne.s32.totalorder %s6160_s23, %s6156_s22 }
  0x11   : > { %p463_p1 = scmp.eq.s32.totalorder %s462_s27, 0  ;;  %p476_p2 = scmp.eq.s32.totalorder %s6298_s2, 1 }
  0x12   : > { %p481_p3 = scmp.ne.s32.totalorder %s6156_s22, %s6152_s1  ;;  %p482_p4 = scmp.eq.s32.totalorder %s4691_s25, 1 }
  0x13   : > { %s6313_s28 = scalar_select %p463_p1, %s6160_s23, %s465_s26  }
  0x14   : > { %p6315_p5 = por %p476_p2, %p475_p0  ;;  %p6319_p6 = por %p482_p4, %p481_p3 }
  0x15   : > { %7390 = sst [smem:[#allocation9_spill]] %s6313_s28  ;;  %p4694_p7 = scmp.ge.s32.totalorder %s6164_s24, 1 }
  0x16   : > { %s7392_s29 = scalar_select %p6319_p6, 1, 0 }
  0x17   : > { %p564_p8 = scmp.lt.s32.totalorder %s6164_s24, 3 }
  0x18   : > { %7393 = sst [smem:[#allocation10_spill]] %s7392_s29 }
  0x19   : > { %p565_p9 = pnand %p4694_p7, %p564_p8 }
  0x1a   : > { %p621_p10 = scmp.lt.s32.totalorder (!%p565_p9), %s6298_s2, 1  ;;  %s7394_s21 = sld [smem:[#allocation12_spill]] (!%p565_p9) }
  0x1b   : > { %568 = sbr.rel (%p565_p9) target bundleno = 9995 (0x270b), region = 100  ;;  %s7395_s29 = sld [smem:[#allocation11_spill]] (!%p565_p9) }
  0x1c   : > { %s7399_s6 = sld [smem:[#allocation17_spill]] (!%p565_p9) }
  0x1d   : > { %s7400_s5 = sld [smem:[#allocation16_spill]] (!%p565_p9) }
  0x1e   : > { %s7401_s26 = sld [smem:[#allocation14_spill]] (!%p565_p9) }
  0x20   : > { %v6166_v0 = vmov 0   ;;  %v5923_v1 = vld [vmem:[%s7394_s21 + $0x38] sm:$0xff]   ;;  %s622_s25 = scalar_select %p621_p10, %s6298_s2, 1  ;;  %v5924_v2 = vld [vmem:[%s7394_s21 + $0x30] sm:$0xff]   ;;  %v5925_v4 = vld [vmem:[%s7394_s21 + $0x28] sm:$0xff]   ;;  %v6167_v5 = vmov 0.0   ;;  %v627_v12 = vlaneseq }
  0x21   : > { %5922 = vset.pattern.permute.xlu0 %v6166_v0  ;;  %722 = vmatprep.subr.bf16.mxu0 %v6166_v0  ;;  %v5926_v6 = vld [vmem:[%s7394_s21 + $0x20] sm:$0xff]   ;;  %v5927_v7 = vld [vmem:[%s7394_s21 + $0x18] sm:$0xff]   ;;  %v5928_v8 = vld [vmem:[%s7394_s21 + $0x10] sm:$0xff]   ;;  %vm718_vm4 = vcmask 130048   ;;  %v6168_v20 = vmov 1.0|1.0  }
  0x22   : > { %723 = vmatpush1.bf16.msra.mxu0 %v5923_v1  ;;  %s4696_s28 = sshll.u32 %s622_s25, 3  ;;  %5370 = vmatprep.subr.bf16.mxu1 %v6167_v5  ;;  %v5929_v9 = vld [vmem:[%s7394_s21 + $0x8] sm:$0xff]   ;;  %v5930_v10 = vld [vmem:[%s7394_s21] sm:$0xff]   ;;  %v6359_v13 = vand.u32 127, %v627_v12  ;;  %v6361_v14 = vshrl.u32 %v627_v12, 7  ;;  %vm766_vm6 = vcmask 523264  }
  0x23   : > { %724 = vmatprep.subr.bf16.mxu0 %v6166_v0  ;;  %s624_s1 = scalar_lea.vmem %s7395_s29, %s4696_s28  ;;  %v5931_v11 = vld [vmem:[%s7394_s21 + $0x40] sm:$0xff]   ;;  %s7396_s25 = sld [smem:[#allocation13_spill]]  ;;  %vm6169_vm7 = vmmov 0   ;;  %v5940_v49 = vld [vmem:[%s7399_s6 + $0x18] sm:$0xff]   ;;  %v5941_v50 = vld [vmem:[%s7399_s6 + $0x10] sm:$0xff]   ;;  %vm1101_vm8 = vcmask 1043456  }
  0x24   : > { %v626_v3 = vld [vmem:[%s624_s1] sm:$0xff]  ;;  %v629_v15 = vadd.s32 128, %v6359_v13  ;;  %v637_v16 = vadd.s32 128, %v6361_v14  ;;  %5378 = vmatprep.mubr.msk.bf16.mxu1 %vm6169_vm7, %v6167_v5  ;;  %s7397_s1 = sld [smem:[#allocation15_spill]]  ;;  %v5942_v51 = vld [vmem:[%s7399_s6 + $0x8] sm:$0xff]   ;;  %v5948_v57 = vld [vmem:[%s7399_s6 + $0x38] sm:$0xff]   ;;  %vm762_vm9 = vcmp.le.s32.totalorder %v6359_v13, %v6361_v14 }
  0x25   : > { %633 = vperm.xlu0 %5922, %v626_v3   ;;  %v4709_v39 = vld [vmem:[%s7359_s14] ss:$0 sm:$0xff]  ;;  %v5949_v58 = vld [vmem:[%s7399_s6 + $0x30] sm:$0xff]   ;;  %v5950_v59 = vld [vmem:[%s7399_s6 + $0x28] sm:$0xff]   ;;  %vm1084_vm10 = vcmask 64512   ;;  %s5166_s29 = sshll.u32 %s6298_s2, 7 }
  0x26   : > { %725 = vmatpush1.bf16.msra.mxu0 %v5924_v2  ;;  %vm639_vm0 = vcmp.eq.s32.totalorder %v629_v15, %v637_v16  ;;  %v4710_v41 = vld [vmem:[%s7360_s15] ss:$0 sm:$0xff]  ;;  %s6171_s2 = smov [#allocation2]  }
  0x27   : > { %726 = vmatprep.subr.bf16.mxu0 %v6166_v0  ;;  %v5943_v52 = vld [vmem:[%s7399_s6] sm:$0xff]  }
  0x28   : > { %v5951_v60 = vld [vmem:[%s7399_s6 + $0x20] sm:$0xff]  }
  0x29   : > { %v5932_v31 = vld [vmem:[%s7396_s25 + $0x18] sm:$0xff]   ;;  %v5933_v32 = vld [vmem:[%s7396_s25 + $0x10] sm:$0xff]   ;;  %v5934_v33 = vld [vmem:[%s7396_s25 + $0x8] sm:$0xff]  }
  0x2a   : > { %727 = vmatpush1.bf16.msra.mxu0 %v5925_v4  ;;  %5371 = vmatpush3.bf16.msra.mxu1 %v5932_v31  ;;  %v5935_v34 = vld [vmem:[%s7396_s25] sm:$0xff]   ;;  %s7398_s3 = smov %s7397_s1  ;;  %v5936_v44 = vld [vmem:[%s7397_s1 + $0x18] sm:$0xff]   ;;  %v5945_v54 = vld [vmem:[%s7396_s25 + $0x30] sm:$0xff]   ;;  %s618_s1 = sand.u32 1, %s6156_s22  }
  0x2b   : > { %728 = vmatprep.subr.bf16.mxu0 %v6166_v0  ;;  %5372 = vmatprep.subr.bf16.mxu1 %v6167_v5  ;;  %v5937_v46 = vld [vmem:[%s7398_s3 + $0x10] sm:$0xff]   ;;  %v5938_v47 = vld [vmem:[%s7398_s3 + $0x8] sm:$0xff]   ;;  %v5939_v48 = vld [vmem:[%s7398_s3] sm:$0xff]   ;;  %s4695_s20 = sshll.u32 %s618_s1, 3  ;;  %s4619_s24 = scalar_lea.sflag [#allocation3], %s618_s1 }
  0x2c   : > { %v5944_v53 = vld [vmem:[%s7396_s25 + $0x38] sm:$0xff]   ;;  %v5946_v55 = vld [vmem:[%s7396_s25 + $0x28] sm:$0xff]   ;;  %v5947_v56 = vld [vmem:[%s7396_s25 + $0x20] sm:$0xff]   ;;  %s620_s27 = scalar_lea.vmem [#allocation2], %s4695_s20  ;;  %s6108_s20 = sshll.u32 %s6171_s2, 4  ;;  %s6109_s20 = int_to_ptr.vmem [resolvable:$false] %s6108_s20 }
  0x2d   : > { %v4717_v1 = vld [vmem:[%s7400_s5] ss:$0 sm:$0xff]  ;;  %s4632_s30 = sshll.u32 %s620_s27, 4  ;;  %s6110_s0 = scalar_lea.vmem %s6109_s20, 256  ;;  %s7306_s30 = int_to_ptr.vmem [resolvable:$true] %s4632_s30 }
  0x2e   : > { %729 = vmatpush1.bf16.msra.mxu0 %v5926_v6  ;;  %5373 = vmatpush3.bf16.msra.mxu1 %v5933_v32  ;;  %v6170_v32 = vmov -1e+30   ;;  %s6104_s28 = scalar_lea.vmem %s7306_s30, 128  ;;  %p6111_p0 = scmp.lt.s32.totalorder %s7306_s30, %s6109_s20 }
  0x2f   : > { %730 = vmatprep.subr.bf16.mxu0 %v6166_v0  ;;  %5374 = vmatprep.subr.bf16.mxu1 %v6167_v5  ;;  %p6105_p11 = scmp.ne.s32.totalorder %s7306_s30, %s6104_s28  ;;  %p6112_p1 = scmp.lt.s32.totalorder %s6110_s0, %s6104_s28 }
  0x31   : > { %p6106_p12 = pnand %p6105_p11, %p6315_p5  ;;  %p6113_p2 = por %p6112_p1, %p6111_p0 }
  0x32   : > { %731 = vmatpush1.bf16.msra.mxu0 %v5927_v7  ;;  %5375 = vmatpush3.bf16.msra.mxu1 %v5934_v33  ;;  %v4711_v7 = vld [vmem:[%s7401_s26] ss:$0 sm:$0xff]  ;;  %v6506_v33 = vsel %vm762_vm9, 0.0, %v6170_v32 }
  0x33   : > { %732 = vmatprep.subr.bf16.mxu0 %v6166_v0  ;;  %5376 = vmatprep.subr.bf16.mxu1 %v6167_v5  ;;  %v5960_v32 = vld [vmem:[%s7398_s3 + $0x40] sm:$0xff]   ;;  %p6107_p13 = pneg %p6106_p12 }
  0x35   : > { %p6114_p3 = pnand %p6113_p2, %p6107_p13 }
  0x36   : > { %733 = vmatpush1.bf16.msra.mxu0 %v5928_v8  ;;  %5377 = vmatpush3.bf16.msra.mxu1 %v5935_v34 }
  0x37   : > { %734 = vmatprep.subr.bf16.mxu0 %v6166_v0  ;;  %5382 = vmatprep.subr.bf16.mxu1 %v6167_v5 }
  0x3a   : > { %735 = vmatpush1.bf16.msra.mxu0 %v5929_v9 }
  0x3b   : > { %736 = vmatprep.subr.bf16.mxu0 %v6166_v0 }
  0x3e   : > { %737 = vmatpush1.bf16.msra.mxu0 %v5930_v10 }
  0x3f   : > { %752 = vmatprep.subr.bf16.mxu0 %v6166_v0 }
  0x42   : > { %753 = vmatpush2.bf16.msra.mxu0 %v5931_v11 }
  0x43   : > { %5406 = vmatprep.subr.bf16.mxu0 %v6167_v5 }
  0xa0   : > { %v634_v17 = vpop.permute.xlu0 %633 }
  0xa1   : > { %vm636_vm1 = vcmp.eq.s32.totalorder %v629_v15, %v634_v17  ;;  %vm635_vm3 = vcmp.eq.s32.totalorder %v6359_v13, %v634_v17  ;;  %v4723_v15 = vld [vmem:[%s7352_s7] ss:$0 sm:$0xff] }
  0xa2   : > { %vm641_vm2 = vmor %vm636_vm1, %vm639_vm0 }
  0xa3   : > { %v643_v18 = vsel %vm641_vm2, 1.0, %v6167_v5  ;;  %vm4707_vm5 = vmpackc.low %vm635_vm3, %vm635_vm3 }
  0xa4   : > { %v645_v19 = vpack.c.bf16 %v643_v18, %v643_v18 }
  0xa6   : > { %4706 = vmatprep.mubr.msk.bf16.mxu0 %vm718_vm4, %v645_v19 }
  0xa7   : > { %4708 = vmatmul.mubr.msk.bf16.vlgmr.msra.gmra.mxu0 %vm4707_vm5, %v6168_v20 }
  0xa8   : > { %5408 = vmatprep.mubr.msk.bf16.mxu0 %vm6169_vm7, %v6167_v5 }
 0x167   : > { %v6368_v21 = vpop.f32.mrf.mxu0 }
 0x168   : > { %v767_v22 = vsel %vm766_vm6, %v6368_v21, 0.0 }
 0x169   : > { %768 = vadd.xlane.f32.xlu0 %v767_v22  ;;  %v758_v23 = vpop.f32.mrf.mxu0 }
 0x16b   : > { %v759_v24 = vpop.f32.mrf.mxu0 }
 0x16d   : > { %v760_v25 = vpop.f32.mrf.mxu0 }
 0x1f2   : > { %v769_v26 = vpop.xlane.xlu0 %768 }
 0x1f3   : > { %v771_v27 = vmul.f32 0.015625, %v769_v26 }
 0x1f5   : > { %v772_v28 = vsub.f32 %v6368_v21, %v771_v27 }
 0x1f7   : > { %v773_v29 = vmul.f32 %v772_v28, %v772_v28 }
 0x1f9   : > { %v774_v30 = vsel %vm766_vm6, %v773_v29, 0.0 }
 0x1fa   : > { %775 = vadd.xlane.f32.xlu1 %v774_v30 }
 0x283   : > { %v776_v35 = vpop.xlane.xlu1 %775 }
 0x284   : > { %v777_v36 = vmul.f32 0.015625, %v776_v35 }
 0x286   : > { %v778_v37 = vadd.f32 1e-05, %v777_v36 }
 0x288   : > { %6064 = vrsqrt.f32 %v778_v37 }
 0x295   : > { %v6065_v38 = vpop.eup %6064 }
 0x296   : > { %v780_v40 = vmul.f32 %v6065_v38, %v772_v28 }
 0x298   : > { %v787_v42 = vmul.f32 %v4709_v39, %v780_v40 }
 0x29a   : > { %v794_v43 = vadd.f32 %v4710_v41, %v787_v42 }
 0x29c   : > { %v6403_v45 = vpack.c.bf16 %v794_v43, %v794_v43 }
 0x29e   : > { %5379 = vmatmul.mubr.msk.bf16.vlgmr.msra.gmra.mxu1 %vm766_vm6, %v6403_v45 }
 0x29f   : > { %5383 = vmatpush3.bf16.msra.mxu1 %v5936_v44  ;;  %5390 = vmatprep.mubr.msk.bf16.mxu1 %vm6169_vm7, %v6167_v5 }
 0x2a0   : > { %5384 = vmatprep.subr.bf16.mxu1 %v6167_v5 }
 0x2a3   : > { %5385 = vmatpush3.bf16.msra.mxu1 %v5937_v46 }
 0x2a4   : > { %5386 = vmatprep.subr.bf16.mxu1 %v6167_v5 }
 0x2a7   : > { %5387 = vmatpush3.bf16.msra.mxu1 %v5938_v47  ;;  %v5952_v47 = vld [vmem:[%s7398_s3 + $0x38] sm:$0xff]  }
 0x2a8   : > { %5388 = vmatprep.subr.bf16.mxu1 %v6167_v5 }
 0x2ab   : > { %5389 = vmatpush3.bf16.msra.mxu1 %v5939_v48 }
 0x2ac   : > { %5394 = vmatprep.subr.bf16.mxu1 %v6167_v5 }
 0x2ae   : > { %5391 = vmatmul.mubr.msk.bf16.vlgmr.msra.gmra.mxu1 %vm766_vm6, %v6403_v45 }
 0x2af   : > { %5395 = vmatpush3.bf16.msra.mxu1 %v5940_v49  ;;  %5402 = vmatprep.mubr.msk.bf16.mxu1 %vm6169_vm7, %v6167_v5  ;;  %v5953_v49 = vld [vmem:[%s7398_s3 + $0x30] sm:$0xff]  }
 0x2b0   : > { %5396 = vmatprep.subr.bf16.mxu1 %v6167_v5 }
 0x2b3   : > { %5397 = vmatpush3.bf16.msra.mxu1 %v5941_v50  ;;  %v5954_v50 = vld [vmem:[%s7398_s3 + $0x28] sm:$0xff]  }
 0x2b4   : > { %5398 = vmatprep.subr.bf16.mxu1 %v6167_v5 }
 0x2b7   : > { %5399 = vmatpush3.bf16.msra.mxu1 %v5942_v51  ;;  %v5955_v51 = vld [vmem:[%s7398_s3 + $0x20] sm:$0xff]  }
 0x2b8   : > { %5400 = vmatprep.subr.bf16.mxu1 %v6167_v5 }
 0x2bb   : > { %5401 = vmatpush3.bf16.msra.mxu1 %v5943_v52 }
 0x2bc   : > { %5418 = vmatprep.subr.bf16.mxu1 %v6167_v5 }
 0x2be   : > { %5403 = vmatmul.mubr.msk.bf16.vlgmr.msra.gmra.mxu1 %vm766_vm6, %v6403_v45 }
 0x2bf   : > { %5419 = vmatpush3.bf16.msra.mxu1 %v5944_v53  ;;  %5426 = vmatprep.mubr.msk.bf16.mxu1 %vm6169_vm7, %v6167_v5 }
 0x2c0   : > { %5420 = vmatprep.subr.bf16.mxu1 %v6167_v5 }
 0x2c3   : > { %5421 = vmatpush3.bf16.msra.mxu1 %v5945_v54 }
 0x2c4   : > { %5422 = vmatprep.subr.bf16.mxu1 %v6167_v5 }
 0x2c7   : > { %5423 = vmatpush3.bf16.msra.mxu1 %v5946_v55 }
 0x2c8   : > { %5424 = vmatprep.subr.bf16.mxu1 %v6167_v5 }
 0x2cb   : > { %5425 = vmatpush3.bf16.msra.mxu1 %v5947_v56  ;;  %v4755_v56 = vld [vmem:[%s7400_s5 + $0x1] ss:$0 sm:$0xff] }
 0x2cc   : > { %5442 = vmatprep.subr.bf16.mxu1 %v6167_v5 }
 0x2ce   : > { %5427 = vmatmul.mubr.msk.bf16.vlgmr.msra.gmra.mxu1 %vm766_vm6, %v6403_v45 }
 0x2cf   : > { %5443 = vmatpush3.bf16.msra.mxu1 %v5948_v57  ;;  %5450 = vmatprep.mubr.msk.bf16.mxu1 %vm6169_vm7, %v6167_v5 }
 0x2d0   : > { %5444 = vmatprep.subr.bf16.mxu1 %v6167_v5 }
 0x2d3   : > { %5445 = vmatpush3.bf16.msra.mxu1 %v5949_v58 }
 0x2d4   : > { %5446 = vmatprep.subr.bf16.mxu1 %v6167_v5 }
 0x2d7   : > { %5447 = vmatpush3.bf16.msra.mxu1 %v5950_v59  ;;  %v4770_v59 = vld [vmem:[%s7352_s7 + $0x1] ss:$0 sm:$0xff] }
 0x2d8   : > { %5448 = vmatprep.subr.bf16.mxu1 %v6167_v5 }
 0x2db   : > { %5449 = vmatpush3.bf16.msra.mxu1 %v5951_v60 }
 0x2dc   : > { %5466 = vmatprep.subr.bf16.mxu1 %v6167_v5 }
 0x2de   : > { %5451 = vmatmul.mubr.msk.bf16.vlgmr.msra.gmra.mxu1 %vm766_vm6, %v6403_v45 }
 0x2df   : > { %5468 = vmatprep.mubr.msk.bf16.mxu1 %vm6169_vm7, %v6167_v5 }
 0x35e   : > { %v872_v61 = vpop.f32.mrf.mxu1 }
 0x35f   : > { %v873_v11 = vadd.f32 %v4711_v7, %v872_v61 }
 0x360   : > { %v5380_v62 = vpop.f32.mrf.mxu1 }
 0x361   : > { %v1036_v12 = vpack.c.bf16 %v873_v11, %v873_v11  ;;  %v4740_v62 = vld [vmem:[%s7401_s26 + $0x1] ss:$0 sm:$0xff] }
 0x362   : > { %v875_v63 = vpop.f32.mrf.mxu1 }
 0x364   : > { %v5381_v0 = vpop.f32.mrf.mxu1 }
 0x36e   : > { %v951_v2 = vpop.f32.mrf.mxu1 }
 0x36f   : > { %v952_v3 = vadd.f32 %v4717_v1, %v951_v2 }
 0x370   : > { %v5392_v4 = vpop.f32.mrf.mxu1 }
 0x371   : > { %v1037_v6 = vpack.c.bf16 %v952_v3, %v952_v3 }
 0x372   : > { %v954_v8 = vpop.f32.mrf.mxu1 }
 0x373   : > { %v1042_v9 = vsel %vm718_vm4, %v1037_v6, 0 }
 0x374   : > { %v5393_v10 = vpop.f32.mrf.mxu1  ;;  %5407 = vmatpush3.bf16.xpose.msra.mxu0 %v1042_v9 }
 0x375   : > { %5412 = vmatprep.subr.bf16.mxu0 %v6167_v5 }
 0x37b   : > { %5409 = vmatmul.mubr.msk.bf16.vlgmr.msra.gmra.mxu0 %vm718_vm4, %v1036_v12 }
 0x37c   : > { %5414 = vmatprep.mubr.msk.bf16.mxu0 %vm6169_vm7, %v6167_v5 }
 0x37e   : > { %v1030_v16 = vpop.f32.mrf.mxu1 }
 0x37f   : > { %v1031_v17 = vadd.f32 %v4723_v15, %v1030_v16 }
 0x380   : > { %v5404_v18 = vpop.f32.mrf.mxu1 }
 0x381   : > { %v1097_v19 = vpack.c.bf16 %v1031_v17, %v1031_v17 }
 0x382   : > { %v1033_v20 = vpop.f32.mrf.mxu1 }
 0x383   : > { %v1103_v22 = vsel %vm1101_vm8, %v1097_v19, 0 }
 0x384   : > { %v5405_v23 = vpop.f32.mrf.mxu1  ;;  %5413 = vmatpush3.bf16.msra.mxu0 %v1103_v22  ;;  %v5961_v22 = vld [vmem:[%s7353_s8 + $0x8] sm:$0xff]  }
 0x385   : > { %5430 = vmatprep.subr.bf16.mxu0 %v6167_v5  ;;  %5467 = vmatpush3.bf16.msra.mxu1 %v5961_v22 }
 0x386   : > { %5478 = vmatprep.subr.bf16.mxu1 %v6167_v5 }
 0x38e   : > { %v6502_v24 = vpop.f32.mrf.mxu1 }
 0x38f   : > { %v1224_v3 = vadd.f32 %v4740_v62, %v6502_v24  ;;  %v4793_v62 = vld [vmem:[%s7401_s26 + $0x2] ss:$0 sm:$0xff] }
 0x390   : > { %v5428_v25 = vpop.f32.mrf.mxu1 }
 0x391   : > { %v1391_v6 = vpack.c.bf16 %v1224_v3, %v1224_v3 }
 0x392   : > { %v1226_v26 = vpop.f32.mrf.mxu1 }
 0x393   : > { %v5956_v26 = vld [vmem:[%s7353_s8] sm:$0xff]  }
 0x394   : > { %v5429_v27 = vpop.f32.mrf.mxu1 }
 0x39e   : > { %v1385_v28 = vpop.f32.mrf.mxu1 }
 0x39f   : > { %v1386_v0 = vadd.f32 %v4770_v59, %v1385_v28  ;;  %v5957_v28 = vld [vmem:[%s7398_s3 + $0x58] sm:$0xff]  }
 0x3a0   : > { %v5452_v29 = vpop.f32.mrf.mxu1 }
 0x3a1   : > { %v1451_v4 = vpack.c.bf16 %v1386_v0, %v1386_v0 }
 0x3a2   : > { %v1388_v30 = vpop.f32.mrf.mxu1 }
 0x3a3   : > { %v1456_v7 = vsel %vm1101_vm8, %v1451_v4, 0  ;;  %v5958_v30 = vld [vmem:[%s7398_s3 + $0x50] sm:$0xff]  }
 0x3a4   : > { %v5453_v31 = vpop.f32.mrf.mxu1 }
 0x3a5   : > { %v5959_v31 = vld [vmem:[%s7398_s3 + $0x48] sm:$0xff]  }
 0x43b   : > { %v1078_v34 = vpop.f32.mrf.mxu0 }
 0x43c   : > { %v1079_v35 = vadd.f32 %v1078_v34, %v6506_v33 }
 0x43d   : > { %v5410_v36 = vpop.f32.mrf.mxu0 }
 0x43e   : > { %v1085_v37 = vsel %vm1084_vm10, %v1079_v35, -inf }
 0x43f   : > { %1086 = vmax.xlane.f32.xlu1 %v1085_v37  ;;  %v1081_v38 = vpop.f32.mrf.mxu0 }
 0x441   : > { %v5411_v39 = vpop.f32.mrf.mxu0 }
 0x442   : > { %v5963_v39 = vld [vmem:[%s7396_s25 + $0x50] sm:$0xff]  }
 0x4c8   : > { %v1087_v40 = vpop.xlane.xlu1 %1086 }
 0x4c9   : > { %v1088_v41 = vsub.f32 %v1079_v35, %v1087_v40  ;;  %v5962_v35 = vld [vmem:[%s7396_s25 + $0x58] sm:$0xff]  }
 0x4cb   : > { %v1089_v42 = vmul.f32 1.442695, %v1088_v41 }
 0x4cd   : > { %6066 = vpow2.f32 %v1089_v42  ;;  %v5964_v42 = vld [vmem:[%s7396_s25 + $0x48] sm:$0xff]  }
 0x4da   : > { %v6067_v43 = vpop.eup %6066 }
 0x4db   : > { %v1091_v13 = vsel %vm1084_vm10, %v6067_v43, 0.0 }
 0x4dc   : > { %1092 = vadd.xlane.f32.xlu1 %v1091_v13 }
 0x565   : > { %v1093_v14 = vpop.xlane.xlu1 %1092 }
 0x566   : > { %6068 = vrcp.f32 %v1093_v14  ;;  %v5965_v14 = vld [vmem:[%s7396_s25 + $0x40] sm:$0xff]  }
 0x573   : > { %v6069_v44 = vpop.eup %6068 }
 0x574   : > { %v1095_v46 = vmul.f32 %v6069_v44, %v6067_v43 }
 0x576   : > { %v1096_v48 = vpack.c.bf16 %v1095_v46, %v1095_v46  ;;  %v5966_v46 = vld [vmem:[%s7399_s6 + $0x58] sm:$0xff]  }
 0x578   : > { %5415 = vmatmul.mubr.msk.bf16.vlgmr.msra.gmra.mxu0 %vm1084_vm10, %v1096_v48  ;;  %v4808_v48 = vld [vmem:[%s7400_s5 + $0x2] ss:$0 sm:$0xff] }
 0x579   : > { %5431 = vmatpush3.bf16.msra.mxu0 %v5952_v47  ;;  %5438 = vmatprep.mubr.msk.bf16.mxu0 %vm6169_vm7, %v6167_v5  ;;  %v5967_v47 = vld [vmem:[%s7399_s6 + $0x50] sm:$0xff]  }
 0x57a   : > { %5432 = vmatprep.subr.bf16.mxu0 %v6167_v5 }
 0x57d   : > { %5433 = vmatpush3.bf16.msra.mxu0 %v5953_v49 }
 0x57e   : > { %5434 = vmatprep.subr.bf16.mxu0 %v6167_v5 }
 0x581   : > { %5435 = vmatpush3.bf16.msra.mxu0 %v5954_v50  ;;  %v5968_v50 = vld [vmem:[%s7399_s6 + $0x48] sm:$0xff]  }
 0x582   : > { %5436 = vmatprep.subr.bf16.mxu0 %v6167_v5 }
 0x585   : > { %5437 = vmatpush3.bf16.msra.mxu0 %v5955_v51 }
 0x586   : > { %5454 = vmatprep.subr.bf16.mxu0 %v6167_v5 }
 0x588   : > { %5439 = vmatmul.mubr.msk.bf16.vlgmr.msra.gmra.mxu0 %vm766_vm6, %v6403_v45 }
 0x589   : > { %5456 = vmatprep.mubr.msk.bf16.mxu0 %vm6169_vm7, %v6167_v5 }
 0x638   : > { %v1139_v52 = vpop.f32.mrf.mxu0 }
 0x639   : > { %v1145_v29 = vpack.c.bf16 %v1139_v52, %v1139_v52 }
 0x63a   : > { %v5416_v53 = vpop.f32.mrf.mxu0 }
 0x63c   : > { %v1142_v54 = vpop.f32.mrf.mxu0 }
 0x63e   : > { %v5417_v55 = vpop.f32.mrf.mxu0 }
 0x63f   : > { %v5969_v55 = vld [vmem:[%s7399_s6 + $0x40] sm:$0xff]  }
 0x648   : > { %v1304_v57 = vpop.f32.mrf.mxu0 }
 0x649   : > { %v1305_v58 = vadd.f32 %v4755_v56, %v1304_v57 }
 0x64a   : > { %v5440_v60 = vpop.f32.mrf.mxu0 }
 0x64b   : > { %v1392_v61 = vpack.c.bf16 %v1305_v58, %v1305_v58 }
 0x64c   : > { %v1307_v63 = vpop.f32.mrf.mxu0 }
 0x64d   : > { %v1397_v1 = vsel %vm718_vm4, %v1392_v61, 0 }
 0x64e   : > { %v5441_v2 = vpop.f32.mrf.mxu0  ;;  %5455 = vmatpush3.bf16.xpose.msra.mxu0 %v1397_v1 }
 0x64f   : > { %5460 = vmatprep.subr.bf16.mxu0 %v6167_v5 }
 0x655   : > { %5457 = vmatmul.mubr.msk.bf16.vlgmr.msra.gmra.mxu0 %vm718_vm4, %v1391_v6  ;;  %v4823_v6 = vld [vmem:[%s7352_s7 + $0x2] ss:$0 sm:$0xff] }
 0x656   : > { %5461 = vmatpush3.bf16.msra.mxu0 %v1456_v7  ;;  %5462 = vmatprep.mubr.msk.bf16.mxu0 %vm6169_vm7, %v6167_v5 }
 0x657   : > { %5472 = vmatprep.subr.bf16.mxu0 %v6167_v5 }
 0x715   : > { %v1433_v8 = vpop.f32.mrf.mxu0 }
 0x716   : > { %v1434_v9 = vadd.f32 %v1433_v8, %v6506_v33 }
 0x717   : > { %v5458_v10 = vpop.f32.mrf.mxu0 }
 0x718   : > { %v1439_v11 = vsel %vm1084_vm10, %v1434_v9, -inf }
 0x719   : > { %1440 = vmax.xlane.f32.xlu1 %v1439_v11  ;;  %v1436_v12 = vpop.f32.mrf.mxu0 }
 0x71b   : > { %v5459_v15 = vpop.f32.mrf.mxu0 }
 0x7a2   : > { %v1441_v16 = vpop.xlane.xlu1 %1440 }
 0x7a3   : > { %v1442_v17 = vsub.f32 %v1434_v9, %v1441_v16 }
 0x7a5   : > { %v1443_v18 = vmul.f32 1.442695, %v1442_v17 }
 0x7a7   : > { %6070 = vpow2.f32 %v1443_v18 }
 0x7b4   : > { %v6071_v19 = vpop.eup %6070 }
 0x7b5   : > { %v1445_v20 = vsel %vm1084_vm10, %v6071_v19, 0.0 }
 0x7b6   : > { %1446 = vadd.xlane.f32.xlu1 %v1445_v20 }
 0x83f   : > { %v1447_v23 = vpop.xlane.xlu1 %1446 }
 0x840   : > { %6072 = vrcp.f32 %v1447_v23 }
 0x84d   : > { %v6073_v24 = vpop.eup %6072 }
 0x84e   : > { %v1449_v25 = vmul.f32 %v6073_v24, %v6071_v19 }
 0x850   : > { %v1450_v27 = vpack.c.bf16 %v1449_v25, %v1449_v25 }
 0x852   : > { %5463 = vmatmul.mubr.msk.bf16.vlgmr.msra.gmra.mxu0 %vm1084_vm10, %v1450_v27 }
 0x853   : > { %5473 = vmatpush3.bf16.msra.mxu0 %v5956_v26  ;;  %5474 = vmatprep.mubr.msk.bf16.mxu0 %vm6169_vm7, %v6167_v5 }
 0x854   : > { %5490 = vmatprep.subr.bf16.mxu0 %v6167_v5 }
 0x85a   : > { %5475 = vmatmul.mubr.msk.bf16.vlgmr.msra.gmra.mxu0 %vm718_vm4, %v1145_v29 }
 0x85b   : > { %5491 = vmatpush3.bf16.msra.mxu0 %v5957_v28  ;;  %5498 = vmatprep.mubr.msk.bf16.mxu0 %vm6169_vm7, %v6167_v5  ;;  %v5978_v28 = vld [vmem:[%s7353_s8 + $0x10] sm:$0xff]  }
 0x85c   : > { %5492 = vmatprep.subr.bf16.mxu0 %v6167_v5 }
 0x85f   : > { %5493 = vmatpush3.bf16.msra.mxu0 %v5958_v30 }
 0x860   : > { %5494 = vmatprep.subr.bf16.mxu0 %v6167_v5 }
 0x863   : > { %5495 = vmatpush3.bf16.msra.mxu0 %v5959_v31 }
 0x864   : > { %5496 = vmatprep.subr.bf16.mxu0 %v6167_v5 }
 0x867   : > { %5497 = vmatpush3.bf16.msra.mxu0 %v5960_v32  ;;  %v5970_v32 = vld [vmem:[%s7396_s25 + $0x78] sm:$0xff]  }
 0x868   : > { %5514 = vmatprep.subr.bf16.mxu0 %v6167_v5 }
 0x86a   : > { %5499 = vmatmul.mubr.msk.bf16.vlgmr.msra.gmra.mxu0 %vm766_vm6, %v6403_v45 }
 0x86b   : > { %5516 = vmatprep.mubr.msk.bf16.mxu0 %vm6169_vm7, %v6167_v5 }
 0x912   : > { %v1492_v34 = vpop.f32.mrf.mxu0 }
 0x913   : > { %v1498_v36 = vpack.c.bf16 %v1492_v34, %v1492_v34 }
 0x914   : > { %v5464_v37 = vpop.f32.mrf.mxu0 }
 0x915   : > { %5469 = vmatmul.mubr.msk.bf16.vlgmr.msra.gmra.mxu1 %vm718_vm4, %v1498_v36  ;;  %v5972_v36 = vld [vmem:[%s7396_s25 + $0x68] sm:$0xff]   ;;  %v5973_v37 = vld [vmem:[%s7396_s25 + $0x60] sm:$0xff]  }
 0x916   : > { %5479 = vmatpush3.bf16.msra.mxu1 %v5962_v35  ;;  %v1495_v38 = vpop.f32.mrf.mxu0  ;;  %5486 = vmatprep.mubr.msk.bf16.mxu1 %vm6169_vm7, %v6167_v5  ;;  %v5971_v35 = vld [vmem:[%s7396_s25 + $0x70] sm:$0xff]  }
 0x917   : > { %5480 = vmatprep.subr.bf16.mxu1 %v6167_v5  ;;  %v5974_v38 = vld [vmem:[%s7399_s6 + $0x78] sm:$0xff]  }
 0x918   : > { %v5465_v40 = vpop.f32.mrf.mxu0 }
 0x919   : > { %v5976_v40 = vld [vmem:[%s7399_s6 + $0x68] sm:$0xff]  }
 0x91a   : > { %5481 = vmatpush3.bf16.msra.mxu1 %v5963_v39  ;;  %v6598_v41 = vpop.f32.mrf.mxu0  ;;  %v5975_v39 = vld [vmem:[%s7399_s6 + $0x70] sm:$0xff]  }
 0x91b   : > { %5482 = vmatprep.subr.bf16.mxu1 %v6167_v5 }
 0x91c   : > { %v5476_v43 = vpop.f32.mrf.mxu0 }
 0x91e   : > { %5483 = vmatpush3.bf16.msra.mxu1 %v5964_v42  ;;  %v1597_v13 = vpop.f32.mrf.mxu0  ;;  %v5977_v42 = vld [vmem:[%s7399_s6 + $0x60] sm:$0xff]  }
 0x91f   : > { %5484 = vmatprep.subr.bf16.mxu1 %v6167_v5  ;;  %v5979_v13 = vld [vmem:[%s7398_s3 + $0x78] sm:$0xff]  }
 0x920   : > { %v5477_v44 = vpop.f32.mrf.mxu0 }
 0x922   : > { %5485 = vmatpush3.bf16.msra.mxu1 %v5965_v14 }
 0x923   : > { %5502 = vmatprep.subr.bf16.mxu1 %v6167_v5 }
 0x925   : > { %5487 = vmatmul.mubr.msk.bf16.vlgmr.msra.gmra.mxu1 %vm766_vm6, %v6403_v45 }
 0x926   : > { %5503 = vmatpush3.bf16.msra.mxu1 %v5966_v46  ;;  %5510 = vmatprep.mubr.msk.bf16.mxu1 %vm6169_vm7, %v6167_v5 }
 0x927   : > { %5504 = vmatprep.subr.bf16.mxu1 %v6167_v5 }
 0x92a   : > { %v1756_v49 = vpop.f32.mrf.mxu0  ;;  %5505 = vmatpush3.bf16.msra.mxu1 %v5967_v47  ;;  %v5980_v47 = vld [vmem:[%s7398_s3 + $0x70] sm:$0xff]  }
 0x92b   : > { %v1757_v51 = vadd.f32 %v4808_v48, %v1756_v49  ;;  %5506 = vmatprep.subr.bf16.mxu1 %v6167_v5  ;;  %v5981_v49 = vld [vmem:[%s7398_s3 + $0x68] sm:$0xff]  }
 0x92c   : > { %v5500_v52 = vpop.f32.mrf.mxu0 }
 0x92d   : > { %v1844_v53 = vpack.c.bf16 %v1757_v51, %v1757_v51 }
 0x92e   : > { %v1759_v54 = vpop.f32.mrf.mxu0  ;;  %5507 = vmatpush3.bf16.msra.mxu1 %v5968_v50  ;;  %v5982_v50 = vld [vmem:[%s7398_s3 + $0x60] sm:$0xff]  }
 0x92f   : > { %v1849_v56 = vsel %vm718_vm4, %v1844_v53, 0  ;;  %5508 = vmatprep.subr.bf16.mxu1 %v6167_v5 }
 0x930   : > { %v5501_v57 = vpop.f32.mrf.mxu0  ;;  %5515 = vmatpush3.bf16.xpose.msra.mxu0 %v1849_v56 }
 0x931   : > { %5520 = vmatprep.subr.bf16.mxu0 %v6167_v5 }
 0x932   : > { %5509 = vmatpush3.bf16.msra.mxu1 %v5969_v55 }
 0x933   : > { %5526 = vmatprep.subr.bf16.mxu1 %v6167_v5 }
 0x935   : > { %5511 = vmatmul.mubr.msk.bf16.vlgmr.msra.gmra.mxu1 %vm766_vm6, %v6403_v45 }
 0x936   : > { %5528 = vmatprep.mubr.msk.bf16.mxu1 %vm6169_vm7, %v6167_v5  ;;  %5527 = vmatpush3.bf16.msra.mxu1 %v5978_v28 }
 0x937   : > { %5544 = vmatprep.subr.bf16.mxu1 %v6167_v5 }
 0x9d5   : > { %v6638_v58 = vpop.f32.mrf.mxu1 }
 0x9d7   : > { %v5470_v59 = vpop.f32.mrf.mxu1 }
 0x9d9   : > { %v1548_v60 = vpop.f32.mrf.mxu1 }
 0x9da   : > { %v1595_v60 = vadd.f32 %v6598_v41, %v6638_v58  ;;  %v4844_v41 = vld [vmem:[%s7401_s26 + $0x3] ss:$0 sm:$0xff] }
 0x9db   : > { %v5471_v61 = vpop.f32.mrf.mxu1 }
 0x9e5   : > { %v1675_v63 = vpop.f32.mrf.mxu1 }
 0x9e6   : > { %v1676_v0 = vadd.f32 %v4793_v62, %v1675_v63 }
 0x9e7   : > { %v5488_v1 = vpop.f32.mrf.mxu1 }
 0x9e8   : > { %v1843_v2 = vpack.c.bf16 %v1676_v0, %v1676_v0 }
 0x9e9   : > { %v1678_v3 = vpop.f32.mrf.mxu1 }
 0x9ea   : > { %5517 = vmatmul.mubr.msk.bf16.vlgmr.msra.gmra.mxu0 %vm718_vm4, %v1843_v2 }
 0x9eb   : > { %v5489_v4 = vpop.f32.mrf.mxu1  ;;  %5522 = vmatprep.mubr.msk.bf16.mxu0 %vm6169_vm7, %v6167_v5 }
 0x9ec   : > { %v4874_v4 = vld [vmem:[%s7352_s7 + $0x3] ss:$0 sm:$0xff] }
 0x9f5   : > { %v1837_v7 = vpop.f32.mrf.mxu1 }
 0x9f6   : > { %v1838_v8 = vadd.f32 %v4823_v6, %v1837_v7 }
 0x9f7   : > { %v5512_v9 = vpop.f32.mrf.mxu1 }
 0x9f8   : > { %v1903_v10 = vpack.c.bf16 %v1838_v8, %v1838_v8 }
 0x9f9   : > { %v1840_v11 = vpop.f32.mrf.mxu1 }
 0x9fa   : > { %v1908_v12 = vsel %vm1101_vm8, %v1903_v10, 0 }
 0x9fb   : > { %v5513_v15 = vpop.f32.mrf.mxu1  ;;  %5521 = vmatpush3.bf16.msra.mxu0 %v1908_v12 }
 0x9fc   : > { %5532 = vmatprep.subr.bf16.mxu0 %v6167_v5 }
 0xaaa   : > { %v1885_v16 = vpop.f32.mrf.mxu0 }
 0xaab   : > { %v1886_v17 = vadd.f32 %v1885_v16, %v6506_v33 }
 0xaac   : > { %v5518_v18 = vpop.f32.mrf.mxu0 }
 0xaad   : > { %v1891_v19 = vsel %vm1084_vm10, %v1886_v17, -inf }
 0xaae   : > { %1892 = vmax.xlane.f32.xlu1 %v1891_v19  ;;  %v1888_v20 = vpop.f32.mrf.mxu0 }
 0xab0   : > { %v5519_v22 = vpop.f32.mrf.mxu0 }
 0xb37   : > { %v1893_v23 = vpop.xlane.xlu1 %1892 }
 0xb38   : > { %v1894_v24 = vsub.f32 %v1886_v17, %v1893_v23 }
 0xb3a   : > { %v1895_v25 = vmul.f32 1.442695, %v1894_v24 }
 0xb3c   : > { %6074 = vpow2.f32 %v1895_v25 }
 0xb49   : > { %v6075_v26 = vpop.eup %6074 }
 0xb4a   : > { %v1897_v27 = vsel %vm1084_vm10, %v6075_v26, 0.0 }
 0xb4b   : > { %1898 = vadd.xlane.f32.xlu1 %v1897_v27 }
 0xbd4   : > { %v1899_v29 = vpop.xlane.xlu1 %1898 }
 0xbd5   : > { %6076 = vrcp.f32 %v1899_v29  ;;  %v5983_v29 = vld [vmem:[%s7353_s8 + $0x18] sm:$0xff]  }
 0xbe2   : > { %v6077_v30 = vpop.eup %6076 }
 0xbe3   : > { %v1901_v31 = vmul.f32 %v6077_v30, %v6075_v26 }
 0xbe5   : > { %v1902_v34 = vpack.c.bf16 %v1901_v31, %v1901_v31 }
 0xbe7   : > { %5523 = vmatmul.mubr.msk.bf16.vlgmr.msra.gmra.mxu0 %vm1084_vm10, %v1902_v34 }
 0xbe8   : > { %5533 = vmatpush3.bf16.msra.mxu0 %v5970_v32  ;;  %5540 = vmatprep.mubr.msk.bf16.mxu0 %vm6169_vm7, %v6167_v5 }
 0xbe9   : > { %5534 = vmatprep.subr.bf16.mxu0 %v6167_v5 }
 0xbec   : > { %5535 = vmatpush3.bf16.msra.mxu0 %v5971_v35 }
 0xbed   : > { %5536 = vmatprep.subr.bf16.mxu0 %v6167_v5 }
 0xbf0   : > { %5537 = vmatpush3.bf16.msra.mxu0 %v5972_v36 }
 0xbf1   : > { %5538 = vmatprep.subr.bf16.mxu0 %v6167_v5 }
 0xbf4   : > { %5539 = vmatpush3.bf16.msra.mxu0 %v5973_v37 }
 0xbf5   : > { %5556 = vmatprep.subr.bf16.mxu0 %v6167_v5 }
 0xbf7   : > { %5541 = vmatmul.mubr.msk.bf16.vlgmr.msra.gmra.mxu0 %vm766_vm6, %v6403_v45 }
 0xbf8   : > { %5557 = vmatpush3.bf16.msra.mxu0 %v5974_v38  ;;  %5564 = vmatprep.mubr.msk.bf16.mxu0 %vm6169_vm7, %v6167_v5 }
 0xbf9   : > { %5558 = vmatprep.subr.bf16.mxu0 %v6167_v5 }
 0xbfc   : > { %5559 = vmatpush3.bf16.msra.mxu0 %v5975_v39 }
 0xbfd   : > { %5560 = vmatprep.subr.bf16.mxu0 %v6167_v5 }
 0xc00   : > { %5561 = vmatpush3.bf16.msra.mxu0 %v5976_v40 }
 0xc01   : > { %5562 = vmatprep.subr.bf16.mxu0 %v6167_v5 }
 0xc04   : > { %5563 = vmatpush3.bf16.msra.mxu0 %v5977_v42  ;;  %v4886_v42 = vld [vmem:[%s7354_s9] ss:$0 sm:$0xff] }
 0xc05   : > { %5580 = vmatprep.subr.bf16.mxu0 %v6167_v5 }
 0xc07   : > { %5565 = vmatmul.mubr.msk.bf16.vlgmr.msra.gmra.mxu0 %vm766_vm6, %v6403_v45 }
 0xc08   : > { %5582 = vmatprep.mubr.msk.bf16.mxu0 %vm6169_vm7, %v6167_v5  ;;  %5581 = vmatpush3.bf16.msra.mxu0 %v5983_v29 }
 0xc09   : > { %5598 = vmatprep.subr.bf16.mxu0 %v6167_v5 }
 0xca7   : > { %v1944_v43 = vpop.f32.mrf.mxu0 }
 0xca8   : > { %v1950_v14 = vpack.c.bf16 %v1944_v43, %v1944_v43 }
 0xca9   : > { %v5524_v44 = vpop.f32.mrf.mxu0 }
 0xcaa   : > { %5529 = vmatmul.mubr.msk.bf16.vlgmr.msra.gmra.mxu1 %vm718_vm4, %v1950_v14 }
 0xcab   : > { %5545 = vmatpush3.bf16.msra.mxu1 %v5979_v13  ;;  %v1947_v46 = vpop.f32.mrf.mxu0  ;;  %5552 = vmatprep.mubr.msk.bf16.mxu1 %vm6169_vm7, %v6167_v5 }
 0xcac   : > { %5546 = vmatprep.subr.bf16.mxu1 %v6167_v5 }
 0xcad   : > { %v5525_v48 = vpop.f32.mrf.mxu0 }
 0xcaf   : > { %5547 = vmatpush3.bf16.msra.mxu1 %v5980_v47 }
 0xcb0   : > { %5548 = vmatprep.subr.bf16.mxu1 %v6167_v5 }
 0xcb3   : > { %5549 = vmatpush3.bf16.msra.mxu1 %v5981_v49 }
 0xcb4   : > { %5550 = vmatprep.subr.bf16.mxu1 %v6167_v5 }
 0xcb7   : > { %v2079_v51 = vpop.f32.mrf.mxu0  ;;  %5551 = vmatpush3.bf16.msra.mxu1 %v5982_v50 }
 0xcb8   : > { %5568 = vmatprep.subr.bf16.mxu1 %v6167_v5  ;;  %v2080_v11 = vadd.f32 %v4844_v41, %v2079_v51 }
 0xcb9   : > { %v5542_v52 = vpop.f32.mrf.mxu0 }
 0xcba   : > { %5553 = vmatmul.mubr.msk.bf16.vlgmr.msra.gmra.mxu1 %vm766_vm6, %v6403_v45  ;;  %v4859_v45 = vld [vmem:[%s7400_s5 + $0x3] ss:$0 sm:$0xff]  ;;  %v2247_v15 = vpack.c.bf16 %v2080_v11, %v2080_v11 }
 0xcbb   : > { %v2082_v53 = vpop.f32.mrf.mxu0  ;;  %5570 = vmatprep.mubr.msk.bf16.mxu1 %vm6169_vm7, %v6167_v5 }
 0xcbd   : > { %v5543_v54 = vpop.f32.mrf.mxu0 }
 0xcbe   : > { %v5984_v54 = vld [vmem:[%s7355_s10 + $0x18] sm:$0xff]  }
 0xcc7   : > { %v2241_v55 = vpop.f32.mrf.mxu0 }
 0xcc8   : > { %v2242_v8 = vadd.f32 %v4874_v4, %v2241_v55  ;;  %v5986_v55 = vld [vmem:[%s7355_s10 + $0x8] sm:$0xff]  }
 0xcc9   : > { %v5566_v56 = vpop.f32.mrf.mxu0 }
 0xcca   : > { %v2307_v12 = vpack.c.bf16 %v2242_v8, %v2242_v8  ;;  %v5987_v56 = vld [vmem:[%s7355_s10] sm:$0xff]   ;;  %v5994_v8 = vld [vmem:[%s7357_s12 + $0x8] sm:$0xff]  }
 0xccb   : > { %v2244_v57 = vpop.f32.mrf.mxu0 }
 0xccc   : > { %v2312_v16 = vsel %vm1101_vm8, %v2307_v12, 0  ;;  %v5988_v57 = vld [vmem:[%s7357_s12 + $0x38] sm:$0xff]  }
 0xccd   : > { %v5567_v59 = vpop.f32.mrf.mxu0 }
 0xcce   : > { %v5989_v59 = vld [vmem:[%s7357_s12 + $0x30] sm:$0xff]  }
 0xd6a   : > { %v1997_v61 = vpop.f32.mrf.mxu1 }
 0xd6b   : > { %v2003_v62 = vadd.f32 %v1997_v61, %v1595_v60  ;;  %v5990_v60 = vld [vmem:[%s7357_s12 + $0x28] sm:$0xff]   ;;  %v5991_v61 = vld [vmem:[%s7357_s12 + $0x20] sm:$0xff]  }
 0xd6c   : > { %v5530_v63 = vpop.f32.mrf.mxu1 }
 0xd6d   : > { %v5993_v63 = vld [vmem:[%s7357_s12 + $0x10] sm:$0xff]  }
 0xd6e   : > { %v2000_v0 = vpop.f32.mrf.mxu1 }
 0xd70   : > { %v5531_v1 = vpop.f32.mrf.mxu1 }
 0xd7a   : > { %v2160_v2 = vpop.f32.mrf.mxu1 }
 0xd7b   : > { %v2161_v3 = vadd.f32 %v4859_v45, %v2160_v2 }
 0xd7c   : > { %v5554_v6 = vpop.f32.mrf.mxu1 }
 0xd7d   : > { %v2248_v7 = vpack.c.bf16 %v2161_v3, %v2161_v3  ;;  %v4887_v3 = vld [vmem:[%s7361_s16] ss:$0 sm:$0xff] }
 0xd7e   : > { %v2163_v58 = vpop.f32.mrf.mxu1  ;;  %v4888_v6 = vld [vmem:[%s7362_s17] ss:$0 sm:$0xff] }
 0xd7f   : > { %v2253_v9 = vsel %vm718_vm4, %v2248_v7, 0 }
 0xd80   : > { %v5555_v10 = vpop.f32.mrf.mxu1  ;;  %5569 = vmatpush3.bf16.xpose.msra.mxu1 %v2253_v9  ;;  %v5995_v9 = vld [vmem:[%s7357_s12] sm:$0xff]  }
 0xd81   : > { %5574 = vmatprep.subr.bf16.mxu1 %v6167_v5  ;;  %v4889_v10 = vld [vmem:[%s7356_s11] ss:$0 sm:$0xff] }
 0xd87   : > { %5571 = vmatmul.mubr.msk.bf16.vlgmr.msra.gmra.mxu1 %vm718_vm4, %v2247_v15 }
 0xd88   : > { %5575 = vmatpush3.bf16.msra.mxu1 %v2312_v16  ;;  %5576 = vmatprep.mubr.msk.bf16.mxu1 %vm6169_vm7, %v6167_v5 }
 0xd89   : > { %5586 = vmatprep.subr.bf16.mxu1 %v6167_v5 }
 0xe47   : > { %v2289_v17 = vpop.f32.mrf.mxu1 }
 0xe48   : > { %v2290_v18 = vadd.f32 %v2289_v17, %v6506_v33 }
 0xe49   : > { %v5572_v19 = vpop.f32.mrf.mxu1 }
 0xe4a   : > { %v2295_v20 = vsel %vm1084_vm10, %v2290_v18, -inf }
 0xe4b   : > { %2296 = vmax.xlane.f32.xlu1 %v2295_v20  ;;  %v2292_v22 = vpop.f32.mrf.mxu1  ;;  %v4895_v20 = vld [vmem:[%s7358_s13] ss:$0 sm:$0xff] }
 0xe4d   : > { %v5573_v23 = vpop.f32.mrf.mxu1 }
 0xed4   : > { %v2297_v24 = vpop.xlane.xlu1 %2296 }
 0xed5   : > { %v2298_v25 = vsub.f32 %v2290_v18, %v2297_v24 }
 0xed7   : > { %v2299_v26 = vmul.f32 1.442695, %v2298_v25 }
 0xed9   : > { %6078 = vpow2.f32 %v2299_v26 }
 0xee6   : > { %v6079_v27 = vpop.eup %6078 }
 0xee7   : > { %v2301_v28 = vsel %vm1084_vm10, %v6079_v27, 0.0 }
 0xee8   : > { %2302 = vadd.xlane.f32.xlu1 %v2301_v28 }
 0xf71   : > { %v2303_v30 = vpop.xlane.xlu1 %2302 }
 0xf72   : > { %6080 = vrcp.f32 %v2303_v30 }
 0xf7f   : > { %v6081_v31 = vpop.eup %6080 }
 0xf80   : > { %v2305_v32 = vmul.f32 %v6081_v31, %v6079_v27 }
 0xf82   : > { %v2306_v34 = vpack.c.bf16 %v2305_v32, %v2305_v32 }
 0xf84   : > { %5577 = vmatmul.mubr.msk.bf16.vlgmr.msra.gmra.mxu1 %vm1084_vm10, %v2306_v34 }
 0xf85   : > { %5594 = vmatprep.mubr.msk.bf16.mxu1 %vm6169_vm7, %v6167_v5  ;;  %5587 = vmatpush3.bf16.msra.mxu1 %v5984_v54  ;;  %v6005_v54 = vld [vmem:[%s7398_s3 + $0x90] sm:$0xff]  }
 0xf86   : > { %5588 = vmatprep.subr.bf16.mxu1 %v6167_v5 }
0x1044   : > { %v2348_v35 = vpop.f32.mrf.mxu1 }
0x1045   : > { %v2354_v36 = vpack.c.bf16 %v2348_v35, %v2348_v35  ;;  %v5996_v35 = vld [vmem:[%s7396_s25 + $0x98] sm:$0xff]  }
0x1046   : > { %v5578_v37 = vpop.f32.mrf.mxu1 }
0x1047   : > { %5583 = vmatmul.mubr.msk.bf16.vlgmr.msra.gmra.mxu0 %vm718_vm4, %v2354_v36  ;;  %v5997_v36 = vld [vmem:[%s7399_s6 + $0x98] sm:$0xff]   ;;  %v5998_v37 = vld [vmem:[%s7396_s25 + $0x90] sm:$0xff]  }
0x1048   : > { %v2351_v38 = vpop.f32.mrf.mxu1  ;;  %5614 = vmatprep.mubr.msk.bf16.mxu0 %vm6169_vm7, %v6167_v5  ;;  %5599 = vmatpush3.bf16.msra.mxu0 %v5988_v57 }
0x1049   : > { %5600 = vmatprep.subr.bf16.mxu0 %v6167_v5  ;;  %v5999_v38 = vld [vmem:[%s7399_s6 + $0x90] sm:$0xff]  }
0x104a   : > { %v5579_v39 = vpop.f32.mrf.mxu1 }
0x104b   : > { %v6000_v39 = vld [vmem:[%s7396_s25 + $0x88] sm:$0xff]  }
0x104c   : > { %5601 = vmatpush3.bf16.msra.mxu0 %v5989_v59 }
0x104d   : > { %5602 = vmatprep.subr.bf16.mxu0 %v6167_v5 }
0x1050   : > { %5603 = vmatpush3.bf16.msra.mxu0 %v5990_v60 }
0x1051   : > { %5604 = vmatprep.subr.bf16.mxu0 %v6167_v5 }
0x1054   : > { %5605 = vmatpush3.bf16.msra.mxu0 %v5991_v61 }
0x1055   : > { %5606 = vmatprep.subr.bf16.mxu0 %v6167_v5 }
0x1107   : > { %v2401_v40 = vpop.f32.mrf.mxu0 }
0x1108   : > { %v2407_v43 = vadd.f32 %v2401_v40, %v2003_v62  ;;  %v5992_v62 = vld [vmem:[%s7357_s12 + $0x18] sm:$0xff]   ;;  %v6001_v40 = vld [vmem:[%s7399_s6 + $0x88] sm:$0xff]  }
0x1109   : > { %v5584_v13 = vpop.f32.mrf.mxu0  ;;  %5607 = vmatpush3.bf16.msra.mxu0 %v5992_v62 }
0x110a   : > { %v2415_v14 = vadd.f32 %v4886_v42, %v2407_v43  ;;  %5608 = vmatprep.subr.bf16.mxu0 %v6167_v5  ;;  %v6002_v42 = vld [vmem:[%s7396_s25 + $0x80] sm:$0xff]  }
0x110b   : > { %v2404_v44 = vpop.f32.mrf.mxu0  ;;  %v6003_v43 = vld [vmem:[%s7399_s6 + $0x80] sm:$0xff]  }
0x110c   : > { %v6759_v46 = vadd.f32 %v2415_v14, %v6368_v21  ;;  %v5985_v21 = vld [vmem:[%s7355_s10 + $0x10] sm:$0xff]  }
0x110d   : > { %v5585_v47 = vpop.f32.mrf.mxu0  ;;  %5589 = vmatpush3.bf16.msra.mxu1 %v5985_v21  ;;  %5609 = vmatpush3.bf16.msra.mxu0 %v5993_v63  ;;  %v6006_v21 = vld [vmem:[%s7398_s3 + $0x88] sm:$0xff]  }
0x110e   : > { %v2419_v48 = vsel %vm766_vm6, %v6759_v46, 0.0  ;;  %5590 = vmatprep.subr.bf16.mxu1 %v6167_v5  ;;  %5610 = vmatprep.subr.bf16.mxu0 %v6167_v5  ;;  %v4906_v47 = vld [vmem:[%s7359_s14 + $0x1] ss:$0 sm:$0xff] }
0x110f   : > { %2420 = vadd.xlane.f32.xlu0 %v2419_v48 }
0x1111   : > { %5591 = vmatpush3.bf16.msra.mxu1 %v5986_v55  ;;  %5611 = vmatpush3.bf16.msra.mxu0 %v5994_v8  ;;  %v6007_v55 = vld [vmem:[%s7398_s3 + $0x80] sm:$0xff]  }
0x1112   : > { %5592 = vmatprep.subr.bf16.mxu1 %v6167_v5  ;;  %5612 = vmatprep.subr.bf16.mxu0 %v6167_v5  ;;  %v4917_v8 = vld [vmem:[%s7401_s26 + $0x4] ss:$0 sm:$0xff] }
0x1115   : > { %5593 = vmatpush3.bf16.msra.mxu1 %v5987_v56  ;;  %5613 = vmatpush3.bf16.msra.mxu0 %v5995_v9  ;;  %v4947_v56 = vld [vmem:[%s7352_s7 + $0x4] ss:$0 sm:$0xff] }
0x1116   : > { %5618 = vmatprep.subr.bf16.mxu1 %v6167_v5  ;;  %5642 = vmatprep.subr.bf16.mxu0 %v6167_v5 }
0x1198   : > { %v2421_v49 = vpop.xlane.xlu0 %2420 }
0x1199   : > { %v2422_v50 = vmul.f32 0.015625, %v2421_v49  ;;  %v4907_v49 = vld [vmem:[%s7360_s15 + $0x1] ss:$0 sm:$0xff] }
0x119b   : > { %v2423_v51 = vsub.f32 %v6759_v46, %v2422_v50 }
0x119d   : > { %v2424_v52 = vmul.f32 %v2423_v51, %v2423_v51 }
0x119f   : > { %v2425_v53 = vsel %vm766_vm6, %v2424_v52, 0.0  ;;  %v6004_v52 = vld [vmem:[%s7398_s3 + $0x98] sm:$0xff]  }
0x11a0   : > { %2426 = vadd.xlane.f32.xlu1 %v2425_v53 }
0x1229   : > { %v2427_v0 = vpop.xlane.xlu1 %2426 }
0x122a   : > { %v2428_v1 = vmul.f32 0.015625, %v2427_v0 }
0x122c   : > { %v2429_v45 = vadd.f32 1e-05, %v2428_v1 }
0x122e   : > { %6082 = vrsqrt.f32 %v2429_v45 }
0x123b   : > { %v6083_v2 = vpop.eup %6082 }
0x123c   : > { %v2431_v4 = vmul.f32 %v6083_v2, %v2423_v51 }
0x123e   : > { %v2438_v7 = vmul.f32 %v4887_v3, %v2431_v4  ;;  %v4932_v4 = vld [vmem:[%s7400_s5 + $0x4] ss:$0 sm:$0xff] }
0x1240   : > { %v2445_v41 = vadd.f32 %v4888_v6, %v2438_v7 }
0x1242   : > { %v2446_v58 = vpack.c.bf16 %v2445_v41, %v2445_v41 }
0x1244   : > { %5595 = vmatmul.mubr.msk.bf16.vlgmr.msra.gmra.mxu1 %vm766_vm6, %v2446_v58 }
0x1245   : > { %5626 = vmatprep.mubr.msk.bf16.mxu1 %vm6169_vm7, %v6167_v5  ;;  %5619 = vmatpush3.bf16.msra.mxu1 %v5996_v35 }
0x1246   : > { %5620 = vmatprep.subr.bf16.mxu1 %v6167_v5 }
0x1249   : > { %5621 = vmatpush3.bf16.msra.mxu1 %v5998_v37 }
0x124a   : > { %5622 = vmatprep.subr.bf16.mxu1 %v6167_v5 }
0x124d   : > { %5623 = vmatpush3.bf16.msra.mxu1 %v6000_v39 }
0x124e   : > { %5624 = vmatprep.subr.bf16.mxu1 %v6167_v5 }
0x1251   : > { %5625 = vmatpush3.bf16.msra.mxu1 %v6002_v42 }
0x1252   : > { %5630 = vmatprep.subr.bf16.mxu1 %v6167_v5 }
0x1304   : > { %v2523_v11 = vpop.f32.mrf.mxu1 }
0x1305   : > { %v2524_v12 = vadd.f32 %v4889_v10, %v2523_v11 }
0x1306   : > { %v5596_v15 = vpop.f32.mrf.mxu1 }
0x1307   : > { %v2529_v16 = vmax.f32 %v2524_v12, 0.0  ;;  %v6008_v15 = vld [vmem:[%s7396_s25 + $0xb8] sm:$0xff]  }
0x1308   : > { %v2526_v17 = vpop.f32.mrf.mxu1 }
0x1309   : > { %v2530_v18 = vpack.c.bf16 %v2529_v16, %v2529_v16  ;;  %v6009_v17 = vld [vmem:[%s7396_s25 + $0xb0] sm:$0xff]  }
0x130a   : > { %v5597_v19 = vpop.f32.mrf.mxu1 }
0x130b   : > { %5615 = vmatmul.mubr.bf16.vlgmr.msra.gmra.mxu0 %v2530_v18  ;;  %v6010_v18 = vld [vmem:[%s7396_s25 + $0xa8] sm:$0xff]   ;;  %v6011_v19 = vld [vmem:[%s7396_s25 + $0xa0] sm:$0xff]  }
0x130c   : > { %5650 = vmatprep.mubr.msk.bf16.mxu0 %vm6169_vm7, %v6167_v5  ;;  %5643 = vmatpush3.bf16.msra.mxu0 %v5997_v36 }
0x130d   : > { %5644 = vmatprep.subr.bf16.mxu0 %v6167_v5 }
0x1310   : > { %5645 = vmatpush3.bf16.msra.mxu0 %v5999_v38 }
0x1311   : > { %5646 = vmatprep.subr.bf16.mxu0 %v6167_v5 }
0x1314   : > { %5647 = vmatpush3.bf16.msra.mxu0 %v6001_v40 }
0x1315   : > { %5648 = vmatprep.subr.bf16.mxu0 %v6167_v5 }
0x1318   : > { %5649 = vmatpush3.bf16.msra.mxu0 %v6003_v43 }
0x1319   : > { %5660 = vmatprep.subr.bf16.mxu0 %v6167_v5 }
0x13cb   : > { %v2636_v22 = vpop.f32.mrf.mxu0 }
0x13cc   : > { %v2637_v23 = vadd.f32 %v4895_v20, %v2636_v22  ;;  %v6012_v20 = vld [vmem:[%s7399_s6 + $0xb8] sm:$0xff]   ;;  %v6013_v22 = vld [vmem:[%s7399_s6 + $0xb0] sm:$0xff]  }
0x13cd   : > { %v5616_v24 = vpop.f32.mrf.mxu0 }
0x13ce   : > { %v6831_v25 = vadd.f32 %v2637_v23, %v6759_v46  ;;  %v6014_v23 = vld [vmem:[%s7399_s6 + $0xa8] sm:$0xff]   ;;  %v6015_v24 = vld [vmem:[%s7399_s6 + $0xa0] sm:$0xff]  }
0x13cf   : > { %v2639_v26 = vpop.f32.mrf.mxu0 }
0x13d0   : > { %v2647_v27 = vsel %vm766_vm6, %v6831_v25, 0.0 }
0x13d1   : > { %2648 = vadd.xlane.f32.xlu0 %v2647_v27  ;;  %v5617_v28 = vpop.f32.mrf.mxu0 }
0x145a   : > { %v2649_v29 = vpop.xlane.xlu0 %2648 }
0x145b   : > { %v2650_v30 = vmul.f32 0.015625, %v2649_v29 }
0x145d   : > { %v2651_v31 = vsub.f32 %v6831_v25, %v2650_v30 }
0x145f   : > { %v2652_v32 = vmul.f32 %v2651_v31, %v2651_v31 }
0x1461   : > { %v2653_v34 = vsel %vm766_vm6, %v2652_v32, 0.0 }
0x1462   : > { %2654 = vadd.xlane.f32.xlu1 %v2653_v34 }
0x14eb   : > { %v2655_v13 = vpop.xlane.xlu1 %2654 }
0x14ec   : > { %v2656_v14 = vmul.f32 0.015625, %v2655_v13 }
0x14ee   : > { %v2657_v44 = vadd.f32 1e-05, %v2656_v14 }
0x14f0   : > { %6084 = vrsqrt.f32 %v2657_v44 }
0x14fd   : > { %v6085_v46 = vpop.eup %6084 }
0x14fe   : > { %v2659_v48 = vmul.f32 %v6085_v46, %v2651_v31 }
0x1500   : > { %v2666_v50 = vmul.f32 %v4906_v47, %v2659_v48 }
0x1502   : > { %v2673_v51 = vadd.f32 %v4907_v49, %v2666_v50  ;;  %v6016_v49 = vld [vmem:[%s7398_s3 + $0xb8] sm:$0xff]  }
0x1504   : > { %v6878_v53 = vpack.c.bf16 %v2673_v51, %v2673_v51  ;;  %v6017_v51 = vld [vmem:[%s7398_s3 + $0xb0] sm:$0xff]  }
0x1506   : > { %5627 = vmatmul.mubr.msk.bf16.vlgmr.msra.gmra.mxu1 %vm766_vm6, %v6878_v53  ;;  %5651 = vmatmul.mubr.msk.bf16.vlgmr.msra.gmra.mxu0 %vm766_vm6, %v6878_v53 }
0x1507   : > { %5631 = vmatpush3.bf16.msra.mxu1 %v6004_v52  ;;  %5638 = vmatprep.mubr.msk.bf16.mxu1 %vm6169_vm7, %v6167_v5  ;;  %v6018_v52 = vld [vmem:[%s7398_s3 + $0xa8] sm:$0xff]  }
0x1508   : > { %5632 = vmatprep.subr.bf16.mxu1 %v6167_v5  ;;  %5662 = vmatprep.mubr.msk.bf16.mxu0 %vm6169_vm7, %v6167_v5 }
0x150b   : > { %5633 = vmatpush3.bf16.msra.mxu1 %v6005_v54  ;;  %v6019_v54 = vld [vmem:[%s7398_s3 + $0xa0] sm:$0xff]  }
0x150c   : > { %5634 = vmatprep.subr.bf16.mxu1 %v6167_v5 }
0x150f   : > { %5635 = vmatpush3.bf16.msra.mxu1 %v6006_v21 }
0x1510   : > { %5636 = vmatprep.subr.bf16.mxu1 %v6167_v5 }
0x1513   : > { %5637 = vmatpush3.bf16.msra.mxu1 %v6007_v55 }
0x1514   : > { %5654 = vmatprep.subr.bf16.mxu1 %v6167_v5 }
0x1516   : > { %5639 = vmatmul.mubr.msk.bf16.vlgmr.msra.gmra.mxu1 %vm766_vm6, %v6878_v53 }
0x1517   : > { %5656 = vmatprep.mubr.msk.bf16.mxu1 %vm6169_vm7, %v6167_v5 }
0x15c6   : > { %v2753_v57 = vpop.f32.mrf.mxu1  ;;  %v2915_v59 = vpop.f32.mrf.mxu0 }
0x15c7   : > { %v2916_v60 = vadd.f32 %v4947_v56, %v2915_v59  ;;  %v2754_v12 = vadd.f32 %v4917_v8, %v2753_v57  ;;  %v4981_v59 = vld [vmem:[%s7400_s5 + $0x5] ss:$0 sm:$0xff] }
0x15c8   : > { %v5628_v61 = vpop.f32.mrf.mxu1  ;;  %v5652_v62 = vpop.f32.mrf.mxu0 }
0x15c9   : > { %v2981_v63 = vpack.c.bf16 %v2916_v60, %v2916_v60  ;;  %v2921_v16 = vpack.c.bf16 %v2754_v12, %v2754_v12  ;;  %v4996_v62 = vld [vmem:[%s7352_s7 + $0x5] ss:$0 sm:$0xff] }
0x15ca   : > { %v2756_v0 = vpop.f32.mrf.mxu1  ;;  %v2918_v1 = vpop.f32.mrf.mxu0 }
0x15cb   : > { %v2986_v45 = vsel %vm1101_vm8, %v2981_v63, 0  ;;  %v4966_v1 = vld [vmem:[%s7401_s26 + $0x5] ss:$0 sm:$0xff] }
0x15cc   : > { %v5629_v2 = vpop.f32.mrf.mxu1  ;;  %v5653_v3 = vpop.f32.mrf.mxu0  ;;  %5661 = vmatpush3.bf16.msra.mxu0 %v2986_v45 }
0x15cd   : > { %5678 = vmatprep.subr.bf16.mxu0 %v6167_v5 }
0x15d6   : > { %v2834_v6 = vpop.f32.mrf.mxu1 }
0x15d7   : > { %v2835_v7 = vadd.f32 %v4932_v4, %v2834_v6 }
0x15d8   : > { %v5640_v41 = vpop.f32.mrf.mxu1 }
0x15d9   : > { %v2922_v58 = vpack.c.bf16 %v2835_v7, %v2835_v7 }
0x15da   : > { %v2837_v9 = vpop.f32.mrf.mxu1 }
0x15db   : > { %v2927_v10 = vsel %vm718_vm4, %v2922_v58, 0 }
0x15dc   : > { %v5641_v11 = vpop.f32.mrf.mxu1  ;;  %5655 = vmatpush3.bf16.xpose.msra.mxu1 %v2927_v10 }
0x15dd   : > { %5666 = vmatprep.subr.bf16.mxu1 %v6167_v5 }
0x15e3   : > { %5657 = vmatmul.mubr.msk.bf16.vlgmr.msra.gmra.mxu1 %vm718_vm4, %v2921_v16 }
0x15e4   : > { %5667 = vmatpush3.bf16.msra.mxu1 %v6008_v15  ;;  %5674 = vmatprep.mubr.msk.bf16.mxu1 %vm6169_vm7, %v6167_v5 }
0x15e5   : > { %5668 = vmatprep.subr.bf16.mxu1 %v6167_v5 }
0x15e8   : > { %5669 = vmatpush3.bf16.msra.mxu1 %v6009_v17 }
0x15e9   : > { %5670 = vmatprep.subr.bf16.mxu1 %v6167_v5 }
0x15ec   : > { %5671 = vmatpush3.bf16.msra.mxu1 %v6010_v18 }
0x15ed   : > { %5672 = vmatprep.subr.bf16.mxu1 %v6167_v5 }
0x15f0   : > { %5673 = vmatpush3.bf16.msra.mxu1 %v6011_v19 }
0x15f1   : > { %5690 = vmatprep.subr.bf16.mxu1 %v6167_v5 }
0x15f3   : > { %5675 = vmatmul.mubr.msk.bf16.vlgmr.msra.gmra.mxu1 %vm766_vm6, %v6878_v53 }
0x15f4   : > { %5691 = vmatpush3.bf16.msra.mxu1 %v6012_v20  ;;  %5698 = vmatprep.mubr.msk.bf16.mxu1 %vm6169_vm7, %v6167_v5 }
0x15f5   : > { %5692 = vmatprep.subr.bf16.mxu1 %v6167_v5 }
0x15f8   : > { %5693 = vmatpush3.bf16.msra.mxu1 %v6013_v22  ;;  %v6025_v22 = vld [vmem:[%s7353_s8 + $0x28] sm:$0xff]  }
0x15f9   : > { %5694 = vmatprep.subr.bf16.mxu1 %v6167_v5 }
0x15fc   : > { %5695 = vmatpush3.bf16.msra.mxu1 %v6014_v23 }
0x15fd   : > { %5696 = vmatprep.subr.bf16.mxu1 %v6167_v5 }
0x1600   : > { %5697 = vmatpush3.bf16.msra.mxu1 %v6015_v24 }
0x1601   : > { %5714 = vmatprep.subr.bf16.mxu1 %v6167_v5 }
0x1603   : > { %5699 = vmatmul.mubr.msk.bf16.vlgmr.msra.gmra.mxu1 %vm766_vm6, %v6878_v53 }
0x1604   : > { %5716 = vmatprep.mubr.msk.bf16.mxu1 %vm6169_vm7, %v6167_v5  ;;  %5715 = vmatpush3.bf16.msra.mxu1 %v6025_v22 }
0x1605   : > { %5726 = vmatprep.subr.bf16.mxu1 %v6167_v5 }
0x16a3   : > { %v2963_v26 = vpop.f32.mrf.mxu1 }
0x16a4   : > { %v2964_v27 = vadd.f32 %v2963_v26, %v6506_v33 }
0x16a5   : > { %v5658_v28 = vpop.f32.mrf.mxu1 }
0x16a6   : > { %v2969_v29 = vsel %vm1084_vm10, %v2964_v27, -inf }
0x16a7   : > { %2970 = vmax.xlane.f32.xlu0 %v2969_v29  ;;  %v2966_v30 = vpop.f32.mrf.mxu1  ;;  %v6021_v29 = vld [vmem:[%s7398_s3 + $0xd8] sm:$0xff]  }
0x16a9   : > { %v5659_v31 = vpop.f32.mrf.mxu1 }
0x16aa   : > { %v6022_v31 = vld [vmem:[%s7398_s3 + $0xd0] sm:$0xff]  }
0x16b3   : > { %v3107_v32 = vpop.f32.mrf.mxu1 }
0x16b4   : > { %v3108_v6 = vadd.f32 %v4966_v1, %v3107_v32  ;;  %v6023_v32 = vld [vmem:[%s7398_s3 + $0xc8] sm:$0xff]   ;;  %v5019_v1 = vld [vmem:[%s7401_s26 + $0x6] ss:$0 sm:$0xff] }
0x16b5   : > { %v5676_v34 = vpop.f32.mrf.mxu1 }
0x16b6   : > { %v3275_v41 = vpack.c.bf16 %v3108_v6, %v3108_v6  ;;  %v6024_v34 = vld [vmem:[%s7398_s3 + $0xc0] sm:$0xff]  }
0x16b7   : > { %v3110_v35 = vpop.f32.mrf.mxu1 }
0x16b9   : > { %v5677_v36 = vpop.f32.mrf.mxu1 }
0x16ba   : > { %v6026_v36 = vld [vmem:[%s7396_s25 + $0xd8] sm:$0xff]  }
0x16c3   : > { %v3269_v37 = vpop.f32.mrf.mxu1 }
0x16c4   : > { %v3270_v2 = vadd.f32 %v4996_v62, %v3269_v37 }
0x16c5   : > { %v5700_v38 = vpop.f32.mrf.mxu1 }
0x16c6   : > { %v3335_v7 = vpack.c.bf16 %v3270_v2, %v3270_v2 }
0x16c7   : > { %v3272_v39 = vpop.f32.mrf.mxu1 }
0x16c8   : > { %v3340_v58 = vsel %vm1101_vm8, %v3335_v7, 0 }
0x16c9   : > { %v5701_v40 = vpop.f32.mrf.mxu1 }
0x16ca   : > { %v6027_v40 = vld [vmem:[%s7396_s25 + $0xd0] sm:$0xff]  }
0x1730   : > { %v2971_v42 = vpop.xlane.xlu0 %2970 }
0x1731   : > { %v2972_v43 = vsub.f32 %v2964_v27, %v2971_v42  ;;  %v6020_v27 = vld [vmem:[%s7353_s8 + $0x20] sm:$0xff]  }
0x1733   : > { %v2973_v13 = vmul.f32 1.442695, %v2972_v43 }
0x1735   : > { %6086 = vpow2.f32 %v2973_v13  ;;  %v6028_v13 = vld [vmem:[%s7396_s25 + $0xc8] sm:$0xff]  }
0x1742   : > { %v6087_v14 = vpop.eup %6086 }
0x1743   : > { %v2975_v44 = vsel %vm1084_vm10, %v6087_v14, 0.0 }
0x1744   : > { %2976 = vadd.xlane.f32.xlu1 %v2975_v44 }
0x17cd   : > { %v2977_v46 = vpop.xlane.xlu1 %2976 }
0x17ce   : > { %6088 = vrcp.f32 %v2977_v46  ;;  %v6029_v46 = vld [vmem:[%s7396_s25 + $0xc0] sm:$0xff]  }
0x17db   : > { %v6089_v47 = vpop.eup %6088 }
0x17dc   : > { %v2979_v48 = vmul.f32 %v6089_v47, %v6087_v14 }
0x17de   : > { %v2980_v50 = vpack.c.bf16 %v2979_v48, %v2979_v48  ;;  %v6030_v48 = vld [vmem:[%s7399_s6 + $0xd8] sm:$0xff]  }
0x17e0   : > { %5663 = vmatmul.mubr.msk.bf16.vlgmr.msra.gmra.mxu0 %vm1084_vm10, %v2980_v50  ;;  %v5034_v50 = vld [vmem:[%s7400_s5 + $0x6] ss:$0 sm:$0xff] }
0x17e1   : > { %5679 = vmatpush3.bf16.msra.mxu0 %v6016_v49  ;;  %5686 = vmatprep.mubr.msk.bf16.mxu0 %vm6169_vm7, %v6167_v5  ;;  %v6031_v49 = vld [vmem:[%s7399_s6 + $0xd0] sm:$0xff]  }
0x17e2   : > { %5680 = vmatprep.subr.bf16.mxu0 %v6167_v5 }
0x17e5   : > { %5681 = vmatpush3.bf16.msra.mxu0 %v6017_v51 }
0x17e6   : > { %5682 = vmatprep.subr.bf16.mxu0 %v6167_v5 }
0x17e9   : > { %5683 = vmatpush3.bf16.msra.mxu0 %v6018_v52  ;;  %v6032_v52 = vld [vmem:[%s7399_s6 + $0xc8] sm:$0xff]  }
0x17ea   : > { %5684 = vmatprep.subr.bf16.mxu0 %v6167_v5 }
0x17ed   : > { %5685 = vmatpush3.bf16.msra.mxu0 %v6019_v54 }
0x17ee   : > { %5702 = vmatprep.subr.bf16.mxu0 %v6167_v5 }
0x17f0   : > { %5687 = vmatmul.mubr.msk.bf16.vlgmr.msra.gmra.mxu0 %vm766_vm6, %v6878_v53 }
0x17f1   : > { %5704 = vmatprep.mubr.msk.bf16.mxu0 %vm6169_vm7, %v6167_v5 }
0x18a0   : > { %v3022_v21 = vpop.f32.mrf.mxu0 }
0x18a1   : > { %v3028_v30 = vpack.c.bf16 %v3022_v21, %v3022_v21 }
0x18a2   : > { %v5664_v55 = vpop.f32.mrf.mxu0 }
0x18a4   : > { %v3025_v56 = vpop.f32.mrf.mxu0 }
0x18a6   : > { %v5665_v57 = vpop.f32.mrf.mxu0 }
0x18a7   : > { %v6033_v57 = vld [vmem:[%s7399_s6 + $0xc0] sm:$0xff]  }
0x18b0   : > { %v3188_v60 = vpop.f32.mrf.mxu0 }
0x18b1   : > { %v3189_v61 = vadd.f32 %v4981_v59, %v3188_v60 }
0x18b2   : > { %v5688_v63 = vpop.f32.mrf.mxu0 }
0x18b3   : > { %v3276_v0 = vpack.c.bf16 %v3189_v61, %v3189_v61 }
0x18b4   : > { %v3191_v45 = vpop.f32.mrf.mxu0 }
0x18b5   : > { %v3281_v3 = vsel %vm718_vm4, %v3276_v0, 0 }
0x18b6   : > { %v5689_v4 = vpop.f32.mrf.mxu0  ;;  %5703 = vmatpush3.bf16.xpose.msra.mxu0 %v3281_v3 }
0x18b7   : > { %5708 = vmatprep.subr.bf16.mxu0 %v6167_v5 }
0x18bd   : > { %5705 = vmatmul.mubr.msk.bf16.vlgmr.msra.gmra.mxu0 %vm718_vm4, %v3275_v41  ;;  %v5049_v41 = vld [vmem:[%s7352_s7 + $0x6] ss:$0 sm:$0xff] }
0x18be   : > { %5709 = vmatpush3.bf16.msra.mxu0 %v3340_v58  ;;  %5710 = vmatprep.mubr.msk.bf16.mxu0 %vm6169_vm7, %v6167_v5 }
0x18bf   : > { %5720 = vmatprep.subr.bf16.mxu0 %v6167_v5 }
0x197d   : > { %v3317_v8 = vpop.f32.mrf.mxu0 }
0x197e   : > { %v3318_v9 = vadd.f32 %v3317_v8, %v6506_v33 }
0x197f   : > { %v5706_v10 = vpop.f32.mrf.mxu0 }
0x1980   : > { %v3323_v11 = vsel %vm1084_vm10, %v3318_v9, -inf }
0x1981   : > { %3324 = vmax.xlane.f32.xlu0 %v3323_v11  ;;  %v3320_v12 = vpop.f32.mrf.mxu0 }
0x1983   : > { %v5707_v15 = vpop.f32.mrf.mxu0 }
0x1a0a   : > { %v3325_v16 = vpop.xlane.xlu0 %3324 }
0x1a0b   : > { %v3326_v17 = vsub.f32 %v3318_v9, %v3325_v16 }
0x1a0d   : > { %v3327_v18 = vmul.f32 1.442695, %v3326_v17 }
0x1a0f   : > { %6090 = vpow2.f32 %v3327_v18 }
0x1a1c   : > { %v6091_v19 = vpop.eup %6090 }
0x1a1d   : > { %v3329_v20 = vsel %vm1084_vm10, %v6091_v19, 0.0 }
0x1a1e   : > { %3330 = vadd.xlane.f32.xlu1 %v3329_v20 }
0x1aa7   : > { %v3331_v23 = vpop.xlane.xlu1 %3330 }
0x1aa8   : > { %6092 = vrcp.f32 %v3331_v23 }
0x1ab5   : > { %v6093_v24 = vpop.eup %6092 }
0x1ab6   : > { %v3333_v26 = vmul.f32 %v6093_v24, %v6091_v19 }
0x1ab8   : > { %v3334_v28 = vpack.c.bf16 %v3333_v26, %v3333_v26 }
0x1aba   : > { %5711 = vmatmul.mubr.msk.bf16.vlgmr.msra.gmra.mxu0 %vm1084_vm10, %v3334_v28 }
0x1abb   : > { %5721 = vmatpush3.bf16.msra.mxu0 %v6020_v27  ;;  %5722 = vmatprep.mubr.msk.bf16.mxu0 %vm6169_vm7, %v6167_v5 }
0x1abc   : > { %5738 = vmatprep.subr.bf16.mxu0 %v6167_v5 }
0x1ac2   : > { %5723 = vmatmul.mubr.msk.bf16.vlgmr.msra.gmra.mxu0 %vm718_vm4, %v3028_v30 }
0x1ac3   : > { %5739 = vmatpush3.bf16.msra.mxu0 %v6021_v29  ;;  %5746 = vmatprep.mubr.msk.bf16.mxu0 %vm6169_vm7, %v6167_v5  ;;  %v6042_v29 = vld [vmem:[%s7353_s8 + $0x30] sm:$0xff]  }
0x1ac4   : > { %5740 = vmatprep.subr.bf16.mxu0 %v6167_v5 }
0x1ac7   : > { %5741 = vmatpush3.bf16.msra.mxu0 %v6022_v31 }
0x1ac8   : > { %5742 = vmatprep.subr.bf16.mxu0 %v6167_v5 }
0x1acb   : > { %5743 = vmatpush3.bf16.msra.mxu0 %v6023_v32 }
0x1acc   : > { %5744 = vmatprep.subr.bf16.mxu0 %v6167_v5 }
0x1acf   : > { %5745 = vmatpush3.bf16.msra.mxu0 %v6024_v34  ;;  %v6034_v34 = vld [vmem:[%s7396_s25 + $0xf8] sm:$0xff]  }
0x1ad0   : > { %5762 = vmatprep.subr.bf16.mxu0 %v6167_v5 }
0x1ad2   : > { %5747 = vmatmul.mubr.msk.bf16.vlgmr.msra.gmra.mxu0 %vm766_vm6, %v6878_v53 }
0x1ad3   : > { %5764 = vmatprep.mubr.msk.bf16.mxu0 %vm6169_vm7, %v6167_v5 }
0x1b7a   : > { %v3376_v35 = vpop.f32.mrf.mxu0 }
0x1b7b   : > { %v3382_v37 = vpack.c.bf16 %v3376_v35, %v3376_v35 }
0x1b7c   : > { %v5712_v38 = vpop.f32.mrf.mxu0 }
0x1b7d   : > { %5717 = vmatmul.mubr.msk.bf16.vlgmr.msra.gmra.mxu1 %vm718_vm4, %v3382_v37  ;;  %v6036_v37 = vld [vmem:[%s7396_s25 + $0xe8] sm:$0xff]   ;;  %v6037_v38 = vld [vmem:[%s7396_s25 + $0xe0] sm:$0xff]  }
0x1b7e   : > { %5727 = vmatpush3.bf16.msra.mxu1 %v6026_v36  ;;  %v3379_v39 = vpop.f32.mrf.mxu0  ;;  %5734 = vmatprep.mubr.msk.bf16.mxu1 %vm6169_vm7, %v6167_v5  ;;  %v6035_v36 = vld [vmem:[%s7396_s25 + $0xf0] sm:$0xff]  }
0x1b7f   : > { %5728 = vmatprep.subr.bf16.mxu1 %v6167_v5  ;;  %v6038_v39 = vld [vmem:[%s7399_s6 + $0xf8] sm:$0xff]  }
0x1b80   : > { %v5713_v42 = vpop.f32.mrf.mxu0 }
0x1b81   : > { %v6040_v42 = vld [vmem:[%s7399_s6 + $0xe8] sm:$0xff]  }
0x1b82   : > { %5729 = vmatpush3.bf16.msra.mxu1 %v6027_v40  ;;  %v7050_v43 = vpop.f32.mrf.mxu0  ;;  %v6039_v40 = vld [vmem:[%s7399_s6 + $0xf0] sm:$0xff]  }
0x1b83   : > { %5730 = vmatprep.subr.bf16.mxu1 %v6167_v5 }
0x1b84   : > { %v5724_v14 = vpop.f32.mrf.mxu0 }
0x1b86   : > { %5731 = vmatpush3.bf16.msra.mxu1 %v6028_v13  ;;  %v3481_v44 = vpop.f32.mrf.mxu0  ;;  %v6041_v13 = vld [vmem:[%s7399_s6 + $0xe0] sm:$0xff]  }
0x1b87   : > { %5732 = vmatprep.subr.bf16.mxu1 %v6167_v5  ;;  %v6043_v44 = vld [vmem:[%s7398_s3 + $0xf8] sm:$0xff]  }
0x1b88   : > { %v5725_v47 = vpop.f32.mrf.mxu0 }
0x1b8a   : > { %5733 = vmatpush3.bf16.msra.mxu1 %v6029_v46 }
0x1b8b   : > { %5750 = vmatprep.subr.bf16.mxu1 %v6167_v5 }
0x1b8d   : > { %5735 = vmatmul.mubr.msk.bf16.vlgmr.msra.gmra.mxu1 %vm766_vm6, %v6878_v53 }
0x1b8e   : > { %5751 = vmatpush3.bf16.msra.mxu1 %v6030_v48  ;;  %5758 = vmatprep.mubr.msk.bf16.mxu1 %vm6169_vm7, %v6167_v5 }
0x1b8f   : > { %5752 = vmatprep.subr.bf16.mxu1 %v6167_v5 }
0x1b92   : > { %v3640_v51 = vpop.f32.mrf.mxu0  ;;  %5753 = vmatpush3.bf16.msra.mxu1 %v6031_v49  ;;  %v6044_v49 = vld [vmem:[%s7398_s3 + $0xf0] sm:$0xff]  }
0x1b93   : > { %v3641_v54 = vadd.f32 %v5034_v50, %v3640_v51  ;;  %5754 = vmatprep.subr.bf16.mxu1 %v6167_v5  ;;  %v6045_v51 = vld [vmem:[%s7398_s3 + $0xe8] sm:$0xff]  }
0x1b94   : > { %v5748_v21 = vpop.f32.mrf.mxu0 }
0x1b95   : > { %v3728_v55 = vpack.c.bf16 %v3641_v54, %v3641_v54 }
0x1b96   : > { %v3643_v56 = vpop.f32.mrf.mxu0  ;;  %5755 = vmatpush3.bf16.msra.mxu1 %v6032_v52  ;;  %v6046_v52 = vld [vmem:[%s7398_s3 + $0xe0] sm:$0xff]   ;;  %s7402_s3 = sld [smem:[#allocation18_spill]] }
0x1b97   : > { %v3733_v59 = vsel %vm718_vm4, %v3728_v55, 0  ;;  %5756 = vmatprep.subr.bf16.mxu1 %v6167_v5 }
0x1b98   : > { %v5749_v60 = vpop.f32.mrf.mxu0  ;;  %5763 = vmatpush3.bf16.xpose.msra.mxu0 %v3733_v59 }
0x1b99   : > { %5768 = vmatprep.subr.bf16.mxu0 %v6167_v5 }
0x1b9a   : > { %5757 = vmatpush3.bf16.msra.mxu1 %v6033_v57 }
0x1b9b   : > { %5774 = vmatprep.subr.bf16.mxu1 %v6167_v5 }
0x1b9d   : > { %5759 = vmatmul.mubr.msk.bf16.vlgmr.msra.gmra.mxu1 %vm766_vm6, %v6878_v53 }
0x1b9e   : > { %5776 = vmatprep.mubr.msk.bf16.mxu1 %vm6169_vm7, %v6167_v5  ;;  %5775 = vmatpush3.bf16.msra.mxu1 %v6042_v29 }
0x1b9f   : > { %5792 = vmatprep.subr.bf16.mxu1 %v6167_v5 }
0x1c3d   : > { %v7090_v61 = vpop.f32.mrf.mxu1 }
0x1c3f   : > { %v5718_v62 = vpop.f32.mrf.mxu1 }
0x1c41   : > { %v3432_v63 = vpop.f32.mrf.mxu1 }
0x1c42   : > { %v3479_v63 = vadd.f32 %v7050_v43, %v7090_v61  ;;  %v5070_v43 = vld [vmem:[%s7401_s26 + $0x7] ss:$0 sm:$0xff] }
0x1c43   : > { %v5719_v0 = vpop.f32.mrf.mxu1 }
0x1c4d   : > { %v3559_v45 = vpop.f32.mrf.mxu1 }
0x1c4e   : > { %v3560_v2 = vadd.f32 %v5019_v1, %v3559_v45 }
0x1c4f   : > { %v5736_v3 = vpop.f32.mrf.mxu1 }
0x1c50   : > { %v3727_v4 = vpack.c.bf16 %v3560_v2, %v3560_v2 }
0x1c51   : > { %v3562_v6 = vpop.f32.mrf.mxu1 }
0x1c52   : > { %5765 = vmatmul.mubr.msk.bf16.vlgmr.msra.gmra.mxu0 %vm718_vm4, %v3727_v4 }
0x1c53   : > { %v5737_v7 = vpop.f32.mrf.mxu1  ;;  %5770 = vmatprep.mubr.msk.bf16.mxu0 %vm6169_vm7, %v6167_v5 }
0x1c54   : > { %v5100_v7 = vld [vmem:[%s7352_s7 + $0x7] ss:$0 sm:$0xff] }
0x1c5d   : > { %v3721_v58 = vpop.f32.mrf.mxu1 }
0x1c5e   : > { %v3722_v8 = vadd.f32 %v5049_v41, %v3721_v58 }
0x1c5f   : > { %v5760_v9 = vpop.f32.mrf.mxu1 }
0x1c60   : > { %v3787_v10 = vpack.c.bf16 %v3722_v8, %v3722_v8 }
0x1c61   : > { %v3724_v11 = vpop.f32.mrf.mxu1 }
0x1c62   : > { %v3792_v12 = vsel %vm1101_vm8, %v3787_v10, 0 }
0x1c63   : > { %v5761_v15 = vpop.f32.mrf.mxu1  ;;  %5769 = vmatpush3.bf16.msra.mxu0 %v3792_v12 }
0x1c64   : > { %5780 = vmatprep.subr.bf16.mxu0 %v6167_v5 }
0x1d12   : > { %v3769_v16 = vpop.f32.mrf.mxu0 }
0x1d13   : > { %v3770_v17 = vadd.f32 %v3769_v16, %v6506_v33 }
0x1d14   : > { %v5766_v18 = vpop.f32.mrf.mxu0 }
0x1d15   : > { %v3775_v19 = vsel %vm1084_vm10, %v3770_v17, -inf }
0x1d16   : > { %3776 = vmax.xlane.f32.xlu0 %v3775_v19  ;;  %v3772_v20 = vpop.f32.mrf.mxu0 }
0x1d18   : > { %v5767_v22 = vpop.f32.mrf.mxu0 }
0x1d9f   : > { %v3777_v23 = vpop.xlane.xlu0 %3776 }
0x1da0   : > { %v3778_v24 = vsub.f32 %v3770_v17, %v3777_v23 }
0x1da2   : > { %v3779_v26 = vmul.f32 1.442695, %v3778_v24 }
0x1da4   : > { %6094 = vpow2.f32 %v3779_v26 }
0x1db1   : > { %v6095_v27 = vpop.eup %6094 }
0x1db2   : > { %v3781_v28 = vsel %vm1084_vm10, %v6095_v27, 0.0 }
0x1db3   : > { %3782 = vadd.xlane.f32.xlu1 %v3781_v28 }
0x1e3c   : > { %v3783_v30 = vpop.xlane.xlu1 %3782 }
0x1e3d   : > { %6096 = vrcp.f32 %v3783_v30  ;;  %v6047_v30 = vld [vmem:[%s7353_s8 + $0x38] sm:$0xff]  }
0x1e4a   : > { %v6097_v31 = vpop.eup %6096 }
0x1e4b   : > { %v3785_v32 = vmul.f32 %v6097_v31, %v6095_v27 }
0x1e4d   : > { %v3786_v35 = vpack.c.bf16 %v3785_v32, %v3785_v32 }
0x1e4f   : > { %5771 = vmatmul.mubr.msk.bf16.vlgmr.msra.gmra.mxu0 %vm1084_vm10, %v3786_v35 }
0x1e50   : > { %5781 = vmatpush3.bf16.msra.mxu0 %v6034_v34  ;;  %5788 = vmatprep.mubr.msk.bf16.mxu0 %vm6169_vm7, %v6167_v5 }
0x1e51   : > { %5782 = vmatprep.subr.bf16.mxu0 %v6167_v5 }
0x1e54   : > { %5783 = vmatpush3.bf16.msra.mxu0 %v6035_v36 }
0x1e55   : > { %5784 = vmatprep.subr.bf16.mxu0 %v6167_v5 }
0x1e58   : > { %5785 = vmatpush3.bf16.msra.mxu0 %v6036_v37 }
0x1e59   : > { %5786 = vmatprep.subr.bf16.mxu0 %v6167_v5 }
0x1e5c   : > { %5787 = vmatpush3.bf16.msra.mxu0 %v6037_v38 }
0x1e5d   : > { %5804 = vmatprep.subr.bf16.mxu0 %v6167_v5 }
0x1e5f   : > { %5789 = vmatmul.mubr.msk.bf16.vlgmr.msra.gmra.mxu0 %vm766_vm6, %v6878_v53 }
0x1e60   : > { %5805 = vmatpush3.bf16.msra.mxu0 %v6038_v39  ;;  %5812 = vmatprep.mubr.msk.bf16.mxu0 %vm6169_vm7, %v6167_v5 }
0x1e61   : > { %5806 = vmatprep.subr.bf16.mxu0 %v6167_v5 }
0x1e64   : > { %5807 = vmatpush3.bf16.msra.mxu0 %v6039_v40 }
0x1e65   : > { %5808 = vmatprep.subr.bf16.mxu0 %v6167_v5 }
0x1e68   : > { %5809 = vmatpush3.bf16.msra.mxu0 %v6040_v42  ;;  %v5113_v42 = vld [vmem:[%s7354_s9 + $0x1] ss:$0 sm:$0xff] }
0x1e69   : > { %5810 = vmatprep.subr.bf16.mxu0 %v6167_v5 }
0x1e6c   : > { %5811 = vmatpush3.bf16.msra.mxu0 %v6041_v13 }
0x1e6d   : > { %5828 = vmatprep.subr.bf16.mxu0 %v6167_v5 }
0x1e6f   : > { %5813 = vmatmul.mubr.msk.bf16.vlgmr.msra.gmra.mxu0 %vm766_vm6, %v6878_v53 }
0x1e70   : > { %5830 = vmatprep.mubr.msk.bf16.mxu0 %vm6169_vm7, %v6167_v5  ;;  %5829 = vmatpush3.bf16.msra.mxu0 %v6047_v30 }
0x1e71   : > { %5846 = vmatprep.subr.bf16.mxu0 %v6167_v5 }
0x1f0f   : > { %v3828_v14 = vpop.f32.mrf.mxu0 }
0x1f10   : > { %v3834_v46 = vpack.c.bf16 %v3828_v14, %v3828_v14 }
0x1f11   : > { %v5772_v47 = vpop.f32.mrf.mxu0 }
0x1f12   : > { %5777 = vmatmul.mubr.msk.bf16.vlgmr.msra.gmra.mxu1 %vm718_vm4, %v3834_v46 }
0x1f13   : > { %5793 = vmatpush3.bf16.msra.mxu1 %v6043_v44  ;;  %v3831_v48 = vpop.f32.mrf.mxu0  ;;  %5800 = vmatprep.mubr.msk.bf16.mxu1 %vm6169_vm7, %v6167_v5 }
0x1f14   : > { %5794 = vmatprep.subr.bf16.mxu1 %v6167_v5 }
0x1f15   : > { %v5773_v50 = vpop.f32.mrf.mxu0 }
0x1f17   : > { %5795 = vmatpush3.bf16.msra.mxu1 %v6044_v49 }
0x1f18   : > { %5796 = vmatprep.subr.bf16.mxu1 %v6167_v5 }
0x1f1b   : > { %5797 = vmatpush3.bf16.msra.mxu1 %v6045_v51 }
0x1f1c   : > { %5798 = vmatprep.subr.bf16.mxu1 %v6167_v5 }
0x1f1f   : > { %v3963_v54 = vpop.f32.mrf.mxu0  ;;  %5799 = vmatpush3.bf16.msra.mxu1 %v6046_v52 }
0x1f20   : > { %5816 = vmatprep.subr.bf16.mxu1 %v6167_v5  ;;  %v3964_v11 = vadd.f32 %v5070_v43, %v3963_v54 }
0x1f21   : > { %v5790_v21 = vpop.f32.mrf.mxu0 }
0x1f22   : > { %5801 = vmatmul.mubr.msk.bf16.vlgmr.msra.gmra.mxu1 %vm766_vm6, %v6878_v53  ;;  %v5085_v53 = vld [vmem:[%s7400_s5 + $0x7] ss:$0 sm:$0xff]  ;;  %v4131_v15 = vpack.c.bf16 %v3964_v11, %v3964_v11  ;;  %v5127_v11 = vld [vmem:[%s7356_s11 + $0x1] ss:$0 sm:$0xff]  ;;  %s7304_s5 = scalar_lea.hbm %s7402_s3, %s5166_s29 }
0x1f23   : > { %v3966_v55 = vpop.f32.mrf.mxu0  ;;  %5818 = vmatprep.mubr.msk.bf16.mxu1 %vm6169_vm7, %v6167_v5 }
0x1f24   : > { %v6048_v55 = vld [vmem:[%s7355_s10 + $0x38] sm:$0xff]  }
0x1f25   : > { %v5791_v56 = vpop.f32.mrf.mxu0 }
0x1f26   : > { %v6050_v56 = vld [vmem:[%s7355_s10 + $0x28] sm:$0xff]  }
0x1f2f   : > { %v4125_v57 = vpop.f32.mrf.mxu0 }
0x1f30   : > { %v4126_v8 = vadd.f32 %v5100_v7, %v4125_v57  ;;  %v6051_v57 = vld [vmem:[%s7355_s10 + $0x20] sm:$0xff]  }
0x1f31   : > { %v5814_v59 = vpop.f32.mrf.mxu0  ;;  %v5117_v7 = vld [vmem:[%s7362_s17 + $0x1] ss:$0 sm:$0xff] }
0x1f32   : > { %v4191_v12 = vpack.c.bf16 %v4126_v8, %v4126_v8  ;;  %v6052_v59 = vld [vmem:[%s7357_s12 + $0x78] sm:$0xff]   ;;  %v6059_v8 = vld [vmem:[%s7357_s12 + $0x40] sm:$0xff]  }
0x1f33   : > { %v4128_v60 = vpop.f32.mrf.mxu0 }
0x1f34   : > { %v4196_v16 = vsel %vm1101_vm8, %v4191_v12, 0  ;;  %v6053_v60 = vld [vmem:[%s7357_s12 + $0x70] sm:$0xff]  }
0x1f35   : > { %v5815_v62 = vpop.f32.mrf.mxu0 }
0x1f36   : > { %v6054_v62 = vld [vmem:[%s7357_s12 + $0x68] sm:$0xff]  }
0x1fd2   : > { %v3881_v0 = vpop.f32.mrf.mxu1 }
0x1fd3   : > { %v3887_v1 = vadd.f32 %v3881_v0, %v3479_v63  ;;  %v6055_v63 = vld [vmem:[%s7357_s12 + $0x60] sm:$0xff]   ;;  %v6056_v0 = vld [vmem:[%s7357_s12 + $0x58] sm:$0xff]  }
0x1fd4   : > { %v5778_v45 = vpop.f32.mrf.mxu1 }
0x1fd6   : > { %v3884_v2 = vpop.f32.mrf.mxu1 }
0x1fd8   : > { %v5779_v3 = vpop.f32.mrf.mxu1 }
0x1fe2   : > { %v4044_v4 = vpop.f32.mrf.mxu1 }
0x1fe3   : > { %v4045_v6 = vadd.f32 %v5085_v53, %v4044_v4  ;;  %v5116_v4 = vld [vmem:[%s7361_s16 + $0x1] ss:$0 sm:$0xff] }
0x1fe4   : > { %v5802_v41 = vpop.f32.mrf.mxu1 }
0x1fe5   : > { %v4132_v58 = vpack.c.bf16 %v4045_v6, %v4045_v6 }
0x1fe6   : > { %v4047_v61 = vpop.f32.mrf.mxu1 }
0x1fe7   : > { %v4137_v9 = vsel %vm718_vm4, %v4132_v58, 0  ;;  %v6058_v61 = vld [vmem:[%s7357_s12 + $0x48] sm:$0xff]  }
0x1fe8   : > { %v5803_v10 = vpop.f32.mrf.mxu1  ;;  %5817 = vmatpush3.bf16.xpose.msra.mxu1 %v4137_v9  ;;  %v6060_v9 = vld [vmem:[%s7363_s18 + $0x18] sm:$0xff]  }
0x1fe9   : > { %5822 = vmatprep.subr.bf16.mxu1 %v6167_v5  ;;  %v6061_v10 = vld [vmem:[%s7363_s18 + $0x10] sm:$0xff]  }
0x1fef   : > { %5819 = vmatmul.mubr.msk.bf16.vlgmr.msra.gmra.mxu1 %vm718_vm4, %v4131_v15 }
0x1ff0   : > { %5823 = vmatpush3.bf16.msra.mxu1 %v4196_v16  ;;  %5824 = vmatprep.mubr.msk.bf16.mxu1 %vm6169_vm7, %v6167_v5 }
0x1ff1   : > { %5834 = vmatprep.subr.bf16.mxu1 %v6167_v5 }
0x20af   : > { %v4173_v17 = vpop.f32.mrf.mxu1 }
0x20b0   : > { %v4174_v18 = vadd.f32 %v4173_v17, %v6506_v33 }
0x20b1   : > { %v5820_v19 = vpop.f32.mrf.mxu1 }
0x20b2   : > { %v4179_v20 = vsel %vm1084_vm10, %v4174_v18, -inf }
0x20b3   : > { %4180 = vmax.xlane.f32.xlu0 %v4179_v20  ;;  %v4176_v22 = vpop.f32.mrf.mxu1 }
0x20b4   : > { %v6062_v22 = vld [vmem:[%s7363_s18 + $0x8] sm:$0xff]  }
0x20b5   : > { %v5821_v23 = vpop.f32.mrf.mxu1 }
0x20b6   : > { %v6063_v23 = vld [vmem:[%s7363_s18] sm:$0xff]  }
0x213c   : > { %v4181_v24 = vpop.xlane.xlu0 %4180 }
0x213d   : > { %v4182_v26 = vsub.f32 %v4174_v18, %v4181_v24  ;;  %v5150_v24 = vld [vmem:[%s7358_s13 + $0x1] ss:$0 sm:$0xff] }
0x213f   : > { %v4183_v27 = vmul.f32 1.442695, %v4182_v26 }
0x2141   : > { %6098 = vpow2.f32 %v4183_v27 }
0x214e   : > { %v6099_v28 = vpop.eup %6098 }
0x214f   : > { %v4185_v29 = vsel %vm1084_vm10, %v6099_v28, 0.0 }
0x2150   : > { %4186 = vadd.xlane.f32.xlu1 %v4185_v29 }
0x21d9   : > { %v4187_v33 = vpop.xlane.xlu1 %4186 }
0x21da   : > { %6100 = vrcp.f32 %v4187_v33 }
0x21e7   : > { %v6101_v31 = vpop.eup %6100 }
0x21e8   : > { %v4189_v32 = vmul.f32 %v6101_v31, %v6099_v28 }
0x21ea   : > { %v4190_v34 = vpack.c.bf16 %v4189_v32, %v4189_v32 }
0x21ec   : > { %5825 = vmatmul.mubr.msk.bf16.vlgmr.msra.gmra.mxu1 %vm1084_vm10, %v4190_v34 }
0x21ed   : > { %5842 = vmatprep.mubr.msk.bf16.mxu1 %vm6169_vm7, %v6167_v5  ;;  %5835 = vmatpush3.bf16.msra.mxu1 %v6048_v55 }
0x21ee   : > { %5836 = vmatprep.subr.bf16.mxu1 %v6167_v5 }
0x22ac   : > { %v4232_v35 = vpop.f32.mrf.mxu1 }
0x22ad   : > { %v4238_v36 = vpack.c.bf16 %v4232_v35, %v4232_v35 }
0x22ae   : > { %v5826_v37 = vpop.f32.mrf.mxu1 }
0x22af   : > { %5831 = vmatmul.mubr.msk.bf16.vlgmr.msra.gmra.mxu0 %vm718_vm4, %v4238_v36 }
0x22b0   : > { %v4235_v38 = vpop.f32.mrf.mxu1  ;;  %5862 = vmatprep.mubr.msk.bf16.mxu0 %vm6169_vm7, %v6167_v5  ;;  %5847 = vmatpush3.bf16.msra.mxu0 %v6052_v59 }
0x22b1   : > { %5848 = vmatprep.subr.bf16.mxu0 %v6167_v5 }
0x22b2   : > { %v5827_v39 = vpop.f32.mrf.mxu1 }
0x22b4   : > { %5849 = vmatpush3.bf16.msra.mxu0 %v6053_v60 }
0x22b5   : > { %5850 = vmatprep.subr.bf16.mxu0 %v6167_v5 }
0x22b8   : > { %5851 = vmatpush3.bf16.msra.mxu0 %v6054_v62 }
0x22b9   : > { %5852 = vmatprep.subr.bf16.mxu0 %v6167_v5 }
0x22bc   : > { %5853 = vmatpush3.bf16.msra.mxu0 %v6055_v63 }
0x22bd   : > { %5854 = vmatprep.subr.bf16.mxu0 %v6167_v5 }
0x22c0   : > { %5855 = vmatpush3.bf16.msra.mxu0 %v6056_v0 }
0x22c1   : > { %5856 = vmatprep.subr.bf16.mxu0 %v6167_v5 }
0x236f   : > { %v4285_v40 = vpop.f32.mrf.mxu0 }
0x2370   : > { %v4291_v13 = vadd.f32 %v4285_v40, %v3887_v1  ;;  %v6057_v1 = vld [vmem:[%s7357_s12 + $0x50] sm:$0xff]  }
0x2371   : > { %v5832_v14 = vpop.f32.mrf.mxu0  ;;  %5857 = vmatpush3.bf16.msra.mxu0 %v6057_v1 }
0x2372   : > { %v4300_v44 = vadd.f32 %v5113_v42, %v4291_v13  ;;  %5858 = vmatprep.subr.bf16.mxu0 %v6167_v5 }
0x2373   : > { %v4288_v46 = vpop.f32.mrf.mxu0 }
0x2374   : > { %v7211_v47 = vadd.f32 %v4300_v44, %v6831_v25  ;;  %v6049_v25 = vld [vmem:[%s7355_s10 + $0x30] sm:$0xff]  }
0x2375   : > { %v5833_v48 = vpop.f32.mrf.mxu0  ;;  %5837 = vmatpush3.bf16.msra.mxu1 %v6049_v25  ;;  %5859 = vmatpush3.bf16.msra.mxu0 %v6058_v61 }
0x2376   : > { %v4306_v49 = vsel %vm766_vm6, %v7211_v47, 0.0  ;;  %5838 = vmatprep.subr.bf16.mxu1 %v6167_v5  ;;  %5860 = vmatprep.subr.bf16.mxu0 %v6167_v5 }
0x2377   : > { %4307 = vadd.xlane.f32.xlu0 %v4306_v49 }
0x2379   : > { %5839 = vmatpush3.bf16.msra.mxu1 %v6050_v56  ;;  %5861 = vmatpush3.bf16.msra.mxu0 %v6059_v8 }
0x237a   : > { %5840 = vmatprep.subr.bf16.mxu1 %v6167_v5 }
0x237d   : > { %5841 = vmatpush3.bf16.msra.mxu1 %v6051_v57 }
0x237e   : > { %5866 = vmatprep.subr.bf16.mxu1 %v6167_v5 }
0x2400   : > { %v4308_v50 = vpop.xlane.xlu0 %4307 }
0x2401   : > { %v4309_v51 = vmul.f32 0.015625, %v4308_v50 }
0x2403   : > { %v4310_v52 = vsub.f32 %v7211_v47, %v4309_v51 }
0x2405   : > { %v4311_v54 = vmul.f32 %v4310_v52, %v4310_v52 }
0x2407   : > { %v4312_v21 = vsel %vm766_vm6, %v4311_v54, 0.0 }
0x2408   : > { %4313 = vadd.xlane.f32.xlu1 %v4312_v21 }
0x2491   : > { %v4314_v45 = vpop.xlane.xlu1 %4313 }
0x2492   : > { %v4315_v2 = vmul.f32 0.015625, %v4314_v45 }
0x2494   : > { %v4316_v3 = vadd.f32 1e-05, %v4315_v2 }
0x2496   : > { %6102 = vrsqrt.f32 %v4316_v3 }
0x24a3   : > { %v6103_v53 = vpop.eup %6102 }
0x24a4   : > { %v4318_v6 = vmul.f32 %v6103_v53, %v4310_v52 }
0x24a6   : > { %v4325_v41 = vmul.f32 %v5116_v4, %v4318_v6 }
0x24a8   : > { %v4332_v58 = vadd.f32 %v5117_v7, %v4325_v41 }
0x24aa   : > { %v4333_v43 = vpack.c.bf16 %v4332_v58, %v4332_v58 }
0x24ac   : > { %5843 = vmatmul.mubr.msk.bf16.vlgmr.msra.gmra.mxu1 %vm766_vm6, %v4333_v43 }
0x24ad   : > { %5874 = vmatprep.mubr.msk.bf16.mxu1 %vm6169_vm7, %v6167_v5  ;;  %5867 = vmatpush3.bf16.msra.mxu1 %v6060_v9 }
0x24ae   : > { %5868 = vmatprep.subr.bf16.mxu1 %v6167_v5 }
0x24b1   : > { %5869 = vmatpush3.bf16.msra.mxu1 %v6061_v10 }
0x24b2   : > { %5870 = vmatprep.subr.bf16.mxu1 %v6167_v5 }
0x24b5   : > { %5871 = vmatpush3.bf16.msra.mxu1 %v6062_v22 }
0x24b6   : > { %5872 = vmatprep.subr.bf16.mxu1 %v6167_v5  ;;  %v5159_v5 = vld [vmem:[%s7364_s19] ss:$0 sm:$0xff] }
0x24b9   : > { %5873 = vmatpush3.bf16.msra.mxu1 %v6063_v23 }
0x256c   : > { %v4412_v12 = vpop.f32.mrf.mxu1 }
0x256d   : > { %v4413_v15 = vadd.f32 %v5127_v11, %v4412_v12 }
0x256e   : > { %v5844_v16 = vpop.f32.mrf.mxu1 }
0x256f   : > { %v4418_v17 = vmax.f32 %v4413_v15, 0.0 }
0x2570   : > { %v4415_v18 = vpop.f32.mrf.mxu1 }
0x2571   : > { %v4419_v19 = vpack.c.bf16 %v4418_v17, %v4418_v17 }
0x2572   : > { %v5845_v20 = vpop.f32.mrf.mxu1 }
0x2573   : > { %5863 = vmatmul.mubr.bf16.vlgmr.msra.gmra.mxu0 %v4419_v19 }
0x2633   : > { %v4527_v26 = vpop.f32.mrf.mxu0 }
0x2634   : > { %v4528_v27 = vadd.f32 %v5150_v24, %v4527_v26 }
0x2635   : > { %v5864_v28 = vpop.f32.mrf.mxu0 }
0x2636   : > { %v4533_v29 = vadd.f32 %v4528_v27, %v7211_v47 }
0x2637   : > { %v4530_v30 = vpop.f32.mrf.mxu0 }
0x2638   : > { %v4534_v33 = vpack.c.bf16 %v4533_v29, %v4533_v29 }
0x2639   : > { %v5865_v31 = vpop.f32.mrf.mxu0 }
0x263a   : > { %5875 = vmatmul.mubr.msk.bf16.vlgmr.msra.gmra.mxu1 %vm766_vm6, %v4534_v33 }
0x26fa   : > { %v4611_v32 = vpop.f32.mrf.mxu1 }
0x26fb   : > { %v4612_v34 = vadd.f32 %v5159_v5, %v4611_v32 }
0x26fc   : > { %v5876_v35 = vpop.f32.mrf.mxu1 }
0x26fd   : > { %4617 = vst [vmem:[%s620_s27] sm:$0xff] %v4612_v34 }
0x26fe   : > { %v4614_v36 = vpop.f32.mrf.mxu1 }
0x26ff   : > { %6117 = shalt.err (!%p6114_p3)
}
0x2700   : > { %s6118_s29 = scalar_lea.hbm %s7304_s5, 128  ;;  %s6122_s23 = scalar_lea.hbm %s7402_s3, 256 }
0x2701   : > { %p6119_p4 = scmp.ne.s32.totalorder %s7304_s5, %s6118_s29  ;;  %p6123_p9 = scmp.lt.s32.totalorder %s7304_s5, %s7402_s3 }
0x2702   : > { %p6124_p10 = scmp.lt.s32.totalorder %s6122_s23, %s6118_s29 }
0x2703   : > { %p6120_p7 = pnand %p6119_p4, %p6315_p5 }
0x2704   : > { %p6125_p11 = por %p6124_p10, %p6123_p9 }
0x2705   : > { %p6121_p8 = pneg %p6120_p7 }
0x2707   : > { %p6126_p12 = pnand %p6125_p11, %p6121_p8 }
0x2709   : > { %6129 = shalt.err (!%p6126_p12)
}
0x270a   : > { %5878 = dma.vmem_to_hbm [thread:$0]  (%p6315_p5), %s7306_s30, 128, %s7304_s5, %s4619_s24   ;;  %v5877_v37 = vpop.f32.mrf.mxu1 }
0x270b PF: > { %s7403_s28 = sld [smem:[#allocation7_spill]] }
0x270c   : > { %s7404_s20 = sld [smem:[#allocation5_spill]] }
0x2711   : > { %p5884_p13 = scmp.ge.s32.totalorder %s7403_s28, 2 }
0x2712   : > { %s4644_s1 = sand.u32 1, %s7404_s20  }
0x2713   : > { %p5881_p0 = pnand %p5884_p13, %p6319_p6  ;;  %s4645_s6 = scalar_lea.sflag [#allocation3], %s4644_s1 }
0x2715   : > { %p5882_p1 = pneg %p5881_p0 }
0x2717   : > { %6147 = dma.done.wait (%p5882_p1), %s4645_s6, 128  }
0x2718   : > { %6149 = vsyncadd (%p5882_p1), %s4645_s6, 4294967168  ;;  %s7406_s24 = sld [smem:[#allocation8_spill]]  ;;  %s7409_s1 = smov %s6156_s22 }
0x2719   : > { %s7407_s29 = sld [smem:[#allocation6_spill]] }
0x271a   : > { %s7408_s23 = sld [smem:[#allocation9_spill]] }
0x271e   : > { %p30_p2 = scmp.ge.s32.totalorder %s7406_s24, 4  }
0x271f   : > { %s7410_s22 = smov %s7407_s29 }
0x2720   :  { %32 = sbr.rel (!%p30_p2) target bundleno = 12 (0xc), region = 193 }
0x2725   :  { %4650 = vsyncpa [#allocation3], 1 }
0x2726   :  { %4652 = vsyncpa [#allocation3 + $0x1], 1 }

</bundles_post_ra>
